<compile_context>
chip_gen: v6e
topology: v6e:2x2x1
jax: 0.10.0
libtpu: 0.0.40
codegen_flags: <defaults>
</compile_context>

<pallas_src>
import functools
import math

import jax
import jax.numpy as jnp
from jax import lax
from jax.experimental import pallas as pl
from jax.experimental.pallas import tpu as pltpu


# ------------------------------ in-kernel helpers ------------------------------

def _layer_norm(x, g, b, eps):
    mu = jnp.mean(x, axis=-1, keepdims=True)
    xc = x - mu
    var = jnp.mean(xc * xc, axis=-1, keepdims=True)
    return xc * lax.rsqrt(var + eps) * g + b


def _gelu(x):
    # TODO(synk): HF roberta uses exact erf-GELU; tanh approximation used here.
    c = math.sqrt(2.0 / math.pi)
    return 0.5 * x * (1.0 + jnp.tanh(c * (x + 0.044715 * x * x * x)))


# ---------------------------------- kernels ------------------------------------

def embed_ln_kernel(we_ref, pe_ref, te_ref, g_ref, b_ref, o_ref, *, eps):
    # word + position + token_type embeddings, then LayerNorm (embedding dropout = identity).
    x = we_ref[...] + pe_ref[...] + te_ref[...]
    o_ref[...] = _layer_norm(x, g_ref[...], b_ref[...], eps)


def encoder_layer_kernel(x_ref, bias_ref, wqkv_ref, bqkv_ref, wo_ref, bo_ref,
                         ln1g_ref, ln1b_ref, w1_ref, b1_ref, w2_ref, b2_ref,
                         ln2g_ref, ln2b_ref, o_ref, *, num_heads, head_dim, eps):
    # One grid step == one batch element (S, H) row-block.  Whole post-LN transformer
    # layer fused: QKV GEMM -> per-head attention -> out-proj -> +res -> LN -> FFN -> +res -> LN.
    H = num_heads * head_dim
    x = x_ref[...]                                                    # (S, H) f32
    S = x.shape[0]
    xb = x.astype(jnp.bfloat16)
    qkv = jnp.dot(xb, wqkv_ref[...], preferred_element_type=jnp.float32) + bqkv_ref[...]
    q = qkv[:, 0 * H:1 * H].astype(jnp.bfloat16)
    k = qkv[:, 1 * H:2 * H].astype(jnp.bfloat16)
    v = qkv[:, 2 * H:3 * H].astype(jnp.bfloat16)
    bias = bias_ref[...].reshape(1, S)                                # additive mask bias
    scale = 1.0 / math.sqrt(head_dim)

    ctx_heads = []
    for h in range(num_heads):                                        # static, small
        sl = slice(h * head_dim, (h + 1) * head_dim)
        qh, kh, vh = q[:, sl], k[:, sl], v[:, sl]
        # scores = qh @ kh^T  (contract the head dim on both sides; no explicit transpose)
        s = lax.dot_general(qh, kh, (((1,), (1,)), ((), ())),
                            preferred_element_type=jnp.float32) * scale + bias
        s = s - jnp.max(s, axis=-1, keepdims=True)
        p = jnp.exp(s)
        p = p / jnp.sum(p, axis=-1, keepdims=True)
        # TODO(synk): attention-probs dropout is eval-mode identity and omitted.
        ctx_heads.append(jnp.dot(p.astype(jnp.bfloat16), vh,
                                 preferred_element_type=jnp.float32))
    ctx = jnp.concatenate(ctx_heads, axis=1)                          # (S, H)

    attn = jnp.dot(ctx.astype(jnp.bfloat16), wo_ref[...],
                   preferred_element_type=jnp.float32) + bo_ref[...]
    h1 = _layer_norm(x + attn, ln1g_ref[...], ln1b_ref[...], eps)

    ff = jnp.dot(h1.astype(jnp.bfloat16), w1_ref[...],
                 preferred_element_type=jnp.float32) + b1_ref[...]
    ff = _gelu(ff)
    ff = jnp.dot(ff.astype(jnp.bfloat16), w2_ref[...],
                 preferred_element_type=jnp.float32) + b2_ref[...]
    o_ref[...] = _layer_norm(h1 + ff, ln2g_ref[...], ln2b_ref[...], eps)


def tail_kernel(x_ref, w_ref, b_ref, lab_ref, loss_ref, logits_ref,
                *, batch, seq, num_labels):
    # sequence_output[:, :1, :].squeeze() -> classifier -> CrossEntropyLoss, all fused.
    # CLS rows (row b*seq of the (B*S, H) hidden states) are selected in-kernel.
    rows = [x_ref[pl.ds(b * seq, 1), :] for b in range(batch)]
    cls = jnp.concatenate(rows, axis=0)                               # (B, H) f32
    logits_p = jnp.dot(cls.astype(jnp.bfloat16), w_ref[...],
                       preferred_element_type=jnp.float32) + b_ref[...]   # (B, 128) lane-dense
    npad = logits_p.shape[-1]
    col = lax.broadcasted_iota(jnp.int32, (batch, npad), 1)
    masked = jnp.where(col < num_labels, logits_p, -1e30)             # ignore padded lanes in CE
    mx = jnp.max(masked, axis=-1, keepdims=True)
    lse = mx + jnp.log(jnp.sum(jnp.exp(masked - mx), axis=-1, keepdims=True))
    onehot = (col == lab_ref[...]).astype(jnp.float32)                # labels: (B, 1) int32
    picked = jnp.sum(logits_p * onehot, axis=-1, keepdims=True)
    loss_ref[...] = jnp.sum(lse - picked, axis=0, keepdims=True) * (1.0 / batch)
    logits_ref[...] = logits_p[:, :num_labels]


# ------------------------------- pallas wrappers --------------------------------

def roberta_embed(input_ids, packed, *, pad_id, eps):
    B, S = input_ids.shape
    H = packed["word_emb"].shape[1]
    # XLM-R position ids: cumsum of non-pad mask, offset by padding_idx.
    mask = (input_ids != pad_id).astype(jnp.int32)
    position_ids = jnp.cumsum(mask, axis=1) * mask + pad_id
    # TODO(synk): embedding gathers are plain XLA takes (pure data movement); a
    # scalar-prefetch pl.Element gather kernel would be the fully-in-Pallas form.
    we = jnp.take(packed["word_emb"], input_ids.reshape(-1), axis=0)      # (B*S, H)
    pe = jnp.take(packed["pos_emb"], position_ids.reshape(-1), axis=0)    # (B*S, H)
    te = packed["type_emb"][0:1]                                          # token_type_ids == 0
    return pl.pallas_call(
        functools.partial(embed_ln_kernel, eps=eps),
        out_shape=jax.ShapeDtypeStruct((B * S, H), jnp.float32),
    )(we, pe, te, packed["emb_ln_g"], packed["emb_ln_b"])


def encoder_layer(x, attn_bias, lp, *, batch, seq, num_heads, head_dim, eps):
    H = num_heads * head_dim
    inter = lp["w1"].shape[1]

    def full(shape):
        return pl.BlockSpec(shape, lambda i, _n=len(shape): (0,) * _n)

    kern = functools.partial(encoder_layer_kernel, num_heads=num_heads,
                             head_dim=head_dim, eps=eps)
    return pl.pallas_call(
        kern,
        out_shape=jax.ShapeDtypeStruct((batch * seq, H), jnp.float32),
        grid=(batch,),
        in_specs=[
            pl.BlockSpec((seq, H), lambda i: (i, 0)),          # x: one batch row-block
            pl.BlockSpec((1, 1, seq), lambda i: (i, 0, 0)),    # additive attention bias
            full((H, 3 * H)), full((1, 3 * H)),                # fused QKV
            full((H, H)), full((1, H)),                        # out-proj
            full((1, H)), full((1, H)),                        # LN1
            full((H, inter)), full((1, inter)),                # FFN up
            full((inter, H)), full((1, H)),                    # FFN down
            full((1, H)), full((1, H)),                        # LN2
        ],
        out_specs=pl.BlockSpec((seq, H), lambda i: (i, 0)),
        compiler_params=pltpu.CompilerParams(
            dimension_semantics=("parallel",)),                # megacore on v7x
    )(x, attn_bias, lp["wqkv"], lp["bqkv"], lp["wo"], lp["bo"],
      lp["ln1_g"], lp["ln1_b"], lp["w1"], lp["b1"], lp["w2"], lp["b2"],
      lp["ln2_g"], lp["ln2_b"])


# -------------------------------- forward pass -----------------------------------

def seq_classification_forward(packed, input_ids, attention_mask, labels, *,
                               num_heads, head_dim, eps, num_labels, pad_id):
    B, S = input_ids.shape
    H = num_heads * head_dim

    x = roberta_embed(input_ids, packed, pad_id=pad_id, eps=eps)          # (B*S, H)

    # HF-style extended attention mask: additive bias, 0 where attended / -1e9 where masked.
    attn_bias = ((1.0 - attention_mask.astype(jnp.float32)) * -1e9).reshape(B, 1, S)

    for lp in packed["layers"]:
        x = encoder_layer(x, attn_bias, lp, batch=B, seq=S,
                          num_heads=num_heads, head_dim=head_dim, eps=eps)

    loss, logits = pl.pallas_call(
        functools.partial(tail_kernel, batch=B, seq=S, num_labels=num_labels),
        out_shape=(jax.ShapeDtypeStruct((1, 1), jnp.float32),
                   jax.ShapeDtypeStruct((B, num_labels), jnp.float32)),
    )(x, packed["cls_w"], packed["cls_b"], labels.astype(jnp.int32).reshape(B, 1))
    return loss[0, 0], logits


# ------------------------------ parameter handling --------------------------------

def init_params(key, *, vocab, max_pos, hidden, inter, layers, num_labels):
    # TODO(synk): stands in for the xlm-roberta-base pretrained checkpoint (no file/network
    # access in this self-contained script); same architecture, random small-scale weights.
    params = {}

    def add(name, shape, scale=0.02):
        nonlocal key
        key, sub = jax.random.split(key)
        params[name] = scale * jax.random.normal(sub, shape, jnp.float32)

    add("word_emb", (vocab, hidden))
    add("pos_emb", (max_pos, hidden))
    add("type_emb", (1, hidden))
    params["emb_ln_g"] = jnp.ones((1, hidden), jnp.float32)
    params["emb_ln_b"] = jnp.zeros((1, hidden), jnp.float32)
    for l in range(layers):
        p = f"l{l}_"
        # weights stored in (in, out) math layout (a real torch checkpoint would be transposed)
        add(p + "wq", (hidden, hidden)); add(p + "bq", (hidden,))
        add(p + "wk", (hidden, hidden)); add(p + "bk", (hidden,))
        add(p + "wv", (hidden, hidden)); add(p + "bv", (hidden,))
        add(p + "wo", (hidden, hidden)); add(p + "bo", (hidden,))
        params[p + "ln1_g"] = jnp.ones((1, hidden), jnp.float32)
        params[p + "ln1_b"] = jnp.zeros((1, hidden), jnp.float32)
        add(p + "w1", (hidden, inter)); add(p + "b1", (inter,))
        add(p + "w2", (inter, hidden)); add(p + "b2", (hidden,))
        params[p + "ln2_g"] = jnp.ones((1, hidden), jnp.float32)
        params[p + "ln2_b"] = jnp.zeros((1, hidden), jnp.float32)
    add("cls_w", (num_labels, hidden))   # PyTorch nn.Linear layout (out, in)
    add("cls_b", (num_labels,))
    return params


def pack_params(p, *, layers, num_labels, lane_pad=128):
    """Pre-pack once outside the jitted forward: fuse QKV, cast GEMM weights to bf16
    (f32 accumulation in-kernel), biases as (1, N) f32, classifier padded to 128 lanes."""
    f = {"word_emb": p["word_emb"], "pos_emb": p["pos_emb"], "type_emb": p["type_emb"],
         "emb_ln_g": p["emb_ln_g"], "emb_ln_b": p["emb_ln_b"], "layers": []}
    for l in range(layers):
        q = f"l{l}_"
        f["layers"].append({
            "wqkv": jnp.concatenate([p[q + "wq"], p[q + "wk"], p[q + "wv"]],
                                    axis=1).astype(jnp.bfloat16),
            "bqkv": jnp.concatenate([p[q + "bq"], p[q + "bk"], p[q + "bv"]]).reshape(1, -1),
            "wo": p[q + "wo"].astype(jnp.bfloat16), "bo": p[q + "bo"].reshape(1, -1),
            "ln1_g": p[q + "ln1_g"], "ln1_b": p[q + "ln1_b"],
            "w1": p[q + "w1"].astype(jnp.bfloat16), "b1": p[q + "b1"].reshape(1, -1),
            "w2": p[q + "w2"].astype(jnp.bfloat16), "b2": p[q + "b2"].reshape(1, -1),
            "ln2_g": p[q + "ln2_g"], "ln2_b": p[q + "ln2_b"],
        })
    npad = max(lane_pad, ((num_labels + lane_pad - 1) // lane_pad) * lane_pad)
    cw = p["cls_w"].T                                   # (hidden, num_labels)
    cb = p["cls_b"].reshape(1, -1)
    f["cls_w"] = jnp.pad(cw, ((0, 0), (0, npad - num_labels))).astype(jnp.bfloat16)
    f["cls_b"] = jnp.pad(cb, ((0, 0), (0, npad - num_labels)))
    return f


# ------------------------------------- main ---------------------------------------

if __name__ == "__main__":
    B, S, num_labels = 2, 8, 5
    hidden, num_heads, num_layers, inter = 128, 4, 2, 512
    head_dim = hidden // num_heads
    vocab, max_pos, pad_id, eps = 1000, 32, 1, 1e-5

    params = init_params(jax.random.PRNGKey(0), vocab=vocab, max_pos=max_pos,
                         hidden=hidden, inter=inter, layers=num_layers,
                         num_labels=num_labels)
    packed = pack_params(params, layers=num_layers, num_labels=num_labels)

    k_ids, k_lbl = jax.random.split(jax.random.PRNGKey(0), 2)
    input_ids = jax.random.randint(k_ids, (B, S), 5, vocab, dtype=jnp.int32)
    attention_mask = jnp.ones((B, S), jnp.int32)
    labels = jax.random.randint(k_lbl, (B,), 0, num_labels, dtype=jnp.int32)

    fwd = jax.jit(functools.partial(
        seq_classification_forward, num_heads=num_heads, head_dim=head_dim,
        eps=eps, num_labels=num_labels, pad_id=pad_id))
    loss, logits = fwd(packed, input_ids, attention_mask, labels)
    jax.block_until_ready((loss, logits))
    assert logits.shape == (B, num_labels)
    assert bool(jnp.isfinite(loss))
    print("KERNEL_OK")
</pallas_src>

<mosaic_0001>
module attributes {stable_mosaic.version = 11 : i64} {
  func.func @embed_ln_kernel(%arg0: memref<16x128xf32, #tpu.memory_space<vmem>>, %arg1: memref<16x128xf32, #tpu.memory_space<vmem>>, %arg2: memref<1x128xf32, #tpu.memory_space<vmem>>, %arg3: memref<1x128xf32, #tpu.memory_space<vmem>>, %arg4: memref<1x128xf32, #tpu.memory_space<vmem>>, %arg5: memref<16x128xf32, #tpu.memory_space<vmem>>) attributes {dimension_semantics = [], scalar_prefetch = 0 : i64, scratch_operands = 0 : i64, tpu.core_type = #tpu.core_type<tc>} {
    %c0 = arith.constant 0 : index
    %c0_0 = arith.constant 0 : index
    %0 = vector.load %arg0[%c0, %c0_0] : memref<16x128xf32, #tpu.memory_space<vmem>>, vector<16x128xf32>
    %c0_1 = arith.constant 0 : index
    %c0_2 = arith.constant 0 : index
    %1 = vector.load %arg1[%c0_1, %c0_2] : memref<16x128xf32, #tpu.memory_space<vmem>>, vector<16x128xf32>
    %2 = arith.addf %0, %1 : vector<16x128xf32>
    %c0_3 = arith.constant 0 : index
    %c0_4 = arith.constant 0 : index
    %3 = vector.load %arg2[%c0_3, %c0_4] : memref<1x128xf32, #tpu.memory_space<vmem>>, vector<1x128xf32>
    %4 = vector.broadcast %3 : vector<1x128xf32> to vector<16x128xf32>
    %5 = arith.addf %2, %4 : vector<16x128xf32>
    %c0_5 = arith.constant 0 : index
    %c0_6 = arith.constant 0 : index
    %6 = vector.load %arg3[%c0_5, %c0_6] : memref<1x128xf32, #tpu.memory_space<vmem>>, vector<1x128xf32>
    %c0_7 = arith.constant 0 : index
    %c0_8 = arith.constant 0 : index
    %7 = vector.load %arg4[%c0_7, %c0_8] : memref<1x128xf32, #tpu.memory_space<vmem>>, vector<1x128xf32>
    %cst = arith.constant dense<0.000000e+00> : vector<16xf32>
    %8 = vector.multi_reduction <add>, %5, %cst [1] : vector<16x128xf32> to vector<16xf32>
    %9 = vector.shape_cast %8 : vector<16xf32> to vector<16x1xf32>
    %cst_9 = arith.constant 1.280000e+02 : f32
    %10 = vector.broadcast %cst_9 : f32 to vector<16x1xf32>
    %11 = arith.divf %9, %10 : vector<16x1xf32>
    %12 = vector.broadcast %11 : vector<16x1xf32> to vector<16x128xf32>
    %13 = arith.subf %5, %12 : vector<16x128xf32>
    %14 = arith.mulf %13, %13 : vector<16x128xf32>
    %cst_10 = arith.constant dense<0.000000e+00> : vector<16xf32>
    %15 = vector.multi_reduction <add>, %14, %cst_10 [1] : vector<16x128xf32> to vector<16xf32>
    %16 = vector.shape_cast %15 : vector<16xf32> to vector<16x1xf32>
    %cst_11 = arith.constant 1.280000e+02 : f32
    %17 = vector.broadcast %cst_11 : f32 to vector<16x1xf32>
    %18 = arith.divf %16, %17 : vector<16x1xf32>
    %cst_12 = arith.constant 9.99999974E-6 : f32
    %19 = vector.broadcast %cst_12 : f32 to vector<16x1xf32>
    %20 = arith.addf %18, %19 : vector<16x1xf32>
    %21 = math.rsqrt %20 : vector<16x1xf32>
    %22 = vector.broadcast %21 : vector<16x1xf32> to vector<16x128xf32>
    %23 = arith.mulf %13, %22 : vector<16x128xf32>
    %24 = vector.broadcast %6 : vector<1x128xf32> to vector<16x128xf32>
    %25 = arith.mulf %23, %24 : vector<16x128xf32>
    %26 = vector.broadcast %7 : vector<1x128xf32> to vector<16x128xf32>
    %27 = arith.addf %25, %26 : vector<16x128xf32>
    %c0_13 = arith.constant 0 : index
    %c0_14 = arith.constant 0 : index
    %28 = vector.load %arg5[%c0_13, %c0_14] : memref<16x128xf32, #tpu.memory_space<vmem>>, vector<16x128xf32>
    tpu.vector_store %arg5[%c0_13, %c0_14], %27 {strides = array<i32>} : memref<16x128xf32, #tpu.memory_space<vmem>>, vector<16x128xf32>,
    return
  }
}

module attributes {stable_mosaic.version = 11 : i64} {
  func.func @encoder_layer_kernel(%arg0: i32, %arg1: memref<8x128xf32, #tpu.memory_space<vmem>>, %arg2: memref<1x1x8xf32, #tpu.memory_space<vmem>>, %arg3: memref<128x384xbf16, #tpu.memory_space<vmem>>, %arg4: memref<1x384xf32, #tpu.memory_space<vmem>>, %arg5: memref<128x128xbf16, #tpu.memory_space<vmem>>, %arg6: memref<1x128xf32, #tpu.memory_space<vmem>>, %arg7: memref<1x128xf32, #tpu.memory_space<vmem>>, %arg8: memref<1x128xf32, #tpu.memory_space<vmem>>, %arg9: memref<128x512xbf16, #tpu.memory_space<vmem>>, %arg10: memref<1x512xf32, #tpu.memory_space<vmem>>, %arg11: memref<512x128xbf16, #tpu.memory_space<vmem>>, %arg12: memref<1x128xf32, #tpu.memory_space<vmem>>, %arg13: memref<1x128xf32, #tpu.memory_space<vmem>>, %arg14: memref<1x128xf32, #tpu.memory_space<vmem>>, %arg15: memref<8x128xf32, #tpu.memory_space<vmem>>) attributes {dimension_semantics = [#tpu.dimension_semantics<parallel>], iteration_bounds = array<i64: 2>, scalar_prefetch = 0 : i64, scratch_operands = 0 : i64, tpu.core_type = #tpu.core_type<tc>, window_params = [{transform_indices = @transform_0, window_bounds = array<i64: 8, 128>}, {transform_indices = @transform_1, window_bounds = array<i64: 1, 1, 8>}, {pipeline_mode = #tpu.pipeline_mode<synchronous>, transform_indices = @transform_2, window_bounds = array<i64: 128, 384>}, {pipeline_mode = #tpu.pipeline_mode<synchronous>, transform_indices = @transform_3, window_bounds = array<i64: 1, 384>}, {pipeline_mode = #tpu.pipeline_mode<synchronous>, transform_indices = @transform_4, window_bounds = array<i64: 128, 128>}, {pipeline_mode = #tpu.pipeline_mode<synchronous>, transform_indices = @transform_5, window_bounds = array<i64: 1, 128>}, {pipeline_mode = #tpu.pipeline_mode<synchronous>, transform_indices = @transform_6, window_bounds = array<i64: 1, 128>}, {pipeline_mode = #tpu.pipeline_mode<synchronous>, transform_indices = @transform_7, window_bounds = array<i64: 1, 128>}, {pipeline_mode = #tpu.pipeline_mode<synchronous>, transform_indices = @transform_8, window_bounds = array<i64: 128, 512>}, {pipeline_mode = #tpu.pipeline_mode<synchronous>, transform_indices = @transform_9, window_bounds = array<i64: 1, 512>}, {pipeline_mode = #tpu.pipeline_mode<synchronous>, transform_indices = @transform_10, window_bounds = array<i64: 512, 128>}, {pipeline_mode = #tpu.pipeline_mode<synchronous>, transform_indices = @transform_11, window_bounds = array<i64: 1, 128>}, {pipeline_mode = #tpu.pipeline_mode<synchronous>, transform_indices = @transform_12, window_bounds = array<i64: 1, 128>}, {pipeline_mode = #tpu.pipeline_mode<synchronous>, transform_indices = @transform_13, window_bounds = array<i64: 1, 128>}, {transform_indices = @transform_14, window_bounds = array<i64: 8, 128>}]} {
    %c0 = arith.constant 0 : index
    %c0_0 = arith.constant 0 : index
    %0 = vector.load %arg1[%c0, %c0_0] : memref<8x128xf32, #tpu.memory_space<vmem>>, vector<8x128xf32>
    %1 = arith.truncf %0 : vector<8x128xf32> to vector<8x128xbf16>
    %c0_1 = arith.constant 0 : index
    %c0_2 = arith.constant 0 : index
    %2 = vector.load %arg3[%c0_1, %c0_2] : memref<128x384xbf16, #tpu.memory_space<vmem>>, vector<128x384xbf16>
    %cst = arith.constant dense<0.000000e+00> : vector<8x384xf32>
    %3 = tpu.matmul %1, %2, %cst {dimension_numbers = #tpu.dot_dimension_numbers<[1], [0], [0], [1], [0, 0, 1, 1], [], []>} : vector<8x128xbf16>, vector<128x384xbf16>, vector<8x384xf32> -> vector<8x384xf32>
    %c0_3 = arith.constant 0 : index
    %c0_4 = arith.constant 0 : index
    %4 = vector.load %arg4[%c0_3, %c0_4] : memref<1x384xf32, #tpu.memory_space<vmem>>, vector<1x384xf32>
    %5 = vector.broadcast %4 : vector<1x384xf32> to vector<8x384xf32>
    %6 = arith.addf %3, %5 : vector<8x384xf32>
    %7 = vector.extract_strided_slice %6 {offsets = [0, 0], sizes = [8, 128], strides = [1, 1]} : vector<8x384xf32> to vector<8x128xf32>
    %8 = arith.truncf %7 : vector<8x128xf32> to vector<8x128xbf16>
    %9 = vector.extract_strided_slice %6 {offsets = [0, 128], sizes = [8, 128], strides = [1, 1]} : vector<8x384xf32> to vector<8x128xf32>
    %10 = arith.truncf %9 : vector<8x128xf32> to vector<8x128xbf16>
    %11 = vector.extract_strided_slice %6 {offsets = [0, 256], sizes = [8, 128], strides = [1, 1]} : vector<8x384xf32> to vector<8x128xf32>
    %12 = arith.truncf %11 : vector<8x128xf32> to vector<8x128xbf16>
    %c0_5 = arith.constant 0 : index
    %c0_6 = arith.constant 0 : index
    %c0_7 = arith.constant 0 : index
    %13 = vector.load %arg2[%c0_5, %c0_6, %c0_7] : memref<1x1x8xf32, #tpu.memory_space<vmem>>, vector<1x1x8xf32>
    %14 = vector.shape_cast %13 : vector<1x1x8xf32> to vector<1x8xf32>
    %15 = vector.extract_strided_slice %8 {offsets = [0, 0], sizes = [8, 32], strides = [1, 1]} : vector<8x128xbf16> to vector<8x32xbf16>
    %16 = vector.extract_strided_slice %10 {offsets = [0, 0], sizes = [8, 32], strides = [1, 1]} : vector<8x128xbf16> to vector<8x32xbf16>
    %17 = vector.extract_strided_slice %12 {offsets = [0, 0], sizes = [8, 32], strides = [1, 1]} : vector<8x128xbf16> to vector<8x32xbf16>
    %cst_8 = arith.constant dense<0.000000e+00> : vector<8x8xf32>
    %18 = tpu.matmul %15, %16, %cst_8 {dimension_numbers = #tpu.dot_dimension_numbers<[1], [1], [0], [0], [0, 0, 1, 0], [], []>} : vector<8x32xbf16>, vector<8x32xbf16>, vector<8x8xf32> -> vector<8x8xf32>
    %cst_9 = arith.constant 0.176776692 : f32
    %19 = vector.broadcast %cst_9 : f32 to vector<8x8xf32>
    %20 = arith.mulf %18, %19 : vector<8x8xf32>
    %21 = vector.broadcast %14 : vector<1x8xf32> to vector<8x8xf32>
    %22 = arith.addf %20, %21 : vector<8x8xf32>
    %cst_10 = arith.constant dense<0xFF800000> : vector<8xf32>
    %23 = vector.multi_reduction <maximumf>, %22, %cst_10 [1] : vector<8x8xf32> to vector<8xf32>
    %24 = vector.shape_cast %23 : vector<8xf32> to vector<8x1xf32>
    %25 = vector.broadcast %24 : vector<8x1xf32> to vector<8x8xf32>
    %26 = arith.subf %22, %25 : vector<8x8xf32>
    %27 = math.exp %26 : vector<8x8xf32>
    %cst_11 = arith.constant dense<0.000000e+00> : vector<8xf32>
    %28 = vector.multi_reduction <add>, %27, %cst_11 [1] : vector<8x8xf32> to vector<8xf32>
    %29 = vector.shape_cast %28 : vector<8xf32> to vector<8x1xf32>
    %30 = vector.broadcast %29 : vector<8x1xf32> to vector<8x8xf32>
    %31 = arith.divf %27, %30 : vector<8x8xf32>
    %32 = arith.truncf %31 : vector<8x8xf32> to vector<8x8xbf16>
    %cst_12 = arith.constant dense<0.000000e+00> : vector<8x32xf32>
    %33 = tpu.matmul %32, %17, %cst_12 {dimension_numbers = #tpu.dot_dimension_numbers<[1], [0], [0], [1], [0, 0, 1, 1], [], []>} : vector<8x8xbf16>, vector<8x32xbf16>, vector<8x32xf32> -> vector<8x32xf32>
    %34 = vector.extract_strided_slice %8 {offsets = [0, 32], sizes = [8, 32], strides = [1, 1]} : vector<8x128xbf16> to vector<8x32xbf16>
    %35 = vector.extract_strided_slice %10 {offsets = [0, 32], sizes = [8, 32], strides = [1, 1]} : vector<8x128xbf16> to vector<8x32xbf16>
    %36 = vector.extract_strided_slice %12 {offsets = [0, 32], sizes = [8, 32], strides = [1, 1]} : vector<8x128xbf16> to vector<8x32xbf16>
    %cst_13 = arith.constant dense<0.000000e+00> : vector<8x8xf32>
    %37 = tpu.matmul %34, %35, %cst_13 {dimension_numbers = #tpu.dot_dimension_numbers<[1], [1], [0], [0], [0, 0, 1, 0], [], []>} : vector<8x32xbf16>, vector<8x32xbf16>, vector<8x8xf32> -> vector<8x8xf32>
    %cst_14 = arith.constant 0.176776692 : f32
    %38 = vector.broadcast %cst_14 : f32 to vector<8x8xf32>
    %39 = arith.mulf %37, %38 : vector<8x8xf32>
    %40 = vector.broadcast %14 : vector<1x8xf32> to vector<8x8xf32>
    %41 = arith.addf %39, %40 : vector<8x8xf32>
    %cst_15 = arith.constant dense<0xFF800000> : vector<8xf32>
    %42 = vector.multi_reduction <maximumf>, %41, %cst_15 [1] : vector<8x8xf32> to vector<8xf32>
    %43 = vector.shape_cast %42 : vector<8xf32> to vector<8x1xf32>
    %44 = vector.broadcast %43 : vector<8x1xf32> to vector<8x8xf32>
    %45 = arith.subf %41, %44 : vector<8x8xf32>
    %46 = math.exp %45 : vector<8x8xf32>
    %cst_16 = arith.constant dense<0.000000e+00> : vector<8xf32>
    %47 = vector.multi_reduction <add>, %46, %cst_16 [1] : vector<8x8xf32> to vector<8xf32>
    %48 = vector.shape_cast %47 : vector<8xf32> to vector<8x1xf32>
    %49 = vector.broadcast %48 : vector<8x1xf32> to vector<8x8xf32>
    %50 = arith.divf %46, %49 : vector<8x8xf32>
    %51 = arith.truncf %50 : vector<8x8xf32> to vector<8x8xbf16>
    %cst_17 = arith.constant dense<0.000000e+00> : vector<8x32xf32>
    %52 = tpu.matmul %51, %36, %cst_17 {dimension_numbers = #tpu.dot_dimension_numbers<[1], [0], [0], [1], [0, 0, 1, 1], [], []>} : vector<8x8xbf16>, vector<8x32xbf16>, vector<8x32xf32> -> vector<8x32xf32>
    %53 = vector.extract_strided_slice %8 {offsets = [0, 64], sizes = [8, 32], strides = [1, 1]} : vector<8x128xbf16> to vector<8x32xbf16>
    %54 = vector.extract_strided_slice %10 {offsets = [0, 64], sizes = [8, 32], strides = [1, 1]} : vector<8x128xbf16> to vector<8x32xbf16>
    %55 = vector.extract_strided_slice %12 {offsets = [0, 64], sizes = [8, 32], strides = [1, 1]} : vector<8x128xbf16> to vector<8x32xbf16>
    %cst_18 = arith.constant dense<0.000000e+00> : vector<8x8xf32>
    %56 = tpu.matmul %53, %54, %cst_18 {dimension_numbers = #tpu.dot_dimension_numbers<[1], [1], [0], [0], [0, 0, 1, 0], [], []>} : vector<8x32xbf16>, vector<8x32xbf16>, vector<8x8xf32> -> vector<8x8xf32>
    %cst_19 = arith.constant 0.176776692 : f32
    %57 = vector.broadcast %cst_19 : f32 to vector<8x8xf32>
    %58 = arith.mulf %56, %57 : vector<8x8xf32>
    %59 = vector.broadcast %14 : vector<1x8xf32> to vector<8x8xf32>
    %60 = arith.addf %58, %59 : vector<8x8xf32>
    %cst_20 = arith.constant dense<0xFF800000> : vector<8xf32>
    %61 = vector.multi_reduction <maximumf>, %60, %cst_20 [1] : vector<8x8xf32> to vector<8xf32>
    %62 = vector.shape_cast %61 : vector<8xf32> to vector<8x1xf32>
    %63 = vector.broadcast %62 : vector<8x1xf32> to vector<8x8xf32>
    %64 = arith.subf %60, %63 : vector<8x8xf32>
    %65 = math.exp %64 : vector<8x8xf32>
    %cst_21 = arith.constant dense<0.000000e+00> : vector<8xf32>
    %66 = vector.multi_reduction <add>, %65, %cst_21 [1] : vector<8x8xf32> to vector<8xf32>
    %67 = vector.shape_cast %66 : vector<8xf32> to vector<8x1xf32>
    %68 = vector.broadcast %67 : vector<8x1xf32> to vector<8x8xf32>
    %69 = arith.divf %65, %68 : vector<8x8xf32>
    %70 = arith.truncf %69 : vector<8x8xf32> to vector<8x8xbf16>
    %cst_22 = arith.constant dense<0.000000e+00> : vector<8x32xf32>
    %71 = tpu.matmul %70, %55, %cst_22 {dimension_numbers = #tpu.dot_dimension_numbers<[1], [0], [0], [1], [0, 0, 1, 1], [], []>} : vector<8x8xbf16>, vector<8x32xbf16>, vector<8x32xf32> -> vector<8x32xf32>
    %72 = vector.extract_strided_slice %8 {offsets = [0, 96], sizes = [8, 32], strides = [1, 1]} : vector<8x128xbf16> to vector<8x32xbf16>
    %73 = vector.extract_strided_slice %10 {offsets = [0, 96], sizes = [8, 32], strides = [1, 1]} : vector<8x128xbf16> to vector<8x32xbf16>
    %74 = vector.extract_strided_slice %12 {offsets = [0, 96], sizes = [8, 32], strides = [1, 1]} : vector<8x128xbf16> to vector<8x32xbf16>
    %cst_23 = arith.constant dense<0.000000e+00> : vector<8x8xf32>
    %75 = tpu.matmul %72, %73, %cst_23 {dimension_numbers = #tpu.dot_dimension_numbers<[1], [1], [0], [0], [0, 0, 1, 0], [], []>} : vector<8x32xbf16>, vector<8x32xbf16>, vector<8x8xf32> -> vector<8x8xf32>
    %cst_24 = arith.constant 0.176776692 : f32
    %76 = vector.broadcast %cst_24 : f32 to vector<8x8xf32>
    %77 = arith.mulf %75, %76 : vector<8x8xf32>
    %78 = vector.broadcast %14 : vector<1x8xf32> to vector<8x8xf32>
    %79 = arith.addf %77, %78 : vector<8x8xf32>
    %cst_25 = arith.constant dense<0xFF800000> : vector<8xf32>
    %80 = vector.multi_reduction <maximumf>, %79, %cst_25 [1] : vector<8x8xf32> to vector<8xf32>
    %81 = vector.shape_cast %80 : vector<8xf32> to vector<8x1xf32>
    %82 = vector.broadcast %81 : vector<8x1xf32> to vector<8x8xf32>
    %83 = arith.subf %79, %82 : vector<8x8xf32>
    %84 = math.exp %83 : vector<8x8xf32>
    %cst_26 = arith.constant dense<0.000000e+00> : vector<8xf32>
    %85 = vector.multi_reduction <add>, %84, %cst_26 [1] : vector<8x8xf32> to vector<8xf32>
    %86 = vector.shape_cast %85 : vector<8xf32> to vector<8x1xf32>
    %87 = vector.broadcast %86 : vector<8x1xf32> to vector<8x8xf32>
    %88 = arith.divf %84, %87 : vector<8x8xf32>
    %89 = arith.truncf %88 : vector<8x8xf32> to vector<8x8xbf16>
    %cst_27 = arith.constant dense<0.000000e+00> : vector<8x32xf32>
    %90 = tpu.matmul %89, %74, %cst_27 {dimension_numbers = #tpu.dot_dimension_numbers<[1], [0], [0], [1], [0, 0, 1, 1], [], []>} : vector<8x8xbf16>, vector<8x32xbf16>, vector<8x32xf32> -> vector<8x32xf32>
    %91 = tpu.concatenate %33, %52, %71, %90 in 1 : vector<8x32xf32>, vector<8x32xf32>, vector<8x32xf32>, vector<8x32xf32> -> vector<8x128xf32>
    %92 = arith.truncf %91 : vector<8x128xf32> to vector<8x128xbf16>
    %c0_28 = arith.constant 0 : index
    %c0_29 = arith.constant 0 : index
    %93 = vector.load %arg5[%c0_28, %c0_29] : memref<128x128xbf16, #tpu.memory_space<vmem>>, vector<128x128xbf16>
    %cst_30 = arith.constant dense<0.000000e+00> : vector<8x128xf32>
    %94 = tpu.matmul %92, %93, %cst_30 {dimension_numbers = #tpu.dot_dimension_numbers<[1], [0], [0], [1], [0, 0, 1, 1], [], []>} : vector<8x128xbf16>, vector<128x128xbf16>, vector<8x128xf32> -> vector<8x128xf32>
    %c0_31 = arith.constant 0 : index
    %c0_32 = arith.constant 0 : index
    %95 = vector.load %arg6[%c0_31, %c0_32] : memref<1x128xf32, #tpu.memory_space<vmem>>, vector<1x128xf32>
    %96 = vector.broadcast %95 : vector<1x128xf32> to vector<8x128xf32>
    %97 = arith.addf %94, %96 : vector<8x128xf32>
    %98 = arith.addf %0, %97 : vector<8x128xf32>
    %c0_33 = arith.constant 0 : index
    %c0_34 = arith.constant 0 : index
    %99 = vector.load %arg7[%c0_33, %c0_34] : memref<1x128xf32, #tpu.memory_space<vmem>>, vector<1x128xf32>
    %c0_35 = arith.constant 0 : index
    %c0_36 = arith.constant 0 : index
    %100 = vector.load %arg8[%c0_35, %c0_36] : memref<1x128xf32, #tpu.memory_space<vmem>>, vector<1x128xf32>
    %cst_37 = arith.constant dense<0.000000e+00> : vector<8xf32>
    %101 = vector.multi_reduction <add>, %98, %cst_37 [1] : vector<8x128xf32> to vector<8xf32>
    %102 = vector.shape_cast %101 : vector<8xf32> to vector<8x1xf32>
    %cst_38 = arith.constant 1.280000e+02 : f32
    %103 = vector.broadcast %cst_38 : f32 to vector<8x1xf32>
    %104 = arith.divf %102, %103 : vector<8x1xf32>
    %105 = vector.broadcast %104 : vector<8x1xf32> to vector<8x128xf32>
    %106 = arith.subf %98, %105 : vector<8x128xf32>
    %107 = arith.mulf %106, %106 : vector<8x128xf32>
    %cst_39 = arith.constant dense<0.000000e+00> : vector<8xf32>
    %108 = vector.multi_reduction <add>, %107, %cst_39 [1] : vector<8x128xf32> to vector<8xf32>
    %109 = vector.shape_cast %108 : vector<8xf32> to vector<8x1xf32>
    %cst_40 = arith.constant 1.280000e+02 : f32
    %110 = vector.broadcast %cst_40 : f32 to vector<8x1xf32>
    %111 = arith.divf %109, %110 : vector<8x1xf32>
    %cst_41 = arith.constant 9.99999974E-6 : f32
    %112 = vector.broadcast %cst_41 : f32 to vector<8x1xf32>
    %113 = arith.addf %111, %112 : vector<8x1xf32>
    %114 = math.rsqrt %113 : vector<8x1xf32>
    %115 = vector.broadcast %114 : vector<8x1xf32> to vector<8x128xf32>
    %116 = arith.mulf %106, %115 : vector<8x128xf32>
    %117 = vector.broadcast %99 : vector<1x128xf32> to vector<8x128xf32>
    %118 = arith.mulf %116, %117 : vector<8x128xf32>
    %119 = vector.broadcast %100 : vector<1x128xf32> to vector<8x128xf32>
    %120 = arith.addf %118, %119 : vector<8x128xf32>
    %121 = arith.truncf %120 : vector<8x128xf32> to vector<8x128xbf16>
    %c0_42 = arith.constant 0 : index
    %c0_43 = arith.constant 0 : index
    %122 = vector.load %arg9[%c0_42, %c0_43] : memref<128x512xbf16, #tpu.memory_space<vmem>>, vector<128x512xbf16>
    %cst_44 = arith.constant dense<0.000000e+00> : vector<8x512xf32>
    %123 = tpu.matmul %121, %122, %cst_44 {dimension_numbers = #tpu.dot_dimension_numbers<[1], [0], [0], [1], [0, 0, 1, 1], [], []>} : vector<8x128xbf16>, vector<128x512xbf16>, vector<8x512xf32> -> vector<8x512xf32>
    %c0_45 = arith.constant 0 : index
    %c0_46 = arith.constant 0 : index
    %124 = vector.load %arg10[%c0_45, %c0_46] : memref<1x512xf32, #tpu.memory_space<vmem>>, vector<1x512xf32>
    %125 = vector.broadcast %124 : vector<1x512xf32> to vector<8x512xf32>
    %126 = arith.addf %123, %125 : vector<8x512xf32>
    %cst_47 = arith.constant 5.000000e-01 : f32
    %127 = vector.broadcast %cst_47 : f32 to vector<8x512xf32>
    %128 = arith.mulf %127, %126 : vector<8x512xf32>
    %cst_48 = arith.constant 4.471500e-02 : f32
    %129 = vector.broadcast %cst_48 : f32 to vector<8x512xf32>
    %130 = arith.mulf %129, %126 : vector<8x512xf32>
    %131 = arith.mulf %130, %126 : vector<8x512xf32>
    %132 = arith.mulf %131, %126 : vector<8x512xf32>
    %133 = arith.addf %126, %132 : vector<8x512xf32>
    %cst_49 = arith.constant 0.797884583 : f32
    %134 = vector.broadcast %cst_49 : f32 to vector<8x512xf32>
    %135 = arith.mulf %134, %133 : vector<8x512xf32>
    %136 = math.tanh %135 : vector<8x512xf32>
    %cst_50 = arith.constant 1.000000e+00 : f32
    %137 = vector.broadcast %cst_50 : f32 to vector<8x512xf32>
    %138 = arith.addf %137, %136 : vector<8x512xf32>
    %139 = arith.mulf %128, %138 : vector<8x512xf32>
    %140 = arith.truncf %139 : vector<8x512xf32> to vector<8x512xbf16>
    %c0_51 = arith.constant 0 : index
    %c0_52 = arith.constant 0 : index
    %141 = vector.load %arg11[%c0_51, %c0_52] : memref<512x128xbf16, #tpu.memory_space<vmem>>, vector<512x128xbf16>
    %cst_53 = arith.constant dense<0.000000e+00> : vector<8x128xf32>
    %142 = tpu.matmul %140, %141, %cst_53 {dimension_numbers = #tpu.dot_dimension_numbers<[1], [0], [0], [1], [0, 0, 1, 1], [], []>} : vector<8x512xbf16>, vector<512x128xbf16>, vector<8x128xf32> -> vector<8x128xf32>
    %c0_54 = arith.constant 0 : index
    %c0_55 = arith.constant 0 : index
    %143 = vector.load %arg12[%c0_54, %c0_55] : memref<1x128xf32, #tpu.memory_space<vmem>>, vector<1x128xf32>
    %144 = vector.broadcast %143 : vector<1x128xf32> to vector<8x128xf32>
    %145 = arith.addf %142, %144 : vector<8x128xf32>
    %146 = arith.addf %120, %145 : vector<8x128xf32>
    %c0_56 = arith.constant 0 : index
    %c0_57 = arith.constant 0 : index
    %147 = vector.load %arg13[%c0_56, %c0_57] : memref<1x128xf32, #tpu.memory_space<vmem>>, vector<1x128xf32>
    %c0_58 = arith.constant 0 : index
    %c0_59 = arith.constant 0 : index
    %148 = vector.load %arg14[%c0_58, %c0_59] : memref<1x128xf32, #tpu.memory_space<vmem>>, vector<1x128xf32>
    %cst_60 = arith.constant dense<0.000000e+00> : vector<8xf32>
    %149 = vector.multi_reduction <add>, %146, %cst_60 [1] : vector<8x128xf32> to vector<8xf32>
    %150 = vector.shape_cast %149 : vector<8xf32> to vector<8x1xf32>
    %cst_61 = arith.constant 1.280000e+02 : f32
    %151 = vector.broadcast %cst_61 : f32 to vector<8x1xf32>
    %152 = arith.divf %150, %151 : vector<8x1xf32>
    %153 = vector.broadcast %152 : vector<8x1xf32> to vector<8x128xf32>
    %154 = arith.subf %146, %153 : vector<8x128xf32>
    %155 = arith.mulf %154, %154 : vector<8x128xf32>
    %cst_62 = arith.constant dense<0.000000e+00> : vector<8xf32>
    %156 = vector.multi_reduction <add>, %155, %cst_62 [1] : vector<8x128xf32> to vector<8xf32>
    %157 = vector.shape_cast %156 : vector<8xf32> to vector<8x1xf32>
    %cst_63 = arith.constant 1.280000e+02 : f32
    %158 = vector.broadcast %cst_63 : f32 to vector<8x1xf32>
    %159 = arith.divf %157, %158 : vector<8x1xf32>
    %cst_64 = arith.constant 9.99999974E-6 : f32
    %160 = vector.broadcast %cst_64 : f32 to vector<8x1xf32>
    %161 = arith.addf %159, %160 : vector<8x1xf32>
    %162 = math.rsqrt %161 : vector<8x1xf32>
    %163 = vector.broadcast %162 : vector<8x1xf32> to vector<8x128xf32>
    %164 = arith.mulf %154, %163 : vector<8x128xf32>
    %165 = vector.broadcast %147 : vector<1x128xf32> to vector<8x128xf32>
    %166 = arith.mulf %164, %165 : vector<8x128xf32>
    %167 = vector.broadcast %148 : vector<1x128xf32> to vector<8x128xf32>
    %168 = arith.addf %166, %167 : vector<8x128xf32>
    %c0_65 = arith.constant 0 : index
    %c0_66 = arith.constant 0 : index
    %169 = vector.load %arg15[%c0_65, %c0_66] : memref<8x128xf32, #tpu.memory_space<vmem>>, vector<8x128xf32>
    tpu.vector_store %arg15[%c0_65, %c0_66], %168 {strides = array<i32>} : memref<8x128xf32, #tpu.memory_space<vmem>>, vector<8x128xf32>,
    return
  }
  func.func @transform_0(%arg0: i32) -> (i32, i32) {
    %c0_i32 = arith.constant 0 : i32
    %c0_i32_0 = arith.constant 0 : i32
    return %arg0, %c0_i32 : i32, i32
  }
  func.func @transform_1(%arg0: i32) -> (i32, i32, i32) {
    %c0_i32 = arith.constant 0 : i32
    %c0_i32_0 = arith.constant 0 : i32
    %c0_i32_1 = arith.constant 0 : i32
    return %arg0, %c0_i32, %c0_i32_0 : i32, i32, i32
  }
  func.func @transform_2(%arg0: i32) -> (i32, i32) {
    %c0_i32 = arith.constant 0 : i32
    %c0_i32_0 = arith.constant 0 : i32
    %c0_i32_1 = arith.constant 0 : i32
    return %c0_i32, %c0_i32_0 : i32, i32
  }
  func.func @transform_3(%arg0: i32) -> (i32, i32) {
    %c0_i32 = arith.constant 0 : i32
    %c0_i32_0 = arith.constant 0 : i32
    %c0_i32_1 = arith.constant 0 : i32
    return %c0_i32, %c0_i32_0 : i32, i32
  }
  func.func @transform_4(%arg0: i32) -> (i32, i32) {
    %c0_i32 = arith.constant 0 : i32
    %c0_i32_0 = arith.constant 0 : i32
    %c0_i32_1 = arith.constant 0 : i32
    return %c0_i32, %c0_i32_0 : i32, i32
  }
  func.func @transform_5(%arg0: i32) -> (i32, i32) {
    %c0_i32 = arith.constant 0 : i32
    %c0_i32_0 = arith.constant 0 : i32
    %c0_i32_1 = arith.constant 0 : i32
    return %c0_i32, %c0_i32_0 : i32, i32
  }
  func.func @transform_6(%arg0: i32) -> (i32, i32) {
    %c0_i32 = arith.constant 0 : i32
    %c0_i32_0 = arith.constant 0 : i32
    %c0_i32_1 = arith.constant 0 : i32
    return %c0_i32, %c0_i32_0 : i32, i32
  }
  func.func @transform_7(%arg0: i32) -> (i32, i32) {
    %c0_i32 = arith.constant 0 : i32
    %c0_i32_0 = arith.constant 0 : i32
    %c0_i32_1 = arith.constant 0 : i32
    return %c0_i32, %c0_i32_0 : i32, i32
  }
  func.func @transform_8(%arg0: i32) -> (i32, i32) {
    %c0_i32 = arith.constant 0 : i32
    %c0_i32_0 = arith.constant 0 : i32
    %c0_i32_1 = arith.constant 0 : i32
    return %c0_i32, %c0_i32_0 : i32, i32
  }
  func.func @transform_9(%arg0: i32) -> (i32, i32) {
    %c0_i32 = arith.constant 0 : i32
    %c0_i32_0 = arith.constant 0 : i32
    %c0_i32_1 = arith.constant 0 : i32
    return %c0_i32, %c0_i32_0 : i32, i32
  }
  func.func @transform_10(%arg0: i32) -> (i32, i32) {
    %c0_i32 = arith.constant 0 : i32
    %c0_i32_0 = arith.constant 0 : i32
    %c0_i32_1 = arith.constant 0 : i32
    return %c0_i32, %c0_i32_0 : i32, i32
  }
  func.func @transform_11(%arg0: i32) -> (i32, i32) {
    %c0_i32 = arith.constant 0 : i32
    %c0_i32_0 = arith.constant 0 : i32
    %c0_i32_1 = arith.constant 0 : i32
    return %c0_i32, %c0_i32_0 : i32, i32
  }
  func.func @transform_12(%arg0: i32) -> (i32, i32) {
    %c0_i32 = arith.constant 0 : i32
    %c0_i32_0 = arith.constant 0 : i32
    %c0_i32_1 = arith.constant 0 : i32
    return %c0_i32, %c0_i32_0 : i32, i32
  }
  func.func @transform_13(%arg0: i32) -> (i32, i32) {
    %c0_i32 = arith.constant 0 : i32
    %c0_i32_0 = arith.constant 0 : i32
    %c0_i32_1 = arith.constant 0 : i32
    return %c0_i32, %c0_i32_0 : i32, i32
  }
  func.func @transform_14(%arg0: i32) -> (i32, i32) {
    %c0_i32 = arith.constant 0 : i32
    %c0_i32_0 = arith.constant 0 : i32
    return %arg0, %c0_i32 : i32, i32
  }
}

module attributes {stable_mosaic.version = 11 : i64} {
  func.func @encoder_layer_kernel(%arg0: i32, %arg1: memref<8x128xf32, #tpu.memory_space<vmem>>, %arg2: memref<1x1x8xf32, #tpu.memory_space<vmem>>, %arg3: memref<128x384xbf16, #tpu.memory_space<vmem>>, %arg4: memref<1x384xf32, #tpu.memory_space<vmem>>, %arg5: memref<128x128xbf16, #tpu.memory_space<vmem>>, %arg6: memref<1x128xf32, #tpu.memory_space<vmem>>, %arg7: memref<1x128xf32, #tpu.memory_space<vmem>>, %arg8: memref<1x128xf32, #tpu.memory_space<vmem>>, %arg9: memref<128x512xbf16, #tpu.memory_space<vmem>>, %arg10: memref<1x512xf32, #tpu.memory_space<vmem>>, %arg11: memref<512x128xbf16, #tpu.memory_space<vmem>>, %arg12: memref<1x128xf32, #tpu.memory_space<vmem>>, %arg13: memref<1x128xf32, #tpu.memory_space<vmem>>, %arg14: memref<1x128xf32, #tpu.memory_space<vmem>>, %arg15: memref<8x128xf32, #tpu.memory_space<vmem>>) attributes {dimension_semantics = [#tpu.dimension_semantics<parallel>], iteration_bounds = array<i64: 2>, scalar_prefetch = 0 : i64, scratch_operands = 0 : i64, tpu.core_type = #tpu.core_type<tc>, window_params = [{transform_indices = @transform_0, window_bounds = array<i64: 8, 128>}, {transform_indices = @transform_1, window_bounds = array<i64: 1, 1, 8>}, {pipeline_mode = #tpu.pipeline_mode<synchronous>, transform_indices = @transform_2, window_bounds = array<i64: 128, 384>}, {pipeline_mode = #tpu.pipeline_mode<synchronous>, transform_indices = @transform_3, window_bounds = array<i64: 1, 384>}, {pipeline_mode = #tpu.pipeline_mode<synchronous>, transform_indices = @transform_4, window_bounds = array<i64: 128, 128>}, {pipeline_mode = #tpu.pipeline_mode<synchronous>, transform_indices = @transform_5, window_bounds = array<i64: 1, 128>}, {pipeline_mode = #tpu.pipeline_mode<synchronous>, transform_indices = @transform_6, window_bounds = array<i64: 1, 128>}, {pipeline_mode = #tpu.pipeline_mode<synchronous>, transform_indices = @transform_7, window_bounds = array<i64: 1, 128>}, {pipeline_mode = #tpu.pipeline_mode<synchronous>, transform_indices = @transform_8, window_bounds = array<i64: 128, 512>}, {pipeline_mode = #tpu.pipeline_mode<synchronous>, transform_indices = @transform_9, window_bounds = array<i64: 1, 512>}, {pipeline_mode = #tpu.pipeline_mode<synchronous>, transform_indices = @transform_10, window_bounds = array<i64: 512, 128>}, {pipeline_mode = #tpu.pipeline_mode<synchronous>, transform_indices = @transform_11, window_bounds = array<i64: 1, 128>}, {pipeline_mode = #tpu.pipeline_mode<synchronous>, transform_indices = @transform_12, window_bounds = array<i64: 1, 128>}, {pipeline_mode = #tpu.pipeline_mode<synchronous>, transform_indices = @transform_13, window_bounds = array<i64: 1, 128>}, {transform_indices = @transform_14, window_bounds = array<i64: 8, 128>}]} {
    %c0 = arith.constant 0 : index
    %c0_0 = arith.constant 0 : index
    %0 = vector.load %arg1[%c0, %c0_0] : memref<8x128xf32, #tpu.memory_space<vmem>>, vector<8x128xf32>
    %1 = arith.truncf %0 : vector<8x128xf32> to vector<8x128xbf16>
    %c0_1 = arith.constant 0 : index
    %c0_2 = arith.constant 0 : index
    %2 = vector.load %arg3[%c0_1, %c0_2] : memref<128x384xbf16, #tpu.memory_space<vmem>>, vector<128x384xbf16>
    %cst = arith.constant dense<0.000000e+00> : vector<8x384xf32>
    %3 = tpu.matmul %1, %2, %cst {dimension_numbers = #tpu.dot_dimension_numbers<[1], [0], [0], [1], [0, 0, 1, 1], [], []>} : vector<8x128xbf16>, vector<128x384xbf16>, vector<8x384xf32> -> vector<8x384xf32>
    %c0_3 = arith.constant 0 : index
    %c0_4 = arith.constant 0 : index
    %4 = vector.load %arg4[%c0_3, %c0_4] : memref<1x384xf32, #tpu.memory_space<vmem>>, vector<1x384xf32>
    %5 = vector.broadcast %4 : vector<1x384xf32> to vector<8x384xf32>
    %6 = arith.addf %3, %5 : vector<8x384xf32>
    %7 = vector.extract_strided_slice %6 {offsets = [0, 0], sizes = [8, 128], strides = [1, 1]} : vector<8x384xf32> to vector<8x128xf32>
    %8 = arith.truncf %7 : vector<8x128xf32> to vector<8x128xbf16>
    %9 = vector.extract_strided_slice %6 {offsets = [0, 128], sizes = [8, 128], strides = [1, 1]} : vector<8x384xf32> to vector<8x128xf32>
    %10 = arith.truncf %9 : vector<8x128xf32> to vector<8x128xbf16>
    %11 = vector.extract_strided_slice %6 {offsets = [0, 256], sizes = [8, 128], strides = [1, 1]} : vector<8x384xf32> to vector<8x128xf32>
    %12 = arith.truncf %11 : vector<8x128xf32> to vector<8x128xbf16>
    %c0_5 = arith.constant 0 : index
    %c0_6 = arith.constant 0 : index
    %c0_7 = arith.constant 0 : index
    %13 = vector.load %arg2[%c0_5, %c0_6, %c0_7] : memref<1x1x8xf32, #tpu.memory_space<vmem>>, vector<1x1x8xf32>
    %14 = vector.shape_cast %13 : vector<1x1x8xf32> to vector<1x8xf32>
    %15 = vector.extract_strided_slice %8 {offsets = [0, 0], sizes = [8, 32], strides = [1, 1]} : vector<8x128xbf16> to vector<8x32xbf16>
    %16 = vector.extract_strided_slice %10 {offsets = [0, 0], sizes = [8, 32], strides = [1, 1]} : vector<8x128xbf16> to vector<8x32xbf16>
    %17 = vector.extract_strided_slice %12 {offsets = [0, 0], sizes = [8, 32], strides = [1, 1]} : vector<8x128xbf16> to vector<8x32xbf16>
    %cst_8 = arith.constant dense<0.000000e+00> : vector<8x8xf32>
    %18 = tpu.matmul %15, %16, %cst_8 {dimension_numbers = #tpu.dot_dimension_numbers<[1], [1], [0], [0], [0, 0, 1, 0], [], []>} : vector<8x32xbf16>, vector<8x32xbf16>, vector<8x8xf32> -> vector<8x8xf32>
    %cst_9 = arith.constant 0.176776692 : f32
    %19 = vector.broadcast %cst_9 : f32 to vector<8x8xf32>
    %20 = arith.mulf %18, %19 : vector<8x8xf32>
    %21 = vector.broadcast %14 : vector<1x8xf32> to vector<8x8xf32>
    %22 = arith.addf %20, %21 : vector<8x8xf32>
    %cst_10 = arith.constant dense<0xFF800000> : vector<8xf32>
    %23 = vector.multi_reduction <maximumf>, %22, %cst_10 [1] : vector<8x8xf32> to vector<8xf32>
    %24 = vector.shape_cast %23 : vector<8xf32> to vector<8x1xf32>
    %25 = vector.broadcast %24 : vector<8x1xf32> to vector<8x8xf32>
    %26 = arith.subf %22, %25 : vector<8x8xf32>
    %27 = math.exp %26 : vector<8x8xf32>
    %cst_11 = arith.constant dense<0.000000e+00> : vector<8xf32>
    %28 = vector.multi_reduction <add>, %27, %cst_11 [1] : vector<8x8xf32> to vector<8xf32>
    %29 = vector.shape_cast %28 : vector<8xf32> to vector<8x1xf32>
    %30 = vector.broadcast %29 : vector<8x1xf32> to vector<8x8xf32>
    %31 = arith.divf %27, %30 : vector<8x8xf32>
    %32 = arith.truncf %31 : vector<8x8xf32> to vector<8x8xbf16>
    %cst_12 = arith.constant dense<0.000000e+00> : vector<8x32xf32>
    %33 = tpu.matmul %32, %17, %cst_12 {dimension_numbers = #tpu.dot_dimension_numbers<[1], [0], [0], [1], [0, 0, 1, 1], [], []>} : vector<8x8xbf16>, vector<8x32xbf16>, vector<8x32xf32> -> vector<8x32xf32>
    %34 = vector.extract_strided_slice %8 {offsets = [0, 32], sizes = [8, 32], strides = [1, 1]} : vector<8x128xbf16> to vector<8x32xbf16>
    %35 = vector.extract_strided_slice %10 {offsets = [0, 32], sizes = [8, 32], strides = [1, 1]} : vector<8x128xbf16> to vector<8x32xbf16>
    %36 = vector.extract_strided_slice %12 {offsets = [0, 32], sizes = [8, 32], strides = [1, 1]} : vector<8x128xbf16> to vector<8x32xbf16>
    %cst_13 = arith.constant dense<0.000000e+00> : vector<8x8xf32>
    %37 = tpu.matmul %34, %35, %cst_13 {dimension_numbers = #tpu.dot_dimension_numbers<[1], [1], [0], [0], [0, 0, 1, 0], [], []>} : vector<8x32xbf16>, vector<8x32xbf16>, vector<8x8xf32> -> vector<8x8xf32>
    %cst_14 = arith.constant 0.176776692 : f32
    %38 = vector.broadcast %cst_14 : f32 to vector<8x8xf32>
    %39 = arith.mulf %37, %38 : vector<8x8xf32>
    %40 = vector.broadcast %14 : vector<1x8xf32> to vector<8x8xf32>
    %41 = arith.addf %39, %40 : vector<8x8xf32>
    %cst_15 = arith.constant dense<0xFF800000> : vector<8xf32>
    %42 = vector.multi_reduction <maximumf>, %41, %cst_15 [1] : vector<8x8xf32> to vector<8xf32>
    %43 = vector.shape_cast %42 : vector<8xf32> to vector<8x1xf32>
    %44 = vector.broadcast %43 : vector<8x1xf32> to vector<8x8xf32>
    %45 = arith.subf %41, %44 : vector<8x8xf32>
    %46 = math.exp %45 : vector<8x8xf32>
    %cst_16 = arith.constant dense<0.000000e+00> : vector<8xf32>
    %47 = vector.multi_reduction <add>, %46, %cst_16 [1] : vector<8x8xf32> to vector<8xf32>
    %48 = vector.shape_cast %47 : vector<8xf32> to vector<8x1xf32>
    %49 = vector.broadcast %48 : vector<8x1xf32> to vector<8x8xf32>
    %50 = arith.divf %46, %49 : vector<8x8xf32>
    %51 = arith.truncf %50 : vector<8x8xf32> to vector<8x8xbf16>
    %cst_17 = arith.constant dense<0.000000e+00> : vector<8x32xf32>
    %52 = tpu.matmul %51, %36, %cst_17 {dimension_numbers = #tpu.dot_dimension_numbers<[1], [0], [0], [1], [0, 0, 1, 1], [], []>} : vector<8x8xbf16>, vector<8x32xbf16>, vector<8x32xf32> -> vector<8x32xf32>
    %53 = vector.extract_strided_slice %8 {offsets = [0, 64], sizes = [8, 32], strides = [1, 1]} : vector<8x128xbf16> to vector<8x32xbf16>
    %54 = vector.extract_strided_slice %10 {offsets = [0, 64], sizes = [8, 32], strides = [1, 1]} : vector<8x128xbf16> to vector<8x32xbf16>
    %55 = vector.extract_strided_slice %12 {offsets = [0, 64], sizes = [8, 32], strides = [1, 1]} : vector<8x128xbf16> to vector<8x32xbf16>
    %cst_18 = arith.constant dense<0.000000e+00> : vector<8x8xf32>
    %56 = tpu.matmul %53, %54, %cst_18 {dimension_numbers = #tpu.dot_dimension_numbers<[1], [1], [0], [0], [0, 0, 1, 0], [], []>} : vector<8x32xbf16>, vector<8x32xbf16>, vector<8x8xf32> -> vector<8x8xf32>
    %cst_19 = arith.constant 0.176776692 : f32
    %57 = vector.broadcast %cst_19 : f32 to vector<8x8xf32>
    %58 = arith.mulf %56, %57 : vector<8x8xf32>
    %59 = vector.broadcast %14 : vector<1x8xf32> to vector<8x8xf32>
    %60 = arith.addf %58, %59 : vector<8x8xf32>
    %cst_20 = arith.constant dense<0xFF800000> : vector<8xf32>
    %61 = vector.multi_reduction <maximumf>, %60, %cst_20 [1] : vector<8x8xf32> to vector<8xf32>
    %62 = vector.shape_cast %61 : vector<8xf32> to vector<8x1xf32>
    %63 = vector.broadcast %62 : vector<8x1xf32> to vector<8x8xf32>
    %64 = arith.subf %60, %63 : vector<8x8xf32>
    %65 = math.exp %64 : vector<8x8xf32>
    %cst_21 = arith.constant dense<0.000000e+00> : vector<8xf32>
    %66 = vector.multi_reduction <add>, %65, %cst_21 [1] : vector<8x8xf32> to vector<8xf32>
    %67 = vector.shape_cast %66 : vector<8xf32> to vector<8x1xf32>
    %68 = vector.broadcast %67 : vector<8x1xf32> to vector<8x8xf32>
    %69 = arith.divf %65, %68 : vector<8x8xf32>
    %70 = arith.truncf %69 : vector<8x8xf32> to vector<8x8xbf16>
    %cst_22 = arith.constant dense<0.000000e+00> : vector<8x32xf32>
    %71 = tpu.matmul %70, %55, %cst_22 {dimension_numbers = #tpu.dot_dimension_numbers<[1], [0], [0], [1], [0, 0, 1, 1], [], []>} : vector<8x8xbf16>, vector<8x32xbf16>, vector<8x32xf32> -> vector<8x32xf32>
    %72 = vector.extract_strided_slice %8 {offsets = [0, 96], sizes = [8, 32], strides = [1, 1]} : vector<8x128xbf16> to vector<8x32xbf16>
    %73 = vector.extract_strided_slice %10 {offsets = [0, 96], sizes = [8, 32], strides = [1, 1]} : vector<8x128xbf16> to vector<8x32xbf16>
    %74 = vector.extract_strided_slice %12 {offsets = [0, 96], sizes = [8, 32], strides = [1, 1]} : vector<8x128xbf16> to vector<8x32xbf16>
    %cst_23 = arith.constant dense<0.000000e+00> : vector<8x8xf32>
    %75 = tpu.matmul %72, %73, %cst_23 {dimension_numbers = #tpu.dot_dimension_numbers<[1], [1], [0], [0], [0, 0, 1, 0], [], []>} : vector<8x32xbf16>, vector<8x32xbf16>, vector<8x8xf32> -> vector<8x8xf32>
    %cst_24 = arith.constant 0.176776692 : f32
    %76 = vector.broadcast %cst_24 : f32 to vector<8x8xf32>
    %77 = arith.mulf %75, %76 : vector<8x8xf32>
    %78 = vector.broadcast %14 : vector<1x8xf32> to vector<8x8xf32>
    %79 = arith.addf %77, %78 : vector<8x8xf32>
    %cst_25 = arith.constant dense<0xFF800000> : vector<8xf32>
    %80 = vector.multi_reduction <maximumf>, %79, %cst_25 [1] : vector<8x8xf32> to vector<8xf32>
    %81 = vector.shape_cast %80 : vector<8xf32> to vector<8x1xf32>
    %82 = vector.broadcast %81 : vector<8x1xf32> to vector<8x8xf32>
    %83 = arith.subf %79, %82 : vector<8x8xf32>
    %84 = math.exp %83 : vector<8x8xf32>
    %cst_26 = arith.constant dense<0.000000e+00> : vector<8xf32>
    %85 = vector.multi_reduction <add>, %84, %cst_26 [1] : vector<8x8xf32> to vector<8xf32>
    %86 = vector.shape_cast %85 : vector<8xf32> to vector<8x1xf32>
    %87 = vector.broadcast %86 : vector<8x1xf32> to vector<8x8xf32>
    %88 = arith.divf %84, %87 : vector<8x8xf32>
    %89 = arith.truncf %88 : vector<8x8xf32> to vector<8x8xbf16>
    %cst_27 = arith.constant dense<0.000000e+00> : vector<8x32xf32>
    %90 = tpu.matmul %89, %74, %cst_27 {dimension_numbers = #tpu.dot_dimension_numbers<[1], [0], [0], [1], [0, 0, 1, 1], [], []>} : vector<8x8xbf16>, vector<8x32xbf16>, vector<8x32xf32> -> vector<8x32xf32>
    %91 = tpu.concatenate %33, %52, %71, %90 in 1 : vector<8x32xf32>, vector<8x32xf32>, vector<8x32xf32>, vector<8x32xf32> -> vector<8x128xf32>
    %92 = arith.truncf %91 : vector<8x128xf32> to vector<8x128xbf16>
    %c0_28 = arith.constant 0 : index
    %c0_29 = arith.constant 0 : index
    %93 = vector.load %arg5[%c0_28, %c0_29] : memref<128x128xbf16, #tpu.memory_space<vmem>>, vector<128x128xbf16>
    %cst_30 = arith.constant dense<0.000000e+00> : vector<8x128xf32>
    %94 = tpu.matmul %92, %93, %cst_30 {dimension_numbers = #tpu.dot_dimension_numbers<[1], [0], [0], [1], [0, 0, 1, 1], [], []>} : vector<8x128xbf16>, vector<128x128xbf16>, vector<8x128xf32> -> vector<8x128xf32>
    %c0_31 = arith.constant 0 : index
    %c0_32 = arith.constant 0 : index
    %95 = vector.load %arg6[%c0_31, %c0_32] : memref<1x128xf32, #tpu.memory_space<vmem>>, vector<1x128xf32>
    %96 = vector.broadcast %95 : vector<1x128xf32> to vector<8x128xf32>
    %97 = arith.addf %94, %96 : vector<8x128xf32>
    %98 = arith.addf %0, %97 : vector<8x128xf32>
    %c0_33 = arith.constant 0 : index
    %c0_34 = arith.constant 0 : index
    %99 = vector.load %arg7[%c0_33, %c0_34] : memref<1x128xf32, #tpu.memory_space<vmem>>, vector<1x128xf32>
    %c0_35 = arith.constant 0 : index
    %c0_36 = arith.constant 0 : index
    %100 = vector.load %arg8[%c0_35, %c0_36] : memref<1x128xf32, #tpu.memory_space<vmem>>, vector<1x128xf32>
    %cst_37 = arith.constant dense<0.000000e+00> : vector<8xf32>
    %101 = vector.multi_reduction <add>, %98, %cst_37 [1] : vector<8x128xf32> to vector<8xf32>
    %102 = vector.shape_cast %101 : vector<8xf32> to vector<8x1xf32>
    %cst_38 = arith.constant 1.280000e+02 : f32
    %103 = vector.broadcast %cst_38 : f32 to vector<8x1xf32>
    %104 = arith.divf %102, %103 : vector<8x1xf32>
    %105 = vector.broadcast %104 : vector<8x1xf32> to vector<8x128xf32>
    %106 = arith.subf %98, %105 : vector<8x128xf32>
    %107 = arith.mulf %106, %106 : vector<8x128xf32>
    %cst_39 = arith.constant dense<0.000000e+00> : vector<8xf32>
    %108 = vector.multi_reduction <add>, %107, %cst_39 [1] : vector<8x128xf32> to vector<8xf32>
    %109 = vector.shape_cast %108 : vector<8xf32> to vector<8x1xf32>
    %cst_40 = arith.constant 1.280000e+02 : f32
    %110 = vector.broadcast %cst_40 : f32 to vector<8x1xf32>
    %111 = arith.divf %109, %110 : vector<8x1xf32>
    %cst_41 = arith.constant 9.99999974E-6 : f32
    %112 = vector.broadcast %cst_41 : f32 to vector<8x1xf32>
    %113 = arith.addf %111, %112 : vector<8x1xf32>
    %114 = math.rsqrt %113 : vector<8x1xf32>
    %115 = vector.broadcast %114 : vector<8x1xf32> to vector<8x128xf32>
    %116 = arith.mulf %106, %115 : vector<8x128xf32>
    %117 = vector.broadcast %99 : vector<1x128xf32> to vector<8x128xf32>
    %118 = arith.mulf %116, %117 : vector<8x128xf32>
    %119 = vector.broadcast %100 : vector<1x128xf32> to vector<8x128xf32>
    %120 = arith.addf %118, %119 : vector<8x128xf32>
    %121 = arith.truncf %120 : vector<8x128xf32> to vector<8x128xbf16>
    %c0_42 = arith.constant 0 : index
    %c0_43 = arith.constant 0 : index
    %122 = vector.load %arg9[%c0_42, %c0_43] : memref<128x512xbf16, #tpu.memory_space<vmem>>, vector<128x512xbf16>
    %cst_44 = arith.constant dense<0.000000e+00> : vector<8x512xf32>
    %123 = tpu.matmul %121, %122, %cst_44 {dimension_numbers = #tpu.dot_dimension_numbers<[1], [0], [0], [1], [0, 0, 1, 1], [], []>} : vector<8x128xbf16>, vector<128x512xbf16>, vector<8x512xf32> -> vector<8x512xf32>
    %c0_45 = arith.constant 0 : index
    %c0_46 = arith.constant 0 : index
    %124 = vector.load %arg10[%c0_45, %c0_46] : memref<1x512xf32, #tpu.memory_space<vmem>>, vector<1x512xf32>
    %125 = vector.broadcast %124 : vector<1x512xf32> to vector<8x512xf32>
    %126 = arith.addf %123, %125 : vector<8x512xf32>
    %cst_47 = arith.constant 5.000000e-01 : f32
    %127 = vector.broadcast %cst_47 : f32 to vector<8x512xf32>
    %128 = arith.mulf %127, %126 : vector<8x512xf32>
    %cst_48 = arith.constant 4.471500e-02 : f32
    %129 = vector.broadcast %cst_48 : f32 to vector<8x512xf32>
    %130 = arith.mulf %129, %126 : vector<8x512xf32>
    %131 = arith.mulf %130, %126 : vector<8x512xf32>
    %132 = arith.mulf %131, %126 : vector<8x512xf32>
    %133 = arith.addf %126, %132 : vector<8x512xf32>
    %cst_49 = arith.constant 0.797884583 : f32
    %134 = vector.broadcast %cst_49 : f32 to vector<8x512xf32>
    %135 = arith.mulf %134, %133 : vector<8x512xf32>
    %136 = math.tanh %135 : vector<8x512xf32>
    %cst_50 = arith.constant 1.000000e+00 : f32
    %137 = vector.broadcast %cst_50 : f32 to vector<8x512xf32>
    %138 = arith.addf %137, %136 : vector<8x512xf32>
    %139 = arith.mulf %128, %138 : vector<8x512xf32>
    %140 = arith.truncf %139 : vector<8x512xf32> to vector<8x512xbf16>
    %c0_51 = arith.constant 0 : index
    %c0_52 = arith.constant 0 : index
    %141 = vector.load %arg11[%c0_51, %c0_52] : memref<512x128xbf16, #tpu.memory_space<vmem>>, vector<512x128xbf16>
    %cst_53 = arith.constant dense<0.000000e+00> : vector<8x128xf32>
    %142 = tpu.matmul %140, %141, %cst_53 {dimension_numbers = #tpu.dot_dimension_numbers<[1], [0], [0], [1], [0, 0, 1, 1], [], []>} : vector<8x512xbf16>, vector<512x128xbf16>, vector<8x128xf32> -> vector<8x128xf32>
    %c0_54 = arith.constant 0 : index
    %c0_55 = arith.constant 0 : index
    %143 = vector.load %arg12[%c0_54, %c0_55] : memref<1x128xf32, #tpu.memory_space<vmem>>, vector<1x128xf32>
    %144 = vector.broadcast %143 : vector<1x128xf32> to vector<8x128xf32>
    %145 = arith.addf %142, %144 : vector<8x128xf32>
    %146 = arith.addf %120, %145 : vector<8x128xf32>
    %c0_56 = arith.constant 0 : index
    %c0_57 = arith.constant 0 : index
    %147 = vector.load %arg13[%c0_56, %c0_57] : memref<1x128xf32, #tpu.memory_space<vmem>>, vector<1x128xf32>
    %c0_58 = arith.constant 0 : index
    %c0_59 = arith.constant 0 : index
    %148 = vector.load %arg14[%c0_58, %c0_59] : memref<1x128xf32, #tpu.memory_space<vmem>>, vector<1x128xf32>
    %cst_60 = arith.constant dense<0.000000e+00> : vector<8xf32>
    %149 = vector.multi_reduction <add>, %146, %cst_60 [1] : vector<8x128xf32> to vector<8xf32>
    %150 = vector.shape_cast %149 : vector<8xf32> to vector<8x1xf32>
    %cst_61 = arith.constant 1.280000e+02 : f32
    %151 = vector.broadcast %cst_61 : f32 to vector<8x1xf32>
    %152 = arith.divf %150, %151 : vector<8x1xf32>
    %153 = vector.broadcast %152 : vector<8x1xf32> to vector<8x128xf32>
    %154 = arith.subf %146, %153 : vector<8x128xf32>
    %155 = arith.mulf %154, %154 : vector<8x128xf32>
    %cst_62 = arith.constant dense<0.000000e+00> : vector<8xf32>
    %156 = vector.multi_reduction <add>, %155, %cst_62 [1] : vector<8x128xf32> to vector<8xf32>
    %157 = vector.shape_cast %156 : vector<8xf32> to vector<8x1xf32>
    %cst_63 = arith.constant 1.280000e+02 : f32
    %158 = vector.broadcast %cst_63 : f32 to vector<8x1xf32>
    %159 = arith.divf %157, %158 : vector<8x1xf32>
    %cst_64 = arith.constant 9.99999974E-6 : f32
    %160 = vector.broadcast %cst_64 : f32 to vector<8x1xf32>
    %161 = arith.addf %159, %160 : vector<8x1xf32>
    %162 = math.rsqrt %161 : vector<8x1xf32>
    %163 = vector.broadcast %162 : vector<8x1xf32> to vector<8x128xf32>
    %164 = arith.mulf %154, %163 : vector<8x128xf32>
    %165 = vector.broadcast %147 : vector<1x128xf32> to vector<8x128xf32>
    %166 = arith.mulf %164, %165 : vector<8x128xf32>
    %167 = vector.broadcast %148 : vector<1x128xf32> to vector<8x128xf32>
    %168 = arith.addf %166, %167 : vector<8x128xf32>
    %c0_65 = arith.constant 0 : index
    %c0_66 = arith.constant 0 : index
    %169 = vector.load %arg15[%c0_65, %c0_66] : memref<8x128xf32, #tpu.memory_space<vmem>>, vector<8x128xf32>
    tpu.vector_store %arg15[%c0_65, %c0_66], %168 {strides = array<i32>} : memref<8x128xf32, #tpu.memory_space<vmem>>, vector<8x128xf32>,
    return
  }
  func.func @transform_0(%arg0: i32) -> (i32, i32) {
    %c0_i32 = arith.constant 0 : i32
    %c0_i32_0 = arith.constant 0 : i32
    return %arg0, %c0_i32 : i32, i32
  }
  func.func @transform_1(%arg0: i32) -> (i32, i32, i32) {
    %c0_i32 = arith.constant 0 : i32
    %c0_i32_0 = arith.constant 0 : i32
    %c0_i32_1 = arith.constant 0 : i32
    return %arg0, %c0_i32, %c0_i32_0 : i32, i32, i32
  }
  func.func @transform_2(%arg0: i32) -> (i32, i32) {
    %c0_i32 = arith.constant 0 : i32
    %c0_i32_0 = arith.constant 0 : i32
    %c0_i32_1 = arith.constant 0 : i32
    return %c0_i32, %c0_i32_0 : i32, i32
  }
  func.func @transform_3(%arg0: i32) -> (i32, i32) {
    %c0_i32 = arith.constant 0 : i32
    %c0_i32_0 = arith.constant 0 : i32
    %c0_i32_1 = arith.constant 0 : i32
    return %c0_i32, %c0_i32_0 : i32, i32
  }
  func.func @transform_4(%arg0: i32) -> (i32, i32) {
    %c0_i32 = arith.constant 0 : i32
    %c0_i32_0 = arith.constant 0 : i32
    %c0_i32_1 = arith.constant 0 : i32
    return %c0_i32, %c0_i32_0 : i32, i32
  }
  func.func @transform_5(%arg0: i32) -> (i32, i32) {
    %c0_i32 = arith.constant 0 : i32
    %c0_i32_0 = arith.constant 0 : i32
    %c0_i32_1 = arith.constant 0 : i32
    return %c0_i32, %c0_i32_0 : i32, i32
  }
  func.func @transform_6(%arg0: i32) -> (i32, i32) {
    %c0_i32 = arith.constant 0 : i32
    %c0_i32_0 = arith.constant 0 : i32
    %c0_i32_1 = arith.constant 0 : i32
    return %c0_i32, %c0_i32_0 : i32, i32
  }
  func.func @transform_7(%arg0: i32) -> (i32, i32) {
    %c0_i32 = arith.constant 0 : i32
    %c0_i32_0 = arith.constant 0 : i32
    %c0_i32_1 = arith.constant 0 : i32
    return %c0_i32, %c0_i32_0 : i32, i32
  }
  func.func @transform_8(%arg0: i32) -> (i32, i32) {
    %c0_i32 = arith.constant 0 : i32
    %c0_i32_0 = arith.constant 0 : i32
    %c0_i32_1 = arith.constant 0 : i32
    return %c0_i32, %c0_i32_0 : i32, i32
  }
  func.func @transform_9(%arg0: i32) -> (i32, i32) {
    %c0_i32 = arith.constant 0 : i32
    %c0_i32_0 = arith.constant 0 : i32
    %c0_i32_1 = arith.constant 0 : i32
    return %c0_i32, %c0_i32_0 : i32, i32
  }
  func.func @transform_10(%arg0: i32) -> (i32, i32) {
    %c0_i32 = arith.constant 0 : i32
    %c0_i32_0 = arith.constant 0 : i32
    %c0_i32_1 = arith.constant 0 : i32
    return %c0_i32, %c0_i32_0 : i32, i32
  }
  func.func @transform_11(%arg0: i32) -> (i32, i32) {
    %c0_i32 = arith.constant 0 : i32
    %c0_i32_0 = arith.constant 0 : i32
    %c0_i32_1 = arith.constant 0 : i32
    return %c0_i32, %c0_i32_0 : i32, i32
  }
  func.func @transform_12(%arg0: i32) -> (i32, i32) {
    %c0_i32 = arith.constant 0 : i32
    %c0_i32_0 = arith.constant 0 : i32
    %c0_i32_1 = arith.constant 0 : i32
    return %c0_i32, %c0_i32_0 : i32, i32
  }
  func.func @transform_13(%arg0: i32) -> (i32, i32) {
    %c0_i32 = arith.constant 0 : i32
    %c0_i32_0 = arith.constant 0 : i32
    %c0_i32_1 = arith.constant 0 : i32
    return %c0_i32, %c0_i32_0 : i32, i32
  }
  func.func @transform_14(%arg0: i32) -> (i32, i32) {
    %c0_i32 = arith.constant 0 : i32
    %c0_i32_0 = arith.constant 0 : i32
    return %arg0, %c0_i32 : i32, i32
  }
}

module attributes {stable_mosaic.version = 11 : i64} {
  func.func @tail_kernel(%arg0: memref<16x128xf32, #tpu.memory_space<vmem>>, %arg1: memref<128x128xbf16, #tpu.memory_space<vmem>>, %arg2: memref<1x128xf32, #tpu.memory_space<vmem>>, %arg3: memref<2x1xi32, #tpu.memory_space<vmem>>, %arg4: memref<1x1xf32, #tpu.memory_space<vmem>>, %arg5: memref<2x5xf32, #tpu.memory_space<vmem>>) attributes {dimension_semantics = [], scalar_prefetch = 0 : i64, scratch_operands = 0 : i64, tpu.core_type = #tpu.core_type<tc>} {
    %c0 = arith.constant 0 : index
    %c0_0 = arith.constant 0 : index
    %0 = vector.load %arg0[%c0, %c0_0] : memref<16x128xf32, #tpu.memory_space<vmem>>, vector<1x128xf32>
    %c8 = arith.constant 8 : index
    %c0_1 = arith.constant 0 : index
    %1 = vector.load %arg0[%c8, %c0_1] : memref<16x128xf32, #tpu.memory_space<vmem>>, vector<1x128xf32>
    %2 = tpu.concatenate %0, %1 in 0 : vector<1x128xf32>, vector<1x128xf32> -> vector<2x128xf32>
    %3 = arith.truncf %2 : vector<2x128xf32> to vector<2x128xbf16>
    %c0_2 = arith.constant 0 : index
    %c0_3 = arith.constant 0 : index
    %4 = vector.load %arg1[%c0_2, %c0_3] : memref<128x128xbf16, #tpu.memory_space<vmem>>, vector<128x128xbf16>
    %cst = arith.constant dense<0.000000e+00> : vector<2x128xf32>
    %5 = tpu.matmul %3, %4, %cst {dimension_numbers = #tpu.dot_dimension_numbers<[1], [0], [0], [1], [0, 0, 1, 1], [], []>} : vector<2x128xbf16>, vector<128x128xbf16>, vector<2x128xf32> -> vector<2x128xf32>
    %c0_4 = arith.constant 0 : index
    %c0_5 = arith.constant 0 : index
    %6 = vector.load %arg2[%c0_4, %c0_5] : memref<1x128xf32, #tpu.memory_space<vmem>>, vector<1x128xf32>
    %7 = vector.broadcast %6 : vector<1x128xf32> to vector<2x128xf32>
    %8 = arith.addf %5, %7 : vector<2x128xf32>
    %9 = tpu.iota {dimensions = array<i32: 1>} : vector<2x128xi32>
    %c5_i32 = arith.constant 5 : i32
    %10 = vector.broadcast %c5_i32 : i32 to vector<2x128xi32>
    %11 = arith.cmpi slt, %9, %10 : vector<2x128xi32>
    %cst_6 = arith.constant -1.000000e+30 : f32
    %12 = vector.broadcast %cst_6 : f32 to vector<2x128xf32>
    %13 = arith.select %11, %8, %12 : vector<2x128xi1>, vector<2x128xf32>
    %cst_7 = arith.constant dense<0xFF800000> : vector<2xf32>
    %14 = vector.multi_reduction <maximumf>, %13, %cst_7 [1] : vector<2x128xf32> to vector<2xf32>
    %15 = vector.shape_cast %14 : vector<2xf32> to vector<2x1xf32>
    %16 = vector.broadcast %15 : vector<2x1xf32> to vector<2x128xf32>
    %17 = arith.subf %13, %16 : vector<2x128xf32>
    %18 = math.exp %17 : vector<2x128xf32>
    %cst_8 = arith.constant dense<0.000000e+00> : vector<2xf32>
    %19 = vector.multi_reduction <add>, %18, %cst_8 [1] : vector<2x128xf32> to vector<2xf32>
    %20 = vector.shape_cast %19 : vector<2xf32> to vector<2x1xf32>
    %21 = math.log %20 : vector<2x1xf32>
    %22 = arith.addf %15, %21 : vector<2x1xf32>
    %c0_9 = arith.constant 0 : index
    %c0_10 = arith.constant 0 : index
    %23 = vector.load %arg3[%c0_9, %c0_10] : memref<2x1xi32, #tpu.memory_space<vmem>>, vector<2x1xi32>
    %24 = vector.broadcast %23 : vector<2x1xi32> to vector<2x128xi32>
    %25 = arith.cmpi eq, %9, %24 : vector<2x128xi32>
    %26 = arith.extui %25 : vector<2x128xi1> to vector<2x128xi32>
    %27 = arith.sitofp %26 : vector<2x128xi32> to vector<2x128xf32>
    %28 = arith.mulf %8, %27 : vector<2x128xf32>
    %cst_11 = arith.constant dense<0.000000e+00> : vector<2xf32>
    %29 = vector.multi_reduction <add>, %28, %cst_11 [1] : vector<2x128xf32> to vector<2xf32>
    %30 = vector.shape_cast %29 : vector<2xf32> to vector<2x1xf32>
    %31 = arith.subf %22, %30 : vector<2x1xf32>
    %cst_12 = arith.constant dense<0.000000e+00> : vector<1xf32>
    %32 = vector.multi_reduction <add>, %31, %cst_12 [0] : vector<2x1xf32> to vector<1xf32>
    %33 = vector.shape_cast %32 : vector<1xf32> to vector<1x1xf32>
    %cst_13 = arith.constant 5.000000e-01 : f32
    %34 = vector.broadcast %cst_13 : f32 to vector<1x1xf32>
    %35 = arith.mulf %33, %34 : vector<1x1xf32>
    %c0_14 = arith.constant 0 : index
    %c0_15 = arith.constant 0 : index
    %36 = vector.load %arg4[%c0_14, %c0_15] : memref<1x1xf32, #tpu.memory_space<vmem>>, vector<1x1xf32>
    tpu.vector_store %arg4[%c0_14, %c0_15], %35 {strides = array<i32>} : memref<1x1xf32, #tpu.memory_space<vmem>>, vector<1x1xf32>,
    %37 = vector.extract_strided_slice %8 {offsets = [0, 0], sizes = [2, 5], strides = [1, 1]} : vector<2x128xf32> to vector<2x5xf32>
    %c0_16 = arith.constant 0 : index
    %c0_17 = arith.constant 0 : index
    %38 = vector.load %arg5[%c0_16, %c0_17] : memref<2x5xf32, #tpu.memory_space<vmem>>, vector<2x5xf32>
    tpu.vector_store %arg5[%c0_16, %c0_17], %37 {strides = array<i32>} : memref<2x5xf32, #tpu.memory_space<vmem>>, vector<2x5xf32>,
    return
  }
}

</mosaic_0001>

<bundles_post_ra>
// kernel: seq_classification_forward.4
= control target key start
LH: loop header
LB: loop body
LE: loop exit
PB: predicated region body
PF: predicated region fallthrough
CT: control target
= control target key end

     0   :  { %s146_s0 = inlined_call_operand.vmem [shape: f32[16,128], index: 0, kind: input, shape index: {}]   ;;  %s147_s1 = inlined_call_operand.vmem [shape: f32[16,128], index: 1, kind: input, shape index: {}]   ;;  %s148_s2 = inlined_call_operand.vmem [shape: f32[1,128], index: 2, kind: input, shape index: {}]   ;;  %s149_s3 = inlined_call_operand.vmem [shape: f32[1,128], index: 3, kind: input, shape index: {}]   ;;  %s150_s4 = inlined_call_operand.vmem [shape: f32[1,128], index: 4, kind: input, shape index: {}]   ;;  %s151_s5 = inlined_call_operand.vmem [shape: f32[16,128], index: 5, kind: output, shape index: {}]  }
   0x1   :  { %v20_v0 = vld [vmem:[%s146_s0] sm:$0xff]  ;;  %v21_v4 = vld [vmem:[%s146_s0 + $0x8] sm:$0xff] }
   0x2   :  { %v22_v1 = vld [vmem:[%s147_s1] sm:$0xff]  ;;  %v23_v5 = vld [vmem:[%s147_s1 + $0x8] sm:$0xff] }
   0x3   :  { %v82_v2 = vld [vmem:[%s148_s2] ss:$0 sm:$0xff]  ;;  %v24_v3 = vadd.f32 %v22_v1, %v20_v0  ;;  %v25_v6 = vadd.f32 %v23_v5, %v21_v4 }
   0x4   :  { %v83_v24 = vld [vmem:[%s149_s3] ss:$0 sm:$0xff] }
   0x5   :  { %v33_v7 = vadd.f32 %v82_v2, %v24_v3  ;;  %v34_v8 = vadd.f32 %v82_v2, %v25_v6  ;;  %v84_v26 = vld [vmem:[%s150_s4] ss:$0 sm:$0xff] }
   0x7   :  { %37 = vadd.xlane.f32.xlu0 %v33_v7 }
   0xb   :  { %39 = vadd.xlane.f32.xlu0 %v34_v8 }
  0x90   :  { %v38_v9 = vpop.xlane.xlu0 %37 }
  0x91   :  { %v42_v10 = vmul.f32 0.0078125, %v38_v9 }
  0x93   :  { %v44_v11 = vsub.f32 %v33_v7, %v42_v10 }
  0x94   :  { %v40_v12 = vpop.xlane.xlu0 %39 }
  0x95   :  { %v43_v13 = vmul.f32 0.0078125, %v40_v12  ;;  %v46_v14 = vmul.f32 %v44_v11, %v44_v11 }
  0x97   :  { %v45_v15 = vsub.f32 %v34_v8, %v43_v13  ;;  %48 = vadd.xlane.f32.xlu1 %v46_v14 }
  0x99   :  { %v47_v16 = vmul.f32 %v45_v15, %v45_v15 }
  0x9b   :  { %50 = vadd.xlane.f32.xlu1 %v47_v16 }
 0x120   :  { %v49_v17 = vpop.xlane.xlu1 %48 }
 0x121   :  { %v52_v18 = vmul.f32 0.0078125, %v49_v17 }
 0x123   :  { %v54_v19 = vadd.f32 1e-05, %v52_v18 }
 0x124   :  { %v51_v20 = vpop.xlane.xlu1 %50 }
 0x125   :  { %85 = vrsqrt.f32 %v54_v19  ;;  %v53_v21 = vmul.f32 0.0078125, %v51_v20 }
 0x127   :  { %v55_v22 = vadd.f32 1e-05, %v53_v21 }
 0x129   :  { %87 = vrsqrt.f32 %v55_v22 }
 0x132   :  { %v86_v23 = vpop.eup %85 }
 0x133   :  { %v58_v25 = vmul.f32 %v86_v23, %v44_v11 }
 0x135   :  { %v66_v27 = vmul.f32 %v83_v24, %v58_v25 }
 0x136   :  { %v88_v28 = vpop.eup %87 }
 0x137   :  { %v74_v29 = vadd.f32 %v84_v26, %v66_v27  ;;  %v59_v30 = vmul.f32 %v88_v28, %v45_v15 }
 0x139   :  { %76 = vst [vmem:[%s151_s5] sm:$0xff] %v74_v29  ;;  %v67_v31 = vmul.f32 %v83_v24, %v59_v30 }
 0x13b   :  { %v75_v32 = vadd.f32 %v84_v26, %v67_v31 }
 0x13d   :  { %77 = vst [vmem:[%s151_s5 + $0x8] sm:$0xff] %v75_v32 }

// kernel: seq_classification_forward.7
= control target key start
LH: loop header
LB: loop body
LE: loop exit
PB: predicated region body
PF: predicated region fallthrough
CT: control target
= control target key end

     0   :  { %11 = vsyncpa [#allocation3], 0  ;;  %v311_v1 = vmov 0.0   ;;  %vm312_vm0 = vmmov 0   ;;  %s392_s0 = inlined_call_operand.vmem [shape: f32[16,128], index: 0, kind: input, shape index: {}]   ;;  %s393_s1 = inlined_call_operand.vmem [shape: bf16[128,128], index: 1, kind: input, shape index: {}]   ;;  %s394_s2 = inlined_call_operand.vmem [shape: f32[1,128], index: 2, kind: input, shape index: {}]   ;;  %s395_s3 = inlined_call_operand.vmem [shape: s32[2,1], index: 3, kind: input, shape index: {}]   ;;  %s396_s4 = inlined_call_operand.hbm [shape: f32[1,1], index: 4, kind: output, shape index: {0}]   ;;  %s397_s5 = inlined_call_operand.hbm [shape: f32[2,5], index: 5, kind: output, shape index: {1}]  }
   0x1   :  { %v255_v0 = vld [vmem:[%s393_s1 + $0x38] sm:$0xff]   ;;  %229 = vmatprep.subr.bf16.mxu0 %v311_v1  ;;  %v256_v2 = vld [vmem:[%s393_s1 + $0x30] sm:$0xff]   ;;  %245 = vmatprep.mubr.msk.bf16.mxu0 %vm312_vm0, %v311_v1  ;;  %v257_v3 = vld [vmem:[%s393_s1 + $0x28] sm:$0xff]  }
   0x2   :  { %230 = vmatpush3.bf16.msra.mxu0 %v255_v0 }
   0x3   :  { %231 = vmatprep.subr.bf16.mxu0 %v311_v1 }
   0x6   :  { %232 = vmatpush3.bf16.msra.mxu0 %v256_v2 }
   0x7   :  { %233 = vmatprep.subr.bf16.mxu0 %v311_v1 }
   0x8   :  { %12 = vsyncpa [#allocation5], 0  ;;  %v258_v4 = vld [vmem:[%s393_s1 + $0x20] sm:$0xff]   ;;  %v259_v5 = vld [vmem:[%s393_s1 + $0x18] sm:$0xff]   ;;  %vm27_vm1 = vcmask 1040384   ;;  %v313_v14 = vmov 0   ;;  %v141_v15 = vlaneseq }
   0x9   :  { %v260_v6 = vld [vmem:[%s393_s1 + $0x10] sm:$0xff]   ;;  %v23_v7 = vld [vmem:[%s392_s0 + $0x8] sm:$0x1]  ;;  %v22_v10 = vld [vmem:[%s392_s0] sm:$0x1]  ;;  %254 = vset.pattern.permute.xlu0 %v313_v14  ;;  %vm180_vm3 = vcmask 33792  }
   0xa   :  { %234 = vmatpush3.bf16.msra.mxu0 %v257_v3  ;;  %v261_v8 = vld [vmem:[%s393_s1 + $0x8] sm:$0xff]   ;;  %v25_v9 = vrot.slane %v23_v7, 7  ;;  %v262_v11 = vld [vmem:[%s393_s1] sm:$0xff]   ;;  %v142_v16 = vand.u32 127, %v141_v15  ;;  %vm145_vm4 = vcmask 1041408  }
   0xb   :  { %235 = vmatprep.subr.bf16.mxu0 %v311_v1  ;;  %v210_v17 = vld [vmem:[%s394_s2] ss:$0 sm:$0xff]  ;;  %s314_s2 = smov [#allocation4]  }
   0xc   :  { %v28_v12 = vsel %vm27_vm1, %v22_v10, %v25_v9  ;;  %vm143_vm2 = vcmp.lt.s32.totalorder %v142_v16, 5  ;;  %v158_v25 = vld [vmem:[%s395_s3] sm:$0x3]  ;;  %s198_s15 = sshll.u32 %s314_s2, 4  ;;  %s199_s15 = int_to_ptr.vmem [resolvable:$true] %s198_s15 }
   0xd   :  { %v29_v13 = vpack.c.bf16 %v28_v12, %v28_v12  ;;  %s267_s3 = scalar_lea.vmem %s199_s15, 32  ;;  %p272_p1 = scmp.lt.s32.totalorder %s199_s15, %s199_s15 }
   0xe   :  { %236 = vmatpush3.bf16.msra.mxu0 %v258_v4  ;;  %p268_p0 = scmp.ne.s32.totalorder %s199_s15, %s267_s3  ;;  %p273_p2 = scmp.lt.s32.totalorder %s267_s3, %s267_s3 }
   0xf   :  { %237 = vmatprep.subr.bf16.mxu0 %v311_v1 }
  0x10   :  { %p274_p3 = por %p273_p2, %p272_p1 }
  0x12   :  { %238 = vmatpush3.bf16.msra.mxu0 %v259_v5  ;;  %p275_p4 = pnand %p274_p3, %p268_p0 }
  0x13   :  { %239 = vmatprep.subr.bf16.mxu0 %v311_v1 }
  0x16   :  { %240 = vmatpush3.bf16.msra.mxu0 %v260_v6 }
  0x17   :  { %241 = vmatprep.subr.bf16.mxu0 %v311_v1 }
  0x1a   :  { %242 = vmatpush3.bf16.msra.mxu0 %v261_v8 }
  0x1b   :  { %243 = vmatprep.subr.bf16.mxu0 %v311_v1 }
  0x1e   :  { %244 = vmatpush3.bf16.msra.mxu0 %v262_v11 }
  0x21   :  { %246 = vmatmul.mubr.bf16.vlgmr.msra.gmra.mxu0 %v29_v13 }
  0xe1   :  { %v135_v18 = vpop.f32.mrf.mxu0 }
  0xe2   :  { %v136_v19 = vadd.f32 %v210_v17, %v135_v18 }
  0xe3   :  { %v247_v20 = vpop.f32.mrf.mxu0 }
  0xe4   :  { %v144_v21 = vsel %vm143_vm2, %v136_v19, -1e+30  ;;  %181 = vst.msk [vmem:[#allocation4] sm:$0x3] %vm180_vm3, %v136_v19 }
  0xe5   :  { %v138_v22 = vpop.f32.mrf.mxu0  ;;  %v146_v23 = vsel %vm145_vm4, %v144_v21, -inf }
  0xe6   :  { %147 = vmax.xlane.f32.xlu0 %v146_v23 }
  0xe7   :  { %v248_v24 = vpop.f32.mrf.mxu0 }
  0xfc   :  { %160 = vperm.xlu0 %254, %v158_v25  }
 0x16f   :  { %v148_v26 = vpop.xlane.xlu0 %147 }
 0x170   :  { %v149_v27 = vsub.f32 %v144_v21, %v148_v26 }
 0x172   :  { %v150_v28 = vmul.f32 1.442695, %v149_v27 }
 0x174   :  { %263 = vpow2.f32 %v150_v28 }
 0x177   :  { %v161_v29 = vpop.permute.xlu0 %160 }
 0x178   :  { %vm162_vm5 = vcmp.eq.s32.totalorder %v142_v16, %v161_v29 }
 0x179   :  { %v219_v30 = vsel %vm162_vm5, 1.0, %v311_v1 }
 0x17a   :  { %v165_v33 = vmul.f32 %v219_v30, %v136_v19 }
 0x17c   :  { %v166_v34 = vsel %vm145_vm4, %v165_v33, 0.0 }
 0x181   :  { %v264_v31 = vpop.eup %263 }
 0x182   :  { %v152_v32 = vsel %vm145_vm4, %v264_v31, 0.0 }
 0x183   :  { %153 = vadd.xlane.f32.xlu1 %v152_v32 }
 0x187   :  { %167 = vadd.xlane.f32.xlu1 %v166_v34 }
 0x188   :  { %278 = shalt.err (!%p275_p4)
}
 0x189   :  { %201 = dma.vmem_to_hbm [thread:$0]  %s199_s15, 32, %s397_s5, [#allocation5]   ;;  %vm178_vm6 = vcmask 0  }
 0x18a   :  { %s315_s18 = smov [#allocation2]  }
 0x18b   :  { %s188_s19 = sshll.u32 %s315_s18, 4  ;;  %s189_s19 = int_to_ptr.vmem [resolvable:$true] %s188_s19 }
 0x18c   :  { %s287_s5 = scalar_lea.vmem %s189_s19, 16  ;;  %s291_s20 = scalar_lea.vmem %s189_s19, 32 }
 0x18d   :  { %p288_p5 = scmp.ne.s32.totalorder %s189_s19, %s287_s5  ;;  %p292_p6 = scmp.lt.s32.totalorder %s189_s19, %s189_s19 }
 0x18e   :  { %p293_p7 = scmp.lt.s32.totalorder %s291_s20, %s287_s5 }
 0x190   :  { %p294_p8 = por %p293_p7, %p292_p6 }
 0x192   :  { %p295_p9 = pnand %p294_p8, %p288_p5 }
 0x20c   :  { %v154_v35 = vpop.xlane.xlu1 %153 }
 0x20d   :  { %265 = vlog2.f32 %v154_v35 }
 0x210   :  { %v168_v39 = vpop.xlane.xlu1 %167 }
 0x21a   :  { %v266_v36 = vpop.eup %265 }
 0x21b   :  { %v156_v37 = vmul.f32 0.6931472, %v266_v36 }
 0x21d   :  { %v157_v38 = vadd.f32 %v156_v37, %v148_v26 }
 0x21f   :  { %v169_v40 = vsub.f32 %v157_v38, %v168_v39 }
 0x221   :  { %v170_v41 = vsel %vm145_vm4, %v169_v40, 0.0 }
 0x222   :  { %v171_v42 = vrot.slane %v170_v41, 4 }
 0x224   :  { %v172_v43 = vadd.f32 %v171_v42, %v170_v41 }
 0x226   :  { %v173_v44 = vrot.slane %v172_v43, 2 }
 0x228   :  { %v174_v45 = vadd.f32 %v173_v44, %v172_v43 }
 0x22a   :  { %v175_v46 = vrot.slane %v174_v45, 1 }
 0x22c   :  { %v176_v47 = vadd.f32 %v175_v46, %v174_v45 }
 0x22e   :  { %v177_v48 = vmul.f32 0.5, %v176_v47 }
 0x230   :  { %179 = vst.msk [vmem:[#allocation2] sm:$0x1] %vm178_vm6, %v177_v48 }
 0x231   :  { %298 = shalt.err (!%p295_p9)
}
 0x232   :  { %191 = dma.vmem_to_hbm [thread:$0]  %s189_s19, 16, %s396_s4, [#allocation3]  }
 0x233   :  { %307 = dma.done.wait [#allocation3], 16  }
 0x234   :  { %308 = vsyncadd [#allocation3], 4294967280 }
 0x235   :  { %309 = dma.done.wait [#allocation5], 32  }
 0x236   :  { %310 = vsyncadd [#allocation5], 4294967264 }
 0x237   :  { %208 = vsyncpa [#allocation3], 1 }
 0x238   :  { %209 = vsyncpa [#allocation5], 1 }

// kernel: seq_classification_forward.6
= control target key start
LH: loop header
LB: loop body
LE: loop exit
PB: predicated region body
PF: predicated region fallthrough
CT: control target
= control target key end

     0   :  { %s2662_s29 = smov 0   ;;  %s3129_s0 = inlined_call_operand.vmem [shape: f32[16,128], index: 0, kind: input, shape index: {}]   ;;  %s3130_s1 = inlined_call_operand.vmem [shape: f32[2,1,8], index: 1, kind: input, shape index: {}]   ;;  %s3131_s2 = inlined_call_operand.vmem [shape: bf16[128,384], index: 2, kind: input, shape index: {}]   ;;  %s3132_s3 = inlined_call_operand.vmem [shape: f32[1,384], index: 3, kind: input, shape index: {}]   ;;  %s3133_s4 = inlined_call_operand.vmem [shape: bf16[128,128], index: 4, kind: input, shape index: {}]   ;;  %s3134_s5 = inlined_call_operand.vmem [shape: f32[1,128], index: 5, kind: input, shape index: {}]   ;;  %s3135_s6 = inlined_call_operand.vmem [shape: f32[1,128], index: 6, kind: input, shape index: {}]   ;;  %s3136_s7 = inlined_call_operand.vmem [shape: f32[1,128], index: 7, kind: input, shape index: {}]   ;;  %s3137_s8 = inlined_call_operand.vmem [shape: bf16[128,512], index: 8, kind: input, shape index: {}]   ;;  %s3138_s9 = inlined_call_operand.vmem [shape: f32[1,512], index: 9, kind: input, shape index: {}]   ;;  %s3139_s10 = inlined_call_operand.vmem [shape: bf16[512,128], index: 10, kind: input, shape index: {}]   ;;  %s3140_s11 = inlined_call_operand.vmem [shape: f32[1,128], index: 11, kind: input, shape index: {}]   ;;  %s3141_s12 = inlined_call_operand.vmem [shape: f32[1,128], index: 12, kind: input, shape index: {}]   ;;  %s3142_s13 = inlined_call_operand.vmem [shape: f32[1,128], index: 13, kind: input, shape index: {}]   ;;  %s3143_s14 = inlined_call_operand.vmem [shape: f32[16,128], index: 14, kind: output, shape index: {}]  }
   0x1 LB: > { %s2125_s30 = sadd.s32 4294967295, %s2579_s29   ;;  %p2129_p0 = scmp.ge.s32.totalorder %s2579_s29, 1  ;;  %s2579_s29 = sphi %s2662_s29, %s24_s29  }
   0x2   : > { %p419_p1 = scmp.lt.s32.totalorder %s2579_s29, 3 }
   0x4   : > { %p420_p2 = pnand %p2129_p0, %p419_p1 }
   0x5   : > { %p466_p3 = scmp.lt.s32.totalorder (!%p420_p2), %s2125_s30, 1  ;;  %s2585_s16 = smov (!%p420_p2), 64  }
   0x6   : > { %423 = sbr.rel (%p420_p2) target bundleno = 2859 (0xb2b), region = 76  ;;  %s2586_s17 = smov (!%p420_p2), 32  }
   0xb   : > { %v2425_v0 = vld [vmem:[%s3131_s2 + $0xac] ss:$12 sps:$4 sm:$0xff]   ;;  %v2427_v1 = vld [vmem:[%s3131_s2 + $0xa8] ss:$12 sps:$4 sm:$0xff]   ;;  %v2581_v2 = vmov 0   ;;  %v2582_v4 = vmov 0.0   ;;  %v514_v28 = vlaneseq }
   0xc   : > { %689 = vmatprep.mubr.bf16.mxu0 %v2581_v2  ;;  %657 = vmatprep.subr.bf16.mxu0 %v2425_v0  ;;  %v2428_v3 = vld [vmem:[%s3131_s2 + $0x94] ss:$12 sps:$4 sm:$0xff]   ;;  %v2430_v5 = vld [vmem:[%s3131_s2 + $0x90] ss:$12 sps:$4 sm:$0xff]   ;;  %v2433_v7 = vld [vmem:[%s3131_s2 + $0x78] ss:$12 sps:$4 sm:$0xff]  }
   0xd   : > { %2323 = vmatprep.subr.bf16.mxu1 %v2582_v4  ;;  %658 = vmatpush1.bf16.msra.mxu0 %v2427_v1  ;;  %v2431_v6 = vld [vmem:[%s3131_s2 + $0x7c] ss:$12 sps:$4 sm:$0xff]   ;;  %v2434_v8 = vld [vmem:[%s3131_s2 + $0x64] ss:$12 sps:$4 sm:$0xff]   ;;  %v2436_v9 = vld [vmem:[%s3131_s2 + $0x60] ss:$12 sps:$4 sm:$0xff]  }
   0xe   : > { %659 = vmatprep.subr.bf16.mxu0 %v2428_v3  ;;  %s3145_s30 = smov (!%p466_p3, %s2125_s30), 1  ;;  %v2449_v10 = vld [vmem:[%s3131_s2 + $0xb0] ss:$12 sps:$4 sm:$0xff]   ;;  %v2437_v11 = vld [vmem:[%s3131_s2 + $0x4c] ss:$12 sps:$4 sm:$0xff]   ;;  %vm2583_vm0 = vmmov 0  }
   0xf   : > { %2324 = vmatpush3.bf16.msra.mxu1 %v2449_v10  ;;  %v2450_v12 = vld [vmem:[%s3131_s2 + $0x98] ss:$12 sps:$4 sm:$0xff]   ;;  %s2130_s23 = sshll.u32 %s3145_s30, 3  ;;  %v2439_v13 = vld [vmem:[%s3131_s2 + $0x48] ss:$12 sps:$4 sm:$0xff]   ;;  %2339 = vmatprep.mubr.msk.bf16.mxu1 %vm2583_vm0, %v2582_v4  ;;  %v2771_v29 = vshrl.u32 %v514_v28, 7  ;;  %s472_s20 = scalar_lea.vmem %s3130_s1, %s3145_s30 }
  0x10   : > { %2325 = vmatprep.subr.bf16.mxu1 %v2582_v4  ;;  %v2440_v14 = vld [vmem:[%s3131_s2 + $0x34] ss:$12 sps:$4 sm:$0xff]   ;;  %v2442_v15 = vld [vmem:[%s3131_s2 + $0x30] ss:$12 sps:$4 sm:$0xff]   ;;  %v2445_v19 = vld [vmem:[%s3131_s2 + $0x18] ss:$12 sps:$4 sm:$0xff]   ;;  %s469_s15 = scalar_lea.vmem %s3129_s0, %s2130_s23 }
  0x11   : > { %660 = vmatpush1.bf16.msra.mxu0 %v2430_v5  ;;  %v2451_v16 = vld [vmem:[%s3131_s2 + $0x80] ss:$12 sps:$4 sm:$0xff]   ;;  %v2443_v17 = vld [vmem:[%s3131_s2 + $0x1c] ss:$12 sps:$4 sm:$0xff]   ;;  %v2446_v20 = vld [vmem:[%s3131_s2 + $0x4] ss:$12 sps:$4 sm:$0xff]  }
  0x12   : > { %661 = vmatprep.subr.bf16.mxu0 %v2431_v6  ;;  %v2452_v18 = vld [vmem:[%s3131_s2 + $0x68] ss:$12 sps:$4 sm:$0xff]   ;;  %v2453_v21 = vld [vmem:[%s3131_s2 + $0x50] ss:$12 sps:$4 sm:$0xff]   ;;  %v2448_v22 = vld [vmem:[%s3131_s2] ss:$12 sps:$4 sm:$0xff]  }
  0x13   : > { %2326 = vmatpush3.bf16.msra.mxu1 %v2450_v12  ;;  %v2746_v23 = vld [vmem:[%s469_s15] sm:$0xff]  ;;  %v2456_v27 = vld [vmem:[%s3131_s2 + $0x8] ss:$12 sps:$4 sm:$0xff]   ;;  %v520_v30 = vsub.s32 1, %v2771_v29  ;;  %v516_v31 = vsub.s32 0, %v2771_v29  ;;  %vm742_vm1 = vcmask 261120  }
  0x14   : > { %2327 = vmatprep.subr.bf16.mxu1 %v2582_v4  ;;  %v2454_v24 = vld [vmem:[%s3131_s2 + $0x38] ss:$12 sps:$4 sm:$0xff]   ;;  %v479_v25 = vpack.c.bf16 %v2746_v23, %v2746_v23  ;;  %v2455_v26 = vld [vmem:[%s3131_s2 + $0x20] ss:$12 sps:$4 sm:$0xff]   ;;  %s2584_s15 = smov 96   ;;  %v524_v44 = vsub.s32 2, %v2771_v29 }
  0x15   : > { %662 = vmatpush1.bf16.msra.mxu0 %v2433_v7  ;;  %v512_v32 = vld [vmem:[%s3132_s3] sm:$0x7]  ;;  %vm813_vm2 = vcmask 1043456   ;;  %vm797_vm3 = vcmask 64512   ;;  %vm1209_vm4 = vcmask 523264   ;;  %vm1211_vm5 = vcmask 785408  }
  0x16   : > { %663 = vmatprep.subr.bf16.mxu0 %v2434_v8  ;;  %v521_v33 = vrot.slane %v512_v32, %v520_v30  ;;  %v517_v35 = vrot.slane %v512_v32, %v516_v31  ;;  %v525_v45 = vrot.slane %v512_v32, %v524_v44  ;;  %v2804_v54 = vld [vmem:[%s472_s20] ss:$0 sm:$0xff] }
  0x17   : > { %2328 = vmatpush3.bf16.msra.mxu1 %v2451_v16 }
  0x18   : > { %2329 = vmatprep.subr.bf16.mxu1 %v2582_v4 }
  0x19   : > { %664 = vmatpush1.bf16.msra.mxu0 %v2436_v9 }
  0x1a   : > { %665 = vmatprep.subr.bf16.mxu0 %v2437_v11 }
  0x1b   : > { %2330 = vmatpush3.bf16.msra.mxu1 %v2452_v18 }
  0x1c   : > { %2331 = vmatprep.subr.bf16.mxu1 %v2582_v4 }
  0x1d   : > { %666 = vmatpush1.bf16.msra.mxu0 %v2439_v13 }
  0x1e   : > { %667 = vmatprep.subr.bf16.mxu0 %v2440_v14 }
  0x1f   : > { %2332 = vmatpush3.bf16.msra.mxu1 %v2453_v21 }
  0x20   : > { %2333 = vmatprep.subr.bf16.mxu1 %v2582_v4 }
  0x21   : > { %668 = vmatpush1.bf16.msra.mxu0 %v2442_v15 }
  0x22   : > { %669 = vmatprep.subr.bf16.mxu0 %v2443_v17 }
  0x23   : > { %2334 = vmatpush3.bf16.msra.mxu1 %v2454_v24 }
  0x24   : > { %2335 = vmatprep.subr.bf16.mxu1 %v2582_v4 }
  0x25   : > { %670 = vmatpush1.bf16.msra.mxu0 %v2445_v19 }
  0x26   : > { %671 = vmatprep.subr.bf16.mxu0 %v2446_v20 }
  0x27   : > { %2336 = vmatpush3.bf16.msra.mxu1 %v2455_v26 }
  0x28   : > { %2337 = vmatprep.subr.bf16.mxu1 %v2582_v4 }
  0x29   : > { %672 = vmatpush1.bf16.msra.mxu0 %v2448_v22 }
  0x2a   : > { %2367 = vmatprep.subr.bf16.mxu0 %v2582_v4 }
  0x2b   : > { %2338 = vmatpush3.bf16.msra.mxu1 %v2456_v27 }
  0x2c   : > { %690 = vmatmul.mubr.bf16.vlgmr.msra.gmra.mxu0 %v479_v25  ;;  %2343 = vmatprep.subr.bf16.mxu1 %v2582_v4 }
  0x2d   : > { %2369 = vmatprep.mubr.msk.bf16.mxu0 %vm2583_vm0, %v2582_v4 }
  0x2e   : > { %2340 = vmatmul.mubr.bf16.vlgmr.msra.gmra.mxu1 %v479_v25 }
  0x2f   : > { %2345 = vmatprep.mubr.msk.bf16.mxu1 %vm2583_vm0, %v2582_v4 }
  0xec   : > { %v691_v34 = vpop.f32.mrf.mxu0 }
  0xed   : > { %v692_v39 = vadd.f32 %v691_v34, %v517_v35 }
  0xee   : > { %v693_v36 = vpop.f32.mrf.mxu0  ;;  %v732_v46 = vpop.f32.mrf.mxu1 }
  0xef   : > { %v694_v37 = vadd.f32 %v693_v36, %v521_v33  ;;  %v738_v43 = vpack.c.bf16 %v692_v39, %v692_v39  ;;  %v733_v47 = vadd.f32 %v732_v46, %v525_v45 }
  0xf0   : > { %v695_v38 = vpop.f32.mrf.mxu0  ;;  %v2341_v48 = vpop.f32.mrf.mxu1 }
  0xf1   : > { %v739_v40 = vpack.c.bf16 %v694_v37, %v694_v37  ;;  %v2795_v49 = vpack.c.bf16 %v733_v47, %v733_v47 }
  0xf2   : > { %v696_v41 = vpop.f32.mrf.mxu0  ;;  %v735_v50 = vpop.f32.mrf.mxu1 }
  0xf3   : > { %861 = vrot.lane.b32.xlu1 %v739_v40, %s2584_s15  ;;  %v747_v42 = vsel %vm742_vm1, %v739_v40, 0  ;;  %v815_v51 = vsel %vm813_vm2, %v2795_v49, 0 }
  0xf4   : > { %2344 = vmatpush3.bf16.xpose.msra.mxu1 %v747_v42  ;;  %v2342_v52 = vpop.f32.mrf.mxu1 }
  0xf5   : > { %2349 = vmatprep.subr.bf16.mxu1 %v2582_v4 }
  0xf7   : > { %858 = vrot.lane.b32.xlu1 %v738_v43, %s2584_s15 }
  0xfb   : > { %972 = vrot.lane.b32.xlu1 %v738_v43, %s2585_s16  ;;  %2346 = vmatmul.mubr.msk.bf16.vlgmr.msra.gmra.mxu1 %vm742_vm1, %v738_v43 }
  0xfc   : > { %2351 = vmatprep.mubr.msk.bf16.mxu1 %vm2583_vm0, %v2582_v4  ;;  %2350 = vmatpush3.bf16.msra.mxu1 %v815_v51 }
  0xfd   : > { %2355 = vmatprep.subr.bf16.mxu1 %v2582_v4 }
  0xff   : > { %1086 = vrot.lane.b32.xlu1 %v739_v40, %s2586_s17 }
 0x103   : > { %1084 = vrot.lane.b32.xlu1 %v738_v43, %s2586_s17 }
 0x165   : > { %v862_v3 = vpop.permute.xlu1 %861 }
 0x166   : > { %v867_v15 = vsel %vm742_vm1, %v862_v3, 0 }
 0x169   : > { %v859_v5 = vpop.permute.xlu1 %858 }
 0x16d   : > { %v973_v7 = vpop.permute.xlu1 %972 }
 0x171   : > { %v1087_v10 = vpop.permute.xlu1 %1086 }
 0x172   : > { %v1092_v11 = vsel %vm742_vm1, %v1087_v10, 0 }
 0x175   : > { %v1085_v16 = vpop.permute.xlu1 %1084 }
 0x1bb   : > { %v783_v53 = vpop.f32.mrf.mxu1 }
 0x1bc   : > { %v789_v55 = vmul.f32 0.17677669, %v783_v53 }
 0x1bd   : > { %v2347_v56 = vpop.f32.mrf.mxu1 }
 0x1be   : > { %v796_v57 = vadd.f32 %v2804_v54, %v789_v55 }
 0x1bf   : > { %v786_v58 = vpop.f32.mrf.mxu1 }
 0x1c0   : > { %v798_v59 = vsel %vm797_vm3, %v796_v57, -inf }
 0x1c1   : > { %799 = vmax.xlane.f32.xlu0 %v798_v59  ;;  %v2348_v60 = vpop.f32.mrf.mxu1 }
 0x24a   : > { %v800_v61 = vpop.xlane.xlu0 %799 }
 0x24b   : > { %v801_v62 = vsub.f32 %v796_v57, %v800_v61 }
 0x24d   : > { %v802_v63 = vmul.f32 1.442695, %v801_v62 }
 0x24f   : > { %2545 = vpow2.f32 %v802_v63 }
 0x25c   : > { %v2546_v0 = vpop.eup %2545 }
 0x25d   : > { %v804_v1 = vsel %vm797_vm3, %v2546_v0, 0.0 }
 0x25e   : > { %805 = vadd.xlane.f32.xlu0 %v804_v1 }
 0x274   : > { %974 = vrot.lane.b32.xlu0 %v739_v40, %s2585_s16 }
 0x2e7   : > { %v806_v6 = vpop.xlane.xlu0 %805 }
 0x2e8   : > { %2547 = vrcp.f32 %v806_v6 }
 0x2eb   : > { %v975_v8 = vpop.permute.xlu0 %974 }
 0x2ec   : > { %v980_v9 = vsel %vm742_vm1, %v975_v8, 0 }
 0x2ed   : > { %2368 = vmatpush3.bf16.xpose.msra.mxu0 %v980_v9 }
 0x2ee   : > { %2379 = vmatprep.subr.bf16.mxu0 %v2582_v4 }
 0x2f4   : > { %2370 = vmatmul.mubr.msk.bf16.vlgmr.msra.gmra.mxu0 %vm742_vm1, %v973_v7 }
 0x2f5   : > { %v2548_v12 = vpop.eup %2547  ;;  %2380 = vmatpush3.bf16.xpose.msra.mxu0 %v1092_v11  ;;  %2381 = vmatprep.mubr.msk.bf16.mxu0 %vm2583_vm0, %v2582_v4 }
 0x2f6   : > { %v808_v13 = vmul.f32 %v2548_v12, %v2546_v0  ;;  %2391 = vmatprep.subr.bf16.mxu0 %v2582_v4 }
 0x2f8   : > { %v809_v14 = vpack.c.bf16 %v808_v13, %v808_v13 }
 0x2fa   : > { %2352 = vmatmul.mubr.msk.bf16.vlgmr.msra.gmra.mxu1 %vm797_vm3, %v809_v14 }
 0x2fb   : > { %2356 = vmatpush3.bf16.xpose.msra.mxu1 %v867_v15  ;;  %2357 = vmatprep.mubr.msk.bf16.mxu1 %vm2583_vm0, %v2582_v4 }
 0x2fc   : > { %2382 = vmatmul.mubr.msk.bf16.vlgmr.msra.gmra.mxu0 %vm742_vm1, %v1085_v16  ;;  %2361 = vmatprep.subr.bf16.mxu1 %v2582_v4 }
 0x2fd   : > { %2407 = vmatprep.mubr.msk.bf16.mxu0 %vm2583_vm0, %v2582_v4 }
 0x302   : > { %2358 = vmatmul.mubr.msk.bf16.vlgmr.msra.gmra.mxu1 %vm742_vm1, %v859_v5 }
 0x303   : > { %2363 = vmatprep.mubr.msk.bf16.mxu1 %vm2583_vm0, %v2582_v4 }
 0x3b4   : > { %v1016_v17 = vpop.f32.mrf.mxu0 }
 0x3b5   : > { %v1022_v18 = vmul.f32 0.17677669, %v1016_v17 }
 0x3b6   : > { %v2371_v19 = vpop.f32.mrf.mxu0 }
 0x3b7   : > { %v1023_v20 = vadd.f32 %v2804_v54, %v1022_v18  ;;  %v2457_v18 = vld [vmem:[%s3133_s4 + $0x38] sm:$0xff]   ;;  %v2458_v19 = vld [vmem:[%s3133_s4 + $0x30] sm:$0xff]  }
 0x3b8   : > { %v1019_v21 = vpop.f32.mrf.mxu0  ;;  %2392 = vmatpush3.bf16.msra.mxu0 %v2457_v18  ;;  %v2495_v18 = vld [vmem:[%s3137_s8 + $0x40] ss:$16 sps:$4 sm:$0xff]  }
 0x3b9   : > { %v1024_v22 = vsel %vm797_vm3, %v1023_v20, -inf  ;;  %2393 = vmatprep.subr.bf16.mxu0 %v2582_v4  ;;  %v2460_v21 = vld [vmem:[%s3133_s4 + $0x20] sm:$0xff]  }
 0x3ba   : > { %1025 = vmax.xlane.f32.xlu0 %v1024_v22  ;;  %v2830_v24 = vpop.f32.mrf.mxu1  ;;  %v2372_v25 = vpop.f32.mrf.mxu0  ;;  %v2461_v22 = vld [vmem:[%s3133_s4 + $0x18] sm:$0xff]  }
 0x3bb   : > { %v2462_v25 = vld [vmem:[%s3133_s4 + $0x10] sm:$0xff]  }
 0x3bc   : > { %v2353_v26 = vpop.f32.mrf.mxu1  ;;  %v1128_v27 = vpop.f32.mrf.mxu0  ;;  %2394 = vmatpush3.bf16.msra.mxu0 %v2458_v19  ;;  %v2498_v19 = vld [vmem:[%s3137_s8 + $0x48] ss:$16 sps:$4 sm:$0xff]  }
 0x3bd   : > { %v1134_v37 = vmul.f32 0.17677669, %v1128_v27  ;;  %2395 = vmatprep.subr.bf16.mxu0 %v2582_v4  ;;  %v2463_v26 = vld [vmem:[%s3133_s4 + $0x8] sm:$0xff]  }
 0x3be   : > { %v854_v28 = vpop.f32.mrf.mxu1  ;;  %v2383_v32 = vpop.f32.mrf.mxu0 }
 0x3bf   : > { %v1135_v43 = vadd.f32 %v2804_v54, %v1134_v37  ;;  %v2464_v32 = vld [vmem:[%s3133_s4] sm:$0xff]  }
 0x3c0   : > { %v2354_v33 = vpop.f32.mrf.mxu1  ;;  %v1131_v34 = vpop.f32.mrf.mxu0 }
 0x3c1   : > { %v1136_v46 = vsel %vm797_vm3, %v1135_v43, -inf }
 0x3c2   : > { %v903_v35 = vpop.f32.mrf.mxu1  ;;  %v2384_v36 = vpop.f32.mrf.mxu0 }
 0x3c3   : > { %v909_v38 = vmul.f32 0.17677669, %v903_v35 }
 0x3c4   : > { %v2359_v39 = vpop.f32.mrf.mxu1 }
 0x3c5   : > { %v910_v40 = vadd.f32 %v2804_v54, %v909_v38 }
 0x3c6   : > { %v906_v41 = vpop.f32.mrf.mxu1 }
 0x3c7   : > { %v911_v42 = vsel %vm797_vm3, %v910_v40, -inf }
 0x3c8   : > { %912 = vmax.xlane.f32.xlu1 %v911_v42  ;;  %v2360_v45 = vpop.f32.mrf.mxu1 }
 0x3cc   : > { %1137 = vmax.xlane.f32.xlu1 %v1136_v46 }
 0x443   : > { %v1026_v47 = vpop.xlane.xlu0 %1025 }
 0x444   : > { %v1027_v48 = vsub.f32 %v1023_v20, %v1026_v47  ;;  %v2459_v20 = vld [vmem:[%s3133_s4 + $0x28] sm:$0xff]  }
 0x445   : > { %2396 = vmatpush3.bf16.msra.mxu0 %v2459_v20  ;;  %v2503_v20 = vld [vmem:[%s3137_s8 + $0x24] ss:$16 sps:$4 sm:$0xff]  }
 0x446   : > { %v1028_v50 = vmul.f32 1.442695, %v1027_v48  ;;  %2397 = vmatprep.subr.bf16.mxu0 %v2582_v4 }
 0x448   : > { %2549 = vpow2.f32 %v1028_v50 }
 0x449   : > { %2398 = vmatpush3.bf16.msra.mxu0 %v2460_v21  ;;  %v2506_v21 = vld [vmem:[%s3137_s8 + $0x2c] ss:$16 sps:$4 sm:$0xff]  }
 0x44a   : > { %2399 = vmatprep.subr.bf16.mxu0 %v2582_v4 }
 0x44d   : > { %2400 = vmatpush3.bf16.msra.mxu0 %v2461_v22  ;;  %v2501_v22 = vld [vmem:[%s3137_s8 + $0x20] ss:$16 sps:$4 sm:$0xff]  }
 0x44e   : > { %2401 = vmatprep.subr.bf16.mxu0 %v2582_v4 }
 0x451   : > { %v913_v51 = vpop.xlane.xlu1 %912  ;;  %2402 = vmatpush3.bf16.msra.mxu0 %v2462_v25  ;;  %v2504_v25 = vld [vmem:[%s3137_s8 + $0x28] ss:$16 sps:$4 sm:$0xff]  }
 0x452   : > { %v914_v52 = vsub.f32 %v910_v40, %v913_v51  ;;  %2403 = vmatprep.subr.bf16.mxu0 %v2582_v4  ;;  %v2165_v51 = vld [vmem:[%s3134_s5] ss:$0 sm:$0xff] }
 0x454   : > { %v915_v58 = vmul.f32 1.442695, %v914_v52 }
 0x455   : > { %v2550_v53 = vpop.eup %2549  ;;  %v1138_v55 = vpop.xlane.xlu1 %1137  ;;  %2404 = vmatpush3.bf16.msra.mxu0 %v2463_v26  ;;  %v2509_v26 = vld [vmem:[%s3137_s8 + $0x4] ss:$16 sps:$4 sm:$0xff]  }
 0x456   : > { %v1139_v56 = vsub.f32 %v1135_v43, %v1138_v55  ;;  %v1030_v57 = vsel %vm797_vm3, %v2550_v53, 0.0  ;;  %2405 = vmatprep.subr.bf16.mxu0 %v2582_v4 }
 0x457   : > { %1031 = vadd.xlane.f32.xlu0 %v1030_v57 }
 0x458   : > { %v1140_v59 = vmul.f32 1.442695, %v1139_v56 }
 0x459   : > { %2406 = vmatpush3.bf16.msra.mxu0 %v2464_v32  ;;  %v2510_v32 = vld [vmem:[%s3137_s8 + $0x8] ss:$16 sps:$4 sm:$0xff]  }
 0x45a   : > { %2551 = vpow2.f32 %v1140_v59  ;;  %v2468_v59 = vld [vmem:[%s3137_s8 + $0xe8] ss:$16 sps:$4 sm:$0xff]  }
 0x45b   : > { %2553 = vpow2.f32 %v915_v58 }
 0x467   : > { %v2552_v54 = vpop.eup %2551 }
 0x468   : > { %v1142_v60 = vsel %vm797_vm3, %v2552_v54, 0.0  ;;  %v2554_v61 = vpop.eup %2553 }
 0x469   : > { %1143 = vadd.xlane.f32.xlu1 %v1142_v60  ;;  %v917_v62 = vsel %vm797_vm3, %v2554_v61, 0.0  ;;  %v2476_v60 = vld [vmem:[%s3137_s8 + $0xcc] ss:$16 sps:$4 sm:$0xff]  }
 0x46d   : > { %924 = vrot.lane.b32.xlu0 %v2795_v49, %s2584_s15  ;;  %918 = vadd.xlane.f32.xlu1 %v917_v62  ;;  %v2474_v62 = vld [vmem:[%s3137_s8 + $0xc8] ss:$16 sps:$4 sm:$0xff]  }
 0x47e   : > { %1036 = vrot.lane.b32.xlu1 %v2795_v49, %s2585_s16 }
 0x482   : > { %1148 = vrot.lane.b32.xlu1 %v2795_v49, %s2586_s17 }
 0x4e0   : > { %v1032_v63 = vpop.xlane.xlu0 %1031 }
 0x4e4   : > { %v925_v0 = vpop.permute.xlu0 %924 }
 0x4e5   : > { %v930_v1 = vsel %vm813_vm2, %v925_v0, 0 }
 0x4e6   : > { %2362 = vmatpush3.bf16.msra.mxu1 %v930_v1 }
 0x4e7   : > { %2373 = vmatprep.subr.bf16.mxu1 %v2582_v4 }
 0x4f2   : > { %v1144_v3 = vpop.xlane.xlu1 %1143 }
 0x4f6   : > { %v919_v5 = vpop.xlane.xlu1 %918 }
 0x4f7   : > { %2555 = vrcp.f32 %v919_v5  ;;  %v2479_v5 = vld [vmem:[%s3137_s8 + $0xa4] ss:$16 sps:$4 sm:$0xff]  }
 0x4f8   : > { %2557 = vrcp.f32 %v1032_v63 }
 0x4f9   : > { %2559 = vrcp.f32 %v1144_v3 }
 0x4fa   : > { %v1037_v8 = vpop.permute.xlu1 %1036 }
 0x4fb   : > { %v1042_v11 = vsel %vm813_vm2, %v1037_v8, 0  ;;  %v2480_v8 = vld [vmem:[%s3137_s8 + $0xa8] ss:$16 sps:$4 sm:$0xff]  }
 0x4fe   : > { %v1149_v12 = vpop.permute.xlu1 %1148 }
 0x4ff   : > { %v1154_v15 = vsel %vm813_vm2, %v1149_v12, 0  ;;  %v2491_v12 = vld [vmem:[%s3137_s8 + $0x64] ss:$16 sps:$4 sm:$0xff]  }
 0x504   : > { %v2556_v6 = vpop.eup %2555 }
 0x505   : > { %v921_v7 = vmul.f32 %v2556_v6, %v2554_v61  ;;  %v2558_v10 = vpop.eup %2557  ;;  %v2471_v61 = vld [vmem:[%s3137_s8 + $0xc0] ss:$16 sps:$4 sm:$0xff]   ;;  %v2482_v6 = vld [vmem:[%s3137_s8 + $0xac] ss:$16 sps:$4 sm:$0xff]  }
 0x506   : > { %v1034_v49 = vmul.f32 %v2558_v10, %v2550_v53  ;;  %v2560_v14 = vpop.eup %2559  ;;  %v2485_v10 = vld [vmem:[%s3137_s8 + $0x84] ss:$16 sps:$4 sm:$0xff]  }
 0x507   : > { %v922_v9 = vpack.c.bf16 %v921_v7, %v921_v7  ;;  %v1146_v16 = vmul.f32 %v2560_v14, %v2552_v54  ;;  %v2470_v54 = vld [vmem:[%s3137_s8 + $0xec] ss:$16 sps:$4 sm:$0xff]   ;;  %v2477_v7 = vld [vmem:[%s3137_s8 + $0xa0] ss:$16 sps:$4 sm:$0xff]  }
 0x508   : > { %v1035_v13 = vpack.c.bf16 %v1034_v49, %v1034_v49  ;;  %1610 = vmatprep.subr.bf16.mxu0 %v2470_v54  ;;  %v2488_v49 = vld [vmem:[%s3137_s8 + $0x8c] ss:$16 sps:$4 sm:$0xff]   ;;  %v2489_v14 = vld [vmem:[%s3137_s8 + $0x60] ss:$16 sps:$4 sm:$0xff]  }
 0x509   : > { %2364 = vmatmul.mubr.msk.bf16.vlgmr.msra.gmra.mxu1 %vm797_vm3, %v922_v9  ;;  %v1147_v17 = vpack.c.bf16 %v1146_v16, %v1146_v16  ;;  %v2483_v9 = vld [vmem:[%s3137_s8 + $0x80] ss:$16 sps:$4 sm:$0xff]   ;;  %v2497_v16 = vld [vmem:[%s3137_s8 + $0x44] ss:$16 sps:$4 sm:$0xff]   ;;  %v2530_v54 = vld [vmem:[%s3139_s10 + $0xd8] sm:$0xff]  }
 0x50a   : > { %2374 = vmatpush3.bf16.msra.mxu1 %v1042_v11  ;;  %2375 = vmatprep.mubr.msk.bf16.mxu1 %vm2583_vm0, %v2582_v4  ;;  %v2486_v11 = vld [vmem:[%s3137_s8 + $0x88] ss:$16 sps:$4 sm:$0xff]  }
 0x50b   : > { %2385 = vmatprep.subr.bf16.mxu1 %v2582_v4 }
 0x511   : > { %2376 = vmatmul.mubr.msk.bf16.vlgmr.msra.gmra.mxu1 %vm797_vm3, %v1035_v13  ;;  %v2494_v13 = vld [vmem:[%s3137_s8 + $0x6c] ss:$16 sps:$4 sm:$0xff]  }
 0x512   : > { %2386 = vmatpush3.bf16.msra.mxu1 %v1154_v15  ;;  %2387 = vmatprep.mubr.msk.bf16.mxu1 %vm2583_vm0, %v2582_v4  ;;  %v2492_v15 = vld [vmem:[%s3137_s8 + $0x68] ss:$16 sps:$4 sm:$0xff]  }
 0x519   : > { %2388 = vmatmul.mubr.msk.bf16.vlgmr.msra.gmra.mxu1 %vm797_vm3, %v1147_v17  ;;  %v2500_v17 = vld [vmem:[%s3137_s8 + $0x4c] ss:$16 sps:$4 sm:$0xff]  }
 0x51a   : > { %1601 = vmatprep.mubr.bf16.mxu1 %v2581_v2 }
 0x5c9   : > { %v966_v27 = vpop.f32.mrf.mxu1 }
 0x5ca   : > { %1197 = vrot.lane.b32.xlu0 %v966_v27, %s2586_s17  ;;  %v2512_v27 = vld [vmem:[%s3137_s8 + $0xc] ss:$16 sps:$4 sm:$0xff]   ;;  %s476_s17 = scalar_lea.vmem %s3143_s14, %s2130_s23 }
 0x5cb   : > { %v2365_v28 = vpop.f32.mrf.mxu1 }
 0x5cc   : > { %v2507_v28 = vld [vmem:[%s3137_s8] ss:$16 sps:$4 sm:$0xff]  }
 0x5cd   : > { %v969_v33 = vpop.f32.mrf.mxu1 }
 0x5cf   : > { %v2366_v34 = vpop.f32.mrf.mxu1 }
 0x5d1   : > { %v1078_v35 = vpop.f32.mrf.mxu1 }
 0x5d2   : > { %1201 = vrot.lane.b32.xlu1 %v1078_v35, %s2585_s16 }
 0x5d3   : > { %v2377_v36 = vpop.f32.mrf.mxu1 }
 0x5d5   : > { %v1081_v37 = vpop.f32.mrf.mxu1 }
 0x5d6   : > { %v2174_v37 = vld [vmem:[%s3135_s6] ss:$0 sm:$0xff] }
 0x5d7   : > { %v2378_v38 = vpop.f32.mrf.mxu1 }
 0x5d9   : > { %v1190_v39 = vpop.f32.mrf.mxu1 }
 0x5da   : > { %1205 = vrot.lane.b32.xlu0 %v1190_v39, %s2584_s15  ;;  %v2175_v39 = vld [vmem:[%s3136_s7] ss:$0 sm:$0xff] }
 0x5db   : > { %v2389_v40 = vpop.f32.mrf.mxu1 }
 0x5dd   : > { %v1193_v41 = vpop.f32.mrf.mxu1 }
 0x5df   : > { %v2390_v42 = vpop.f32.mrf.mxu1 }
 0x63c   : > { %v1198_v4 = vpop.permute.xlu0 %1197 }
 0x63d   : > { %v1208_v45 = vsel %vm742_vm1, %v2830_v24, %v1198_v4  ;;  %v2465_v24 = vld [vmem:[%s3137_s8 + $0xe0] ss:$16 sps:$4 sm:$0xff]   ;;  %v2513_v4 = vld [vmem:[%s3139_s10 + $0x78] sm:$0xff]  }
 0x644   : > { %v1202_v43 = vpop.permute.xlu1 %1201 }
 0x645   : > { %v1210_v46 = vsel %vm1209_vm4, %v1208_v45, %v1202_v43  ;;  %v2514_v43 = vld [vmem:[%s3139_s10 + $0xf8] sm:$0xff]  }
 0x646   : > { %v2515_v45 = vld [vmem:[%s3139_s10 + $0x38] sm:$0xff]  }
 0x64c   : > { %v1206_v47 = vpop.permute.xlu0 %1205 }
 0x64d   : > { %v1212_v48 = vsel %vm1211_vm5, %v1210_v46, %v1206_v47  ;;  %v2516_v46 = vld [vmem:[%s3139_s10 + $0xb8] sm:$0xff]   ;;  %v2517_v47 = vld [vmem:[%s3139_s10 + $0x70] sm:$0xff]  }
 0x64e   : > { %v1213_v50 = vpack.c.bf16 %v1212_v48, %v1212_v48  ;;  %v2518_v48 = vld [vmem:[%s3139_s10 + $0xf0] sm:$0xff]  }
 0x650   : > { %2408 = vmatmul.mubr.bf16.vlgmr.msra.gmra.mxu0 %v1213_v50  ;;  %v2519_v50 = vld [vmem:[%s3139_s10 + $0x30] sm:$0xff]  }
 0x651   : > { %1642 = vmatprep.mubr.bf16.mxu0 %v2581_v2  ;;  %v2467_v2 = vld [vmem:[%s3137_s8 + $0xe4] ss:$16 sps:$4 sm:$0xff]   ;;  %1611 = vmatpush1.bf16.msra.mxu0 %v2468_v59  ;;  %v2529_v59 = vld [vmem:[%s3139_s10 + $0x58] sm:$0xff]  }
 0x652   : > { %1569 = vmatprep.subr.bf16.mxu1 %v2467_v2  ;;  %1612 = vmatprep.subr.bf16.mxu0 %v2476_v60  ;;  %v2528_v2 = vld [vmem:[%s3139_s10 + $0xa0] sm:$0xff]   ;;  %v2532_v60 = vld [vmem:[%s3139_s10 + $0x98] sm:$0xff]  }
 0x653   : > { %1570 = vmatpush1.bf16.msra.mxu1 %v2465_v24  ;;  %v2527_v24 = vld [vmem:[%s3139_s10 + $0x20] sm:$0xff]  }
 0x655   : > { %1613 = vmatpush1.bf16.msra.mxu0 %v2474_v62  ;;  %v2534_v62 = vld [vmem:[%s3139_s10 + $0xd0] sm:$0xff]  }
 0x656   : > { %1614 = vmatprep.subr.bf16.mxu0 %v2482_v6  ;;  %v2540_v6 = vld [vmem:[%s3139_s10 + $0x88] sm:$0xff]  }
 0x659   : > { %1615 = vmatpush1.bf16.msra.mxu0 %v2480_v8  ;;  %v2542_v8 = vld [vmem:[%s3139_s10 + $0xc0] sm:$0xff]  }
 0x65a   : > { %1616 = vmatprep.subr.bf16.mxu0 %v2488_v49  ;;  %v1403_v49 = vsub.s32 3, %v2771_v29 }
 0x65d   : > { %1617 = vmatpush1.bf16.msra.mxu0 %v2486_v11  ;;  %v1387_v11 = vld [vmem:[%s3138_s9] sm:$0xf] }
 0x65e   : > { %1618 = vmatprep.subr.bf16.mxu0 %v2494_v13  ;;  %v1400_v13 = vrot.slane %v1387_v11, %v524_v44 }
 0x661   : > { %1619 = vmatpush1.bf16.msra.mxu0 %v2492_v15  ;;  %v1404_v15 = vrot.slane %v1387_v11, %v1403_v49 }
 0x662   : > { %1620 = vmatprep.subr.bf16.mxu0 %v2500_v17 }
 0x665   : > { %1621 = vmatpush1.bf16.msra.mxu0 %v2498_v19 }
 0x666   : > { %1622 = vmatprep.subr.bf16.mxu0 %v2506_v21 }
 0x669   : > { %1623 = vmatpush1.bf16.msra.mxu0 %v2504_v25 }
 0x66a   : > { %1624 = vmatprep.subr.bf16.mxu0 %v2512_v27 }
 0x66d   : > { %1625 = vmatpush1.bf16.msra.mxu0 %v2510_v32 }
 0x66e   : > { %2301 = vmatprep.subr.bf16.mxu0 %v2514_v43 }
 0x710   : > { %v1319_v52 = vpop.f32.mrf.mxu0 }
 0x711   : > { %v1320_v53 = vadd.f32 %v2165_v51, %v1319_v52  ;;  %v2520_v51 = vld [vmem:[%s3139_s10 + $0xb0] sm:$0xff]   ;;  %v2521_v52 = vld [vmem:[%s3139_s10 + $0x68] sm:$0xff]  }
 0x712   : > { %v2409_v55 = vpop.f32.mrf.mxu0 }
 0x713   : > { %v1325_v56 = vadd.f32 %v1320_v53, %v2746_v23  ;;  %v2473_v23 = vld [vmem:[%s3137_s8 + $0xc4] ss:$16 sps:$4 sm:$0xff]   ;;  %v2522_v53 = vld [vmem:[%s3139_s10 + $0xe8] sm:$0xff]  }
 0x714   : > { %v1322_v57 = vpop.f32.mrf.mxu0  ;;  %1571 = vmatprep.subr.bf16.mxu1 %v2473_v23  ;;  %v2523_v55 = vld [vmem:[%s3139_s10 + $0x28] sm:$0xff]   ;;  %v2531_v23 = vld [vmem:[%s3139_s10 + $0x18] sm:$0xff]  }
 0x715   : > { %1328 = vadd.xlane.f32.xlu1 %v1325_v56  ;;  %1572 = vmatpush1.bf16.msra.mxu1 %v2471_v61  ;;  %v2525_v57 = vld [vmem:[%s3139_s10 + $0x60] sm:$0xff]   ;;  %v2533_v61 = vld [vmem:[%s3139_s10 + $0x50] sm:$0xff]  }
 0x716   : > { %v2410_v58 = vpop.f32.mrf.mxu0  ;;  %1573 = vmatprep.subr.bf16.mxu1 %v2479_v5  ;;  %v2539_v5 = vld [vmem:[%s3139_s10 + $0x8] sm:$0xff]  }
 0x717   : > { %v2526_v58 = vld [vmem:[%s3139_s10 + $0xe0] sm:$0xff]  }
 0x719   : > { %1574 = vmatpush1.bf16.msra.mxu1 %v2477_v7  ;;  %v2541_v7 = vld [vmem:[%s3139_s10 + $0x40] sm:$0xff]  }
 0x71a   : > { %1575 = vmatprep.subr.bf16.mxu1 %v2485_v10  ;;  %v2544_v10 = vld [vmem:[%s3139_s10 + $0x80] sm:$0xff]  }
 0x71d   : > { %1576 = vmatpush1.bf16.msra.mxu1 %v2483_v9  ;;  %v2543_v9 = vld [vmem:[%s3139_s10] sm:$0xff]  }
 0x71e   : > { %1577 = vmatprep.subr.bf16.mxu1 %v2491_v12  ;;  %v1392_v12 = vrot.slane %v1387_v11, %v516_v31 }
 0x721   : > { %1578 = vmatpush1.bf16.msra.mxu1 %v2489_v14  ;;  %v1396_v14 = vrot.slane %v1387_v11, %v520_v30 }
 0x722   : > { %1579 = vmatprep.subr.bf16.mxu1 %v2497_v16 }
 0x725   : > { %1580 = vmatpush1.bf16.msra.mxu1 %v2495_v18 }
 0x726   : > { %1581 = vmatprep.subr.bf16.mxu1 %v2503_v20 }
 0x729   : > { %1582 = vmatpush1.bf16.msra.mxu1 %v2501_v22 }
 0x72a   : > { %1583 = vmatprep.subr.bf16.mxu1 %v2509_v26 }
 0x72d   : > { %1584 = vmatpush1.bf16.msra.mxu1 %v2507_v28 }
 0x72e   : > { %2279 = vmatprep.subr.bf16.mxu1 %v2513_v4 }
 0x79e   : > { %v1329_v63 = vpop.xlane.xlu1 %1328 }
 0x79f   : > { %v1331_v0 = vmul.f32 0.0078125, %v1329_v63  ;;  %v2535_v63 = vld [vmem:[%s3139_s10 + $0x10] sm:$0xff]  }
 0x7a1   : > { %v1332_v1 = vsub.f32 %v1325_v56, %v1331_v0  ;;  %v2524_v56 = vld [vmem:[%s3139_s10 + $0xa8] sm:$0xff]   ;;  %v2536_v0 = vld [vmem:[%s3139_s10 + $0x90] sm:$0xff]  }
 0x7a3   : > { %v1333_v3 = vmul.f32 %v1332_v1, %v1332_v1 }
 0x7a5   : > { %1334 = vadd.xlane.f32.xlu0 %v1333_v3  ;;  %v2538_v3 = vld [vmem:[%s3139_s10 + $0xc8] sm:$0xff]  }
 0x82e   : > { %v1335_v33 = vpop.xlane.xlu0 %1334 }
 0x82f   : > { %v1336_v34 = vmul.f32 0.0078125, %v1335_v33 }
 0x831   : > { %v1337_v35 = vadd.f32 1e-05, %v1336_v34 }
 0x833   : > { %2561 = vrsqrt.f32 %v1337_v35 }
 0x840   : > { %v2562_v36 = vpop.eup %2561 }
 0x841   : > { %v1339_v38 = vmul.f32 %v2562_v36, %v1332_v1  ;;  %v2537_v1 = vld [vmem:[%s3139_s10 + $0x48] sm:$0xff]  }
 0x843   : > { %v1346_v40 = vmul.f32 %v2174_v37, %v1339_v38 }
 0x845   : > { %v3001_v41 = vadd.f32 %v2175_v39, %v1346_v40 }
 0x847   : > { %v1354_v42 = vpack.c.bf16 %v3001_v41, %v3001_v41 }
 0x849   : > { %1602 = vmatmul.mubr.bf16.vlgmr.msra.gmra.mxu1 %v1354_v42  ;;  %1643 = vmatmul.mubr.bf16.vlgmr.msra.gmra.mxu0 %v1354_v42 }
 0x84a   : > { %2280 = vmatpush3.bf16.msra.mxu1 %v2515_v45  ;;  %2302 = vmatpush3.bf16.msra.mxu0 %v2516_v46 }
 0x84b   : > { %2281 = vmatprep.subr.bf16.mxu1 %v2517_v47  ;;  %2303 = vmatprep.subr.bf16.mxu0 %v2518_v48 }
 0x84e   : > { %2282 = vmatpush3.bf16.msra.mxu1 %v2519_v50  ;;  %2304 = vmatpush3.bf16.msra.mxu0 %v2520_v51 }
 0x84f   : > { %2283 = vmatprep.subr.bf16.mxu1 %v2521_v52  ;;  %2305 = vmatprep.subr.bf16.mxu0 %v2522_v53 }
 0x852   : > { %2284 = vmatpush3.bf16.msra.mxu1 %v2523_v55  ;;  %2306 = vmatpush3.bf16.msra.mxu0 %v2524_v56 }
 0x853   : > { %2285 = vmatprep.subr.bf16.mxu1 %v2525_v57  ;;  %2307 = vmatprep.subr.bf16.mxu0 %v2526_v58 }
 0x856   : > { %2286 = vmatpush3.bf16.msra.mxu1 %v2527_v24  ;;  %2308 = vmatpush3.bf16.msra.mxu0 %v2528_v2 }
 0x857   : > { %2287 = vmatprep.subr.bf16.mxu1 %v2529_v59  ;;  %2309 = vmatprep.subr.bf16.mxu0 %v2530_v54 }
 0x85a   : > { %2288 = vmatpush3.bf16.msra.mxu1 %v2531_v23  ;;  %2310 = vmatpush3.bf16.msra.mxu0 %v2532_v60 }
 0x85b   : > { %2289 = vmatprep.subr.bf16.mxu1 %v2533_v61  ;;  %2311 = vmatprep.subr.bf16.mxu0 %v2534_v62 }
 0x85e   : > { %2290 = vmatpush3.bf16.msra.mxu1 %v2535_v63  ;;  %2312 = vmatpush3.bf16.msra.mxu0 %v2536_v0 }
 0x85f   : > { %2291 = vmatprep.subr.bf16.mxu1 %v2537_v1  ;;  %2313 = vmatprep.subr.bf16.mxu0 %v2538_v3 }
 0x862   : > { %2292 = vmatpush3.bf16.msra.mxu1 %v2539_v5  ;;  %2314 = vmatpush3.bf16.msra.mxu0 %v2540_v6 }
 0x863   : > { %2293 = vmatprep.subr.bf16.mxu1 %v2541_v7  ;;  %2315 = vmatprep.subr.bf16.mxu0 %v2542_v8  ;;  %v2208_v8 = vld [vmem:[%s3140_s11] ss:$0 sm:$0xff] }
 0x866   : > { %2294 = vmatpush3.bf16.msra.mxu1 %v2543_v9  ;;  %2316 = vmatpush3.bf16.msra.mxu0 %v2544_v10 }
 0x909   : > { %v1603_v16 = vpop.f32.mrf.mxu1  ;;  %v1644_v17 = vpop.f32.mrf.mxu0 }
 0x90a   : > { %v1604_v18 = vadd.f32 %v1603_v16, %v1392_v12  ;;  %v1645_v19 = vadd.f32 %v1644_v17, %v1400_v13 }
 0x90b   : > { %v1605_v20 = vpop.f32.mrf.mxu1  ;;  %v1646_v21 = vpop.f32.mrf.mxu0 }
 0x90c   : > { %v1655_v22 = vmul.f32 0.044715, %v1604_v18  ;;  %v1657_v25 = vmul.f32 0.044715, %v1645_v19  ;;  %v1606_v26 = vadd.f32 %v1605_v20, %v1396_v14  ;;  %v1647_v27 = vadd.f32 %v1646_v21, %v1404_v15 }
 0x90d   : > { %v1607_v28 = vpop.f32.mrf.mxu1  ;;  %v1648_v32 = vpop.f32.mrf.mxu0  ;;  %v1651_v56 = vmul.f32 0.5, %v1604_v18  ;;  %v1653_v59 = vmul.f32 0.5, %v1645_v19 }
 0x90e   : > { %v1659_v31 = vmul.f32 %v1655_v22, %v1604_v18  ;;  %v1661_v33 = vmul.f32 %v1657_v25, %v1645_v19  ;;  %v1656_v34 = vmul.f32 0.044715, %v1606_v26  ;;  %v1658_v44 = vmul.f32 0.044715, %v1647_v27  ;;  %v2241_v32 = vld [vmem:[%s3141_s12] ss:$0 sm:$0xff] }
 0x90f   : > { %v1608_v35 = vpop.f32.mrf.mxu1  ;;  %v1649_v29 = vpop.f32.mrf.mxu0  ;;  %v1652_v24 = vmul.f32 0.5, %v1606_v26  ;;  %v1654_v54 = vmul.f32 0.5, %v1647_v27 }
 0x910   : > { %v1663_v30 = vmul.f32 %v1659_v31, %v1604_v18  ;;  %v1665_v36 = vmul.f32 %v1661_v33, %v1645_v19  ;;  %v1660_v37 = vmul.f32 %v1656_v34, %v1606_v26  ;;  %v1662_v38 = vmul.f32 %v1658_v44, %v1647_v27 }
 0x912   : > { %v1667_v39 = vadd.f32 %v1663_v30, %v1604_v18  ;;  %v1669_v40 = vadd.f32 %v1665_v36, %v1645_v19  ;;  %v1664_v42 = vmul.f32 %v1660_v37, %v1606_v26  ;;  %v1666_v4 = vmul.f32 %v1662_v38, %v1647_v27 }
 0x914   : > { %v1671_v43 = vmul.f32 0.7978846, %v1667_v39  ;;  %v1673_v45 = vmul.f32 0.7978846, %v1669_v40  ;;  %v1668_v46 = vadd.f32 %v1664_v42, %v1606_v26  ;;  %v1670_v47 = vadd.f32 %v1666_v4, %v1647_v27 }
 0x916   : > { %v1672_v48 = vmul.f32 0.7978846, %v1668_v46  ;;  %v1674_v50 = vmul.f32 0.7978846, %v1670_v47  ;;  %2563 = vtanh.f32 %v1671_v43 }
 0x917   : > { %2565 = vtanh.f32 %v1673_v45 }
 0x918   : > { %2567 = vtanh.f32 %v1672_v48 }
 0x919   : > { %2569 = vtanh.f32 %v1674_v50 }
 0x923   : > { %v2564_v51 = vpop.eup %2563 }
 0x924   : > { %v2566_v52 = vpop.eup %2565  ;;  %v1679_v53 = vadd.f32 1.0, %v2564_v51 }
 0x925   : > { %v2568_v55 = vpop.eup %2567  ;;  %v1681_v57 = vadd.f32 1.0, %v2566_v52 }
 0x926   : > { %v2570_v58 = vpop.eup %2569  ;;  %v1680_v2 = vadd.f32 1.0, %v2568_v55  ;;  %v1683_v60 = vmul.f32 %v1679_v53, %v1651_v56 }
 0x927   : > { %v1682_v23 = vadd.f32 1.0, %v2570_v58  ;;  %v1685_v62 = vmul.f32 %v1681_v57, %v1653_v59 }
 0x928   : > { %v1684_v61 = vmul.f32 %v1680_v2, %v1652_v24  ;;  %v1687_v3 = vpack.c.bf16 %v1683_v60, %v1683_v60 }
 0x929   : > { %v1686_v63 = vmul.f32 %v1682_v23, %v1654_v54  ;;  %v1689_v5 = vpack.c.bf16 %v1685_v62, %v1685_v62 }
 0x92a   : > { %v1688_v0 = vpack.c.bf16 %v1684_v61, %v1684_v61 }
 0x92b   : > { %v1690_v1 = vpack.c.bf16 %v1686_v63, %v1686_v63 }
 0x92c   : > { %1986 = vmatprep.mubr.bf16.mxu1 %v1688_v0 }
 0x92d   : > { %2026 = vmatprep.mubr.bf16.mxu0 %v1690_v1  ;;  %1987 = vmatmul.mubr.bf16.vlgmr.msra.gmra.mxu1 %v1687_v3 }
 0x92e   : > { %2027 = vmatmul.mubr.bf16.vlgmr.msra.gmra.mxu0 %v1689_v5 }
 0x9ed   : > { %v2295_v6 = vpop.f32.mrf.mxu1 }
 0x9ee   : > { %v2317_v7 = vpop.f32.mrf.mxu0 }
 0x9ef   : > { %v2296_v9 = vpop.f32.mrf.mxu1 }
 0x9f0   : > { %v2297_v10 = vadd.f32 %v2296_v9, %v2295_v6  ;;  %v2318_v11 = vpop.f32.mrf.mxu0 }
 0x9f1   : > { %v2298_v49 = vpop.f32.mrf.mxu1  ;;  %v2319_v13 = vadd.f32 %v2318_v11, %v2317_v7 }
 0x9f2   : > { %v1989_v12 = vadd.f32 %v2297_v10, %v2208_v8  ;;  %v2320_v14 = vpop.f32.mrf.mxu0 }
 0x9f3   : > { %v2299_v15 = vpop.f32.mrf.mxu1 }
 0x9f4   : > { %v2029_v16 = vadd.f32 %v2319_v13, %v1989_v12  ;;  %v2321_v17 = vpop.f32.mrf.mxu0 }
 0x9f6   : > { %v2034_v18 = vadd.f32 %v2029_v16, %v3001_v41  ;;  %v2242_v41 = vld [vmem:[%s3142_s13] ss:$0 sm:$0xff] }
 0x9f8   : > { %2037 = vadd.xlane.f32.xlu0 %v2034_v18 }
 0xa81   : > { %v2038_v19 = vpop.xlane.xlu0 %2037 }
 0xa82   : > { %v2039_v20 = vmul.f32 0.0078125, %v2038_v19 }
 0xa84   : > { %v2040_v21 = vsub.f32 %v2034_v18, %v2039_v20 }
 0xa86   : > { %v2041_v22 = vmul.f32 %v2040_v21, %v2040_v21 }
 0xa88   : > { %2042 = vadd.xlane.f32.xlu1 %v2041_v22 }
 0xb11   : > { %v2043_v25 = vpop.xlane.xlu1 %2042 }
 0xb12   : > { %v2044_v26 = vmul.f32 0.0078125, %v2043_v25 }
 0xb14   : > { %v2045_v27 = vadd.f32 1e-05, %v2044_v26 }
 0xb16   : > { %2571 = vrsqrt.f32 %v2045_v27 }
 0xb23   : > { %v2572_v28 = vpop.eup %2571 }
 0xb24   : > { %v2047_v31 = vmul.f32 %v2572_v28, %v2040_v21 }
 0xb26   : > { %v2054_v33 = vmul.f32 %v2241_v32, %v2047_v31 }
 0xb28   : > { %v2061_v34 = vadd.f32 %v2242_v41, %v2054_v33 }
 0xb2a   : > { %2062 = vst [vmem:[%s476_s17] sm:$0xff] %v2061_v34 }
 0xb2b PF: > { %s24_s29 = sadd.s32 1, %s2579_s29  }
 0xb2c   : > { %p21_p4 = scmp.ge.s32.totalorder %s24_s29, 4  }
 0xb2e   :  { %23 = sbr.rel (!%p21_p4) target bundleno = 1 (0x1), region = 109 }

// kernel: seq_classification_forward.5
= control target key start
LH: loop header
LB: loop body
LE: loop exit
PB: predicated region body
PF: predicated region fallthrough
CT: control target
= control target key end

     0   :  { %19 = vsyncpa [#allocation3], 0  ;;  %s3197_s0 = inlined_call_operand.vmem [shape: f32[16,128], index: 0, kind: input, shape index: {}]   ;;  %s3198_s1 = inlined_call_operand.vmem [shape: f32[2,1,8], index: 1, kind: input, shape index: {}]   ;;  %s3199_s2 = inlined_call_operand.vmem [shape: bf16[128,384], index: 2, kind: input, shape index: {}]   ;;  %s3200_s3 = inlined_call_operand.vmem [shape: f32[1,384], index: 3, kind: input, shape index: {}]   ;;  %s3201_s4 = inlined_call_operand.hbm [shape: bf16[128,128], index: 4, kind: input, shape index: {}]   ;;  %s3202_s5 = inlined_call_operand.vmem [shape: f32[1,128], index: 5, kind: input, shape index: {}]   ;;  %s3203_s6 = inlined_call_operand.vmem [shape: f32[1,128], index: 6, kind: input, shape index: {}]   ;;  %s3204_s7 = inlined_call_operand.vmem [shape: f32[1,128], index: 7, kind: input, shape index: {}]   ;;  %s3205_s8 = inlined_call_operand.vmem [shape: bf16[128,512], index: 8, kind: input, shape index: {}]   ;;  %s3206_s9 = inlined_call_operand.vmem [shape: f32[1,512], index: 9, kind: input, shape index: {}]   ;;  %s3207_s10 = inlined_call_operand.hbm [shape: bf16[512,128], index: 10, kind: input, shape index: {}]   ;;  %s3208_s11 = inlined_call_operand.vmem [shape: f32[1,128], index: 11, kind: input, shape index: {}]   ;;  %s3209_s12 = inlined_call_operand.vmem [shape: f32[1,128], index: 12, kind: input, shape index: {}]   ;;  %s3210_s13 = inlined_call_operand.vmem [shape: f32[1,128], index: 13, kind: input, shape index: {}]   ;;  %s3211_s14 = inlined_call_operand.vmem [shape: f32[16,128], index: 14, kind: output, shape index: {}]  }
   0x1   :  { %20 = vsyncpa [#allocation5], 0  ;;  %s2805_s29 = smov 0  }
   0x2 LB: > { %s2811_s30 = sadd.s32 4294967295, %s2718_s29   ;;  %p2179_p0 = scmp.ge.s32.totalorder %s2718_s29, 1  ;;  %s2718_s29 = sphi %s2805_s29, %s26_s29  }
   0x3   : > { %p361_p1 = scmp.lt.s32.totalorder %s2718_s29, 3  ;;  %s2720_s15 = smov [#allocation2]  }
   0x4   : > { %s379_s16 = sshll.u32 %s2720_s15, 4  ;;  %p2482_p3 = scmp.eq.s32.totalorder %s2811_s30, 0  ;;  %s380_s16 = int_to_ptr.vmem [resolvable:$true] %s379_s16 }
   0x5   : > { %p2815_p2 = pnand %p2179_p0, %p361_p1  ;;  %s2721_s18 = smov [#allocation4]  }
   0x6   : > { %s407_s19 = sshll.u32 %s2721_s18, 4  ;;  %s2663_s21 = scalar_lea.vmem %s380_s16, 1024  ;;  %s408_s19 = int_to_ptr.vmem [resolvable:$true] %s407_s19 }
   0x7   : > { %p2475_p4 = pneg %p2815_p2  ;;  %p2664_p7 = scmp.ne.s32.totalorder %s380_s16, %s2663_s21 }
   0x8   : > { %p2671_p10 = scmp.lt.s32.totalorder %s380_s16, %s380_s16  ;;  %p2672_p11 = scmp.lt.s32.totalorder %s2663_s21, %s2663_s21 }
   0x9   : > { %p2824_p5 = pnand %p2482_p3, %p2475_p4 }
   0xa   : > { %p2673_p12 = por %p2672_p11, %p2671_p10 }
   0xb   : > { %p2654_p6 = pneg %p2824_p5 }
   0xd   : > { %p2666_p8 = pnand %p2664_p7, %p2654_p6 }
   0xf   : > { %p2667_p9 = pneg %p2666_p8 }
  0x11   : > { %p2674_p13 = pnand %p2673_p12, %p2667_p9 }
  0x13   : > { %2677 = shalt.err (!%p2674_p13)
}
  0x14   : > { %s2722_s22 = smov 64   ;;  %s2723_s23 = smov 4  }
  0x15   : > { %2478 = dma.hbm_to_vmem [thread:$0]  (!%p2824_p5), %s3201_s4, 1024, %s380_s16, [#allocation3], %s2722_s22, %s2722_s22, %s2723_s23  }
  0x16   : > { %s2689_s26 = scalar_lea.vmem %s408_s19, 4096  ;;  %p2697_p7 = scmp.lt.s32.totalorder %s408_s19, %s408_s19 }
  0x17   : > { %p2690_p0 = scmp.ne.s32.totalorder %s408_s19, %s2689_s26  ;;  %p2698_p8 = scmp.lt.s32.totalorder %s2689_s26, %s2689_s26 }
  0x19   : > { %p2692_p1 = pnand %p2690_p0, %p2654_p6  ;;  %p2699_p10 = por %p2698_p8, %p2697_p7 }
  0x1b   : > { %p2693_p4 = pneg %p2692_p1 }
  0x1d   : > { %p2700_p9 = pnand %p2699_p10, %p2693_p4 }
  0x1f   : > { %2703 = shalt.err (!%p2700_p9)
}
  0x20   : > { %2481 = dma.hbm_to_vmem [thread:$0]  (!%p2824_p5), %s3207_s10, 4096, %s408_s19, [#allocation5], %s2722_s22, %s2722_s22, %s2723_s23  }
  0x21   : > { %445 = sbr.rel (%p2815_p2) target bundleno = 2890 (0xb4a), region = 76 }
  0x26   : > { %2709 = dma.done.wait (%p2482_p3), [#allocation3], 1024  }
  0x27   : > { %2711 = vsyncadd (%p2482_p3), [#allocation3], 4294966272 }
  0x28   : > { %2713 = dma.done.wait (%p2482_p3), [#allocation5], 4096  }
  0x29   : > { %2715 = vsyncadd (%p2482_p3), [#allocation5], 4294963200  ;;  %v2724_v0 = vmov 0   ;;  %v2725_v1 = vmov 0.0   ;;  %v2504_v2 = vld [vmem:[%s3199_s2 + $0xac] ss:$12 sps:$4 sm:$0xff]   ;;  %v544_v28 = vlaneseq }
  0x2a   : > { %719 = vmatprep.mubr.bf16.mxu0 %v2724_v0  ;;  %2379 = vmatprep.subr.bf16.mxu1 %v2725_v1  ;;  %v2506_v3 = vld [vmem:[%s3199_s2 + $0xa8] ss:$12 sps:$4 sm:$0xff]   ;;  %v2509_v5 = vld [vmem:[%s3199_s2 + $0x90] ss:$12 sps:$4 sm:$0xff]   ;;  %p496_p2 = scmp.lt.s32.totalorder %s2811_s30, 1  ;;  %vm2726_vm0 = vmmov 0  }
  0x2b   : > { %687 = vmatprep.subr.bf16.mxu0 %v2504_v2  ;;  %v2507_v4 = vld [vmem:[%s3199_s2 + $0x94] ss:$12 sps:$4 sm:$0xff]   ;;  %v2510_v6 = vld [vmem:[%s3199_s2 + $0x7c] ss:$12 sps:$4 sm:$0xff]   ;;  %v2512_v7 = vld [vmem:[%s3199_s2 + $0x78] ss:$12 sps:$4 sm:$0xff]   ;;  %2395 = vmatprep.mubr.msk.bf16.mxu1 %vm2726_vm0, %v2725_v1 }
  0x2c   : > { %688 = vmatpush1.bf16.msra.mxu0 %v2506_v3  ;;  %v2513_v8 = vld [vmem:[%s3199_s2 + $0x64] ss:$12 sps:$4 sm:$0xff]   ;;  %v2515_v9 = vld [vmem:[%s3199_s2 + $0x60] ss:$12 sps:$4 sm:$0xff]   ;;  %s3215_s30 = smov (!%p496_p2, %s2811_s30), 1  ;;  %v2959_v29 = vshrl.u32 %v544_v28, 7 }
  0x2d   : > { %689 = vmatprep.subr.bf16.mxu0 %v2507_v4  ;;  %v2528_v10 = vld [vmem:[%s3199_s2 + $0xb0] ss:$12 sps:$4 sm:$0xff]   ;;  %v2516_v11 = vld [vmem:[%s3199_s2 + $0x4c] ss:$12 sps:$4 sm:$0xff]   ;;  %s2186_s23 = sshll.u32 %s3215_s30, 3  ;;  %vm772_vm1 = vcmask 261120   ;;  %s502_s20 = scalar_lea.vmem %s3198_s1, %s3215_s30 }
  0x2e   : > { %2380 = vmatpush3.bf16.msra.mxu1 %v2528_v10  ;;  %v2529_v12 = vld [vmem:[%s3199_s2 + $0x98] ss:$12 sps:$4 sm:$0xff]   ;;  %v2518_v13 = vld [vmem:[%s3199_s2 + $0x48] ss:$12 sps:$4 sm:$0xff]   ;;  %v2521_v15 = vld [vmem:[%s3199_s2 + $0x30] ss:$12 sps:$4 sm:$0xff]   ;;  %s499_s15 = scalar_lea.vmem %s3197_s0, %s2186_s23  ;;  %s506_s24 = scalar_lea.vmem %s3211_s14, %s2186_s23 }
  0x2f   : > { %2381 = vmatprep.subr.bf16.mxu1 %v2725_v1  ;;  %v2519_v14 = vld [vmem:[%s3199_s2 + $0x34] ss:$12 sps:$4 sm:$0xff]   ;;  %v2522_v17 = vld [vmem:[%s3199_s2 + $0x1c] ss:$12 sps:$4 sm:$0xff]   ;;  %v2524_v19 = vld [vmem:[%s3199_s2 + $0x18] ss:$12 sps:$4 sm:$0xff]  }
  0x30   : > { %690 = vmatpush1.bf16.msra.mxu0 %v2509_v5  ;;  %v2530_v16 = vld [vmem:[%s3199_s2 + $0x80] ss:$12 sps:$4 sm:$0xff]   ;;  %v2531_v18 = vld [vmem:[%s3199_s2 + $0x68] ss:$12 sps:$4 sm:$0xff]   ;;  %v2525_v20 = vld [vmem:[%s3199_s2 + $0x4] ss:$12 sps:$4 sm:$0xff]  }
  0x31   : > { %691 = vmatprep.subr.bf16.mxu0 %v2510_v6  ;;  %v2532_v21 = vld [vmem:[%s3199_s2 + $0x50] ss:$12 sps:$4 sm:$0xff]   ;;  %v2527_v22 = vld [vmem:[%s3199_s2] ss:$12 sps:$4 sm:$0xff]   ;;  %v2533_v24 = vld [vmem:[%s3199_s2 + $0x38] ss:$12 sps:$4 sm:$0xff]  }
  0x32   : > { %2382 = vmatpush3.bf16.msra.mxu1 %v2529_v12  ;;  %v2934_v23 = vld [vmem:[%s499_s15] sm:$0xff]  ;;  %v2535_v27 = vld [vmem:[%s3199_s2 + $0x8] ss:$12 sps:$4 sm:$0xff]   ;;  %v550_v30 = vsub.s32 1, %v2959_v29  ;;  %v546_v31 = vsub.s32 0, %v2959_v29  ;;  %s2727_s15 = smov 96  }
  0x33   : > { %2383 = vmatprep.subr.bf16.mxu1 %v2725_v1  ;;  %v509_v25 = vpack.c.bf16 %v2934_v23, %v2934_v23  ;;  %v2534_v26 = vld [vmem:[%s3199_s2 + $0x20] ss:$12 sps:$4 sm:$0xff]   ;;  %s2728_s16 = smov 64   ;;  %s2729_s17 = smov 32   ;;  %v554_v44 = vsub.s32 2, %v2959_v29  ;;  %vm843_vm2 = vcmask 1043456  }
  0x34   : > { %692 = vmatpush1.bf16.msra.mxu0 %v2512_v7  ;;  %v542_v32 = vld [vmem:[%s3200_s3] sm:$0x7]  ;;  %vm827_vm3 = vcmask 64512   ;;  %vm1239_vm4 = vcmask 523264   ;;  %vm1241_vm5 = vcmask 785408  }
  0x35   : > { %693 = vmatprep.subr.bf16.mxu0 %v2513_v8  ;;  %v551_v33 = vrot.slane %v542_v32, %v550_v30  ;;  %v547_v35 = vrot.slane %v542_v32, %v546_v31  ;;  %v555_v45 = vrot.slane %v542_v32, %v554_v44  ;;  %v2992_v54 = vld [vmem:[%s502_s20] ss:$0 sm:$0xff] }
  0x36   : > { %2384 = vmatpush3.bf16.msra.mxu1 %v2530_v16 }
  0x37   : > { %2385 = vmatprep.subr.bf16.mxu1 %v2725_v1 }
  0x38   : > { %694 = vmatpush1.bf16.msra.mxu0 %v2515_v9 }
  0x39   : > { %695 = vmatprep.subr.bf16.mxu0 %v2516_v11 }
  0x3a   : > { %2386 = vmatpush3.bf16.msra.mxu1 %v2531_v18 }
  0x3b   : > { %2387 = vmatprep.subr.bf16.mxu1 %v2725_v1 }
  0x3c   : > { %696 = vmatpush1.bf16.msra.mxu0 %v2518_v13 }
  0x3d   : > { %697 = vmatprep.subr.bf16.mxu0 %v2519_v14 }
  0x3e   : > { %2388 = vmatpush3.bf16.msra.mxu1 %v2532_v21 }
  0x3f   : > { %2389 = vmatprep.subr.bf16.mxu1 %v2725_v1 }
  0x40   : > { %698 = vmatpush1.bf16.msra.mxu0 %v2521_v15 }
  0x41   : > { %699 = vmatprep.subr.bf16.mxu0 %v2522_v17 }
  0x42   : > { %2390 = vmatpush3.bf16.msra.mxu1 %v2533_v24 }
  0x43   : > { %2391 = vmatprep.subr.bf16.mxu1 %v2725_v1 }
  0x44   : > { %700 = vmatpush1.bf16.msra.mxu0 %v2524_v19 }
  0x45   : > { %701 = vmatprep.subr.bf16.mxu0 %v2525_v20 }
  0x46   : > { %2392 = vmatpush3.bf16.msra.mxu1 %v2534_v26 }
  0x47   : > { %2393 = vmatprep.subr.bf16.mxu1 %v2725_v1 }
  0x48   : > { %702 = vmatpush1.bf16.msra.mxu0 %v2527_v22 }
  0x49   : > { %2423 = vmatprep.subr.bf16.mxu0 %v2725_v1 }
  0x4a   : > { %2394 = vmatpush3.bf16.msra.mxu1 %v2535_v27 }
  0x4b   : > { %720 = vmatmul.mubr.bf16.vlgmr.msra.gmra.mxu0 %v509_v25  ;;  %2399 = vmatprep.subr.bf16.mxu1 %v2725_v1 }
  0x4c   : > { %2425 = vmatprep.mubr.msk.bf16.mxu0 %vm2726_vm0, %v2725_v1 }
  0x4d   : > { %2396 = vmatmul.mubr.bf16.vlgmr.msra.gmra.mxu1 %v509_v25 }
  0x4e   : > { %2401 = vmatprep.mubr.msk.bf16.mxu1 %vm2726_vm0, %v2725_v1 }
 0x10b   : > { %v721_v34 = vpop.f32.mrf.mxu0 }
 0x10c   : > { %v722_v39 = vadd.f32 %v721_v34, %v547_v35 }
 0x10d   : > { %v723_v36 = vpop.f32.mrf.mxu0  ;;  %v762_v46 = vpop.f32.mrf.mxu1 }
 0x10e   : > { %v724_v37 = vadd.f32 %v723_v36, %v551_v33  ;;  %v768_v43 = vpack.c.bf16 %v722_v39, %v722_v39  ;;  %v763_v47 = vadd.f32 %v762_v46, %v555_v45 }
 0x10f   : > { %v725_v38 = vpop.f32.mrf.mxu0  ;;  %v2397_v48 = vpop.f32.mrf.mxu1 }
 0x110   : > { %v769_v40 = vpack.c.bf16 %v724_v37, %v724_v37  ;;  %v2983_v49 = vpack.c.bf16 %v763_v47, %v763_v47 }
 0x111   : > { %v726_v41 = vpop.f32.mrf.mxu0  ;;  %v765_v50 = vpop.f32.mrf.mxu1 }
 0x112   : > { %891 = vrot.lane.b32.xlu1 %v769_v40, %s2727_s15  ;;  %v777_v42 = vsel %vm772_vm1, %v769_v40, 0  ;;  %v845_v51 = vsel %vm843_vm2, %v2983_v49, 0 }
 0x113   : > { %2400 = vmatpush3.bf16.xpose.msra.mxu1 %v777_v42  ;;  %v2398_v52 = vpop.f32.mrf.mxu1 }
 0x114   : > { %2405 = vmatprep.subr.bf16.mxu1 %v2725_v1 }
 0x116   : > { %888 = vrot.lane.b32.xlu1 %v768_v43, %s2727_s15 }
 0x11a   : > { %1002 = vrot.lane.b32.xlu1 %v768_v43, %s2728_s16  ;;  %2402 = vmatmul.mubr.msk.bf16.vlgmr.msra.gmra.mxu1 %vm772_vm1, %v768_v43 }
 0x11b   : > { %2407 = vmatprep.mubr.msk.bf16.mxu1 %vm2726_vm0, %v2725_v1  ;;  %2406 = vmatpush3.bf16.msra.mxu1 %v845_v51 }
 0x11c   : > { %2411 = vmatprep.subr.bf16.mxu1 %v2725_v1 }
 0x11e   : > { %1116 = vrot.lane.b32.xlu1 %v769_v40, %s2729_s17 }
 0x122   : > { %1114 = vrot.lane.b32.xlu1 %v768_v43, %s2729_s17 }
 0x184   : > { %v892_v4 = vpop.permute.xlu1 %891 }
 0x185   : > { %v897_v15 = vsel %vm772_vm1, %v892_v4, 0 }
 0x188   : > { %v889_v5 = vpop.permute.xlu1 %888 }
 0x18c   : > { %v1003_v7 = vpop.permute.xlu1 %1002 }
 0x190   : > { %v1117_v10 = vpop.permute.xlu1 %1116 }
 0x191   : > { %v1122_v11 = vsel %vm772_vm1, %v1117_v10, 0 }
 0x194   : > { %v1115_v16 = vpop.permute.xlu1 %1114 }
 0x1da   : > { %v813_v53 = vpop.f32.mrf.mxu1 }
 0x1db   : > { %v819_v55 = vmul.f32 0.17677669, %v813_v53 }
 0x1dc   : > { %v2403_v56 = vpop.f32.mrf.mxu1 }
 0x1dd   : > { %v826_v57 = vadd.f32 %v2992_v54, %v819_v55 }
 0x1de   : > { %v816_v58 = vpop.f32.mrf.mxu1 }
 0x1df   : > { %v828_v59 = vsel %vm827_vm3, %v826_v57, -inf }
 0x1e0   : > { %829 = vmax.xlane.f32.xlu0 %v828_v59  ;;  %v2404_v60 = vpop.f32.mrf.mxu1 }
 0x269   : > { %v830_v61 = vpop.xlane.xlu0 %829 }
 0x26a   : > { %v831_v62 = vsub.f32 %v826_v57, %v830_v61 }
 0x26c   : > { %v832_v63 = vmul.f32 1.442695, %v831_v62 }
 0x26e   : > { %2624 = vpow2.f32 %v832_v63 }
 0x27b   : > { %v2625_v2 = vpop.eup %2624 }
 0x27c   : > { %v834_v3 = vsel %vm827_vm3, %v2625_v2, 0.0 }
 0x27d   : > { %835 = vadd.xlane.f32.xlu0 %v834_v3 }
 0x293   : > { %1004 = vrot.lane.b32.xlu0 %v769_v40, %s2728_s16 }
 0x306   : > { %v836_v6 = vpop.xlane.xlu0 %835 }
 0x307   : > { %2626 = vrcp.f32 %v836_v6 }
 0x30a   : > { %v1005_v8 = vpop.permute.xlu0 %1004 }
 0x30b   : > { %v1010_v9 = vsel %vm772_vm1, %v1005_v8, 0 }
 0x30c   : > { %2424 = vmatpush3.bf16.xpose.msra.mxu0 %v1010_v9 }
 0x30d   : > { %2435 = vmatprep.subr.bf16.mxu0 %v2725_v1 }
 0x313   : > { %2426 = vmatmul.mubr.msk.bf16.vlgmr.msra.gmra.mxu0 %vm772_vm1, %v1003_v7 }
 0x314   : > { %v2627_v12 = vpop.eup %2626  ;;  %2436 = vmatpush3.bf16.xpose.msra.mxu0 %v1122_v11  ;;  %2437 = vmatprep.mubr.msk.bf16.mxu0 %vm2726_vm0, %v2725_v1 }
 0x315   : > { %v838_v13 = vmul.f32 %v2627_v12, %v2625_v2  ;;  %2447 = vmatprep.subr.bf16.mxu0 %v2725_v1 }
 0x317   : > { %v839_v14 = vpack.c.bf16 %v838_v13, %v838_v13 }
 0x319   : > { %2408 = vmatmul.mubr.msk.bf16.vlgmr.msra.gmra.mxu1 %vm827_vm3, %v839_v14 }
 0x31a   : > { %2412 = vmatpush3.bf16.xpose.msra.mxu1 %v897_v15  ;;  %2413 = vmatprep.mubr.msk.bf16.mxu1 %vm2726_vm0, %v2725_v1 }
 0x31b   : > { %2438 = vmatmul.mubr.msk.bf16.vlgmr.msra.gmra.mxu0 %vm772_vm1, %v1115_v16  ;;  %2417 = vmatprep.subr.bf16.mxu1 %v2725_v1 }
 0x31c   : > { %2463 = vmatprep.mubr.msk.bf16.mxu0 %vm2726_vm0, %v2725_v1 }
 0x321   : > { %2414 = vmatmul.mubr.msk.bf16.vlgmr.msra.gmra.mxu1 %vm772_vm1, %v889_v5 }
 0x322   : > { %2419 = vmatprep.mubr.msk.bf16.mxu1 %vm2726_vm0, %v2725_v1 }
 0x3d3   : > { %v1046_v17 = vpop.f32.mrf.mxu0 }
 0x3d4   : > { %v1052_v18 = vmul.f32 0.17677669, %v1046_v17 }
 0x3d5   : > { %v2427_v19 = vpop.f32.mrf.mxu0 }
 0x3d6   : > { %v1053_v20 = vadd.f32 %v2992_v54, %v1052_v18  ;;  %v2536_v18 = vld [vmem:[#allocation2 + $0x38] sm:$0xff]   ;;  %v2537_v19 = vld [vmem:[#allocation2 + $0x30] sm:$0xff]  }
 0x3d7   : > { %v1049_v21 = vpop.f32.mrf.mxu0  ;;  %2448 = vmatpush3.bf16.msra.mxu0 %v2536_v18  ;;  %v2574_v18 = vld [vmem:[%s3205_s8 + $0x40] ss:$16 sps:$4 sm:$0xff]  }
 0x3d8   : > { %v1054_v22 = vsel %vm827_vm3, %v1053_v20, -inf  ;;  %2449 = vmatprep.subr.bf16.mxu0 %v2725_v1  ;;  %v2539_v21 = vld [vmem:[#allocation2 + $0x20] sm:$0xff]  }
 0x3d9   : > { %1055 = vmax.xlane.f32.xlu0 %v1054_v22  ;;  %v3018_v24 = vpop.f32.mrf.mxu1  ;;  %v2428_v25 = vpop.f32.mrf.mxu0  ;;  %v2540_v22 = vld [vmem:[#allocation2 + $0x18] sm:$0xff]  }
 0x3da   : > { %v2541_v25 = vld [vmem:[#allocation2 + $0x10] sm:$0xff]  }
 0x3db   : > { %v2409_v26 = vpop.f32.mrf.mxu1  ;;  %v1158_v27 = vpop.f32.mrf.mxu0  ;;  %2450 = vmatpush3.bf16.msra.mxu0 %v2537_v19  ;;  %v2577_v19 = vld [vmem:[%s3205_s8 + $0x48] ss:$16 sps:$4 sm:$0xff]  }
 0x3dc   : > { %v1164_v37 = vmul.f32 0.17677669, %v1158_v27  ;;  %2451 = vmatprep.subr.bf16.mxu0 %v2725_v1  ;;  %v2542_v26 = vld [vmem:[#allocation2 + $0x8] sm:$0xff]  }
 0x3dd   : > { %v884_v28 = vpop.f32.mrf.mxu1  ;;  %v2439_v32 = vpop.f32.mrf.mxu0 }
 0x3de   : > { %v1165_v43 = vadd.f32 %v2992_v54, %v1164_v37  ;;  %v2543_v32 = vld [vmem:[#allocation2] sm:$0xff]  }
 0x3df   : > { %v2410_v33 = vpop.f32.mrf.mxu1  ;;  %v1161_v34 = vpop.f32.mrf.mxu0 }
 0x3e0   : > { %v1166_v46 = vsel %vm827_vm3, %v1165_v43, -inf }
 0x3e1   : > { %v933_v35 = vpop.f32.mrf.mxu1  ;;  %v2440_v36 = vpop.f32.mrf.mxu0 }
 0x3e2   : > { %v939_v38 = vmul.f32 0.17677669, %v933_v35 }
 0x3e3   : > { %v2415_v39 = vpop.f32.mrf.mxu1 }
 0x3e4   : > { %v940_v40 = vadd.f32 %v2992_v54, %v939_v38 }
 0x3e5   : > { %v936_v41 = vpop.f32.mrf.mxu1 }
 0x3e6   : > { %v941_v42 = vsel %vm827_vm3, %v940_v40, -inf }
 0x3e7   : > { %942 = vmax.xlane.f32.xlu1 %v941_v42  ;;  %v2416_v45 = vpop.f32.mrf.mxu1 }
 0x3eb   : > { %1167 = vmax.xlane.f32.xlu1 %v1166_v46 }
 0x462   : > { %v1056_v47 = vpop.xlane.xlu0 %1055 }
 0x463   : > { %v1057_v48 = vsub.f32 %v1053_v20, %v1056_v47  ;;  %v2538_v20 = vld [vmem:[#allocation2 + $0x28] sm:$0xff]  }
 0x464   : > { %2452 = vmatpush3.bf16.msra.mxu0 %v2538_v20  ;;  %v2582_v20 = vld [vmem:[%s3205_s8 + $0x24] ss:$16 sps:$4 sm:$0xff]  }
 0x465   : > { %v1058_v50 = vmul.f32 1.442695, %v1057_v48  ;;  %2453 = vmatprep.subr.bf16.mxu0 %v2725_v1 }
 0x467   : > { %2628 = vpow2.f32 %v1058_v50 }
 0x468   : > { %2454 = vmatpush3.bf16.msra.mxu0 %v2539_v21  ;;  %v2585_v21 = vld [vmem:[%s3205_s8 + $0x2c] ss:$16 sps:$4 sm:$0xff]  }
 0x469   : > { %2455 = vmatprep.subr.bf16.mxu0 %v2725_v1 }
 0x46c   : > { %2456 = vmatpush3.bf16.msra.mxu0 %v2540_v22  ;;  %v2580_v22 = vld [vmem:[%s3205_s8 + $0x20] ss:$16 sps:$4 sm:$0xff]  }
 0x46d   : > { %2457 = vmatprep.subr.bf16.mxu0 %v2725_v1 }
 0x470   : > { %v943_v51 = vpop.xlane.xlu1 %942  ;;  %2458 = vmatpush3.bf16.msra.mxu0 %v2541_v25  ;;  %v2583_v25 = vld [vmem:[%s3205_s8 + $0x28] ss:$16 sps:$4 sm:$0xff]  }
 0x471   : > { %v944_v52 = vsub.f32 %v940_v40, %v943_v51  ;;  %2459 = vmatprep.subr.bf16.mxu0 %v2725_v1  ;;  %v2221_v51 = vld [vmem:[%s3202_s5] ss:$0 sm:$0xff] }
 0x473   : > { %v945_v58 = vmul.f32 1.442695, %v944_v52 }
 0x474   : > { %v2629_v53 = vpop.eup %2628  ;;  %v1168_v55 = vpop.xlane.xlu1 %1167  ;;  %2460 = vmatpush3.bf16.msra.mxu0 %v2542_v26  ;;  %v2588_v26 = vld [vmem:[%s3205_s8 + $0x4] ss:$16 sps:$4 sm:$0xff]  }
 0x475   : > { %v1169_v56 = vsub.f32 %v1165_v43, %v1168_v55  ;;  %v1060_v57 = vsel %vm827_vm3, %v2629_v53, 0.0  ;;  %2461 = vmatprep.subr.bf16.mxu0 %v2725_v1 }
 0x476   : > { %1061 = vadd.xlane.f32.xlu0 %v1060_v57 }
 0x477   : > { %v1170_v59 = vmul.f32 1.442695, %v1169_v56 }
 0x478   : > { %2462 = vmatpush3.bf16.msra.mxu0 %v2543_v32  ;;  %v2589_v32 = vld [vmem:[%s3205_s8 + $0x8] ss:$16 sps:$4 sm:$0xff]  }
 0x479   : > { %2630 = vpow2.f32 %v1170_v59  ;;  %v2547_v59 = vld [vmem:[%s3205_s8 + $0xe8] ss:$16 sps:$4 sm:$0xff]  }
 0x47a   : > { %2632 = vpow2.f32 %v945_v58 }
 0x486   : > { %v2631_v54 = vpop.eup %2630 }
 0x487   : > { %v1172_v60 = vsel %vm827_vm3, %v2631_v54, 0.0  ;;  %v2633_v61 = vpop.eup %2632 }
 0x488   : > { %1173 = vadd.xlane.f32.xlu1 %v1172_v60  ;;  %v947_v62 = vsel %vm827_vm3, %v2633_v61, 0.0  ;;  %v2555_v60 = vld [vmem:[%s3205_s8 + $0xcc] ss:$16 sps:$4 sm:$0xff]  }
 0x48c   : > { %954 = vrot.lane.b32.xlu0 %v2983_v49, %s2727_s15  ;;  %948 = vadd.xlane.f32.xlu1 %v947_v62  ;;  %v2553_v62 = vld [vmem:[%s3205_s8 + $0xc8] ss:$16 sps:$4 sm:$0xff]  }
 0x49d   : > { %1066 = vrot.lane.b32.xlu1 %v2983_v49, %s2728_s16 }
 0x4a1   : > { %1178 = vrot.lane.b32.xlu1 %v2983_v49, %s2729_s17 }
 0x4ff   : > { %v1062_v63 = vpop.xlane.xlu0 %1061 }
 0x503   : > { %v955_v2 = vpop.permute.xlu0 %954 }
 0x504   : > { %v960_v3 = vsel %vm843_vm2, %v955_v2, 0 }
 0x505   : > { %2418 = vmatpush3.bf16.msra.mxu1 %v960_v3 }
 0x506   : > { %2429 = vmatprep.subr.bf16.mxu1 %v2725_v1 }
 0x511   : > { %v1174_v4 = vpop.xlane.xlu1 %1173 }
 0x515   : > { %v949_v5 = vpop.xlane.xlu1 %948 }
 0x516   : > { %2634 = vrcp.f32 %v949_v5  ;;  %v2558_v5 = vld [vmem:[%s3205_s8 + $0xa4] ss:$16 sps:$4 sm:$0xff]  }
 0x517   : > { %2636 = vrcp.f32 %v1062_v63 }
 0x518   : > { %2638 = vrcp.f32 %v1174_v4 }
 0x519   : > { %v1067_v8 = vpop.permute.xlu1 %1066 }
 0x51a   : > { %v1072_v11 = vsel %vm843_vm2, %v1067_v8, 0  ;;  %v2559_v8 = vld [vmem:[%s3205_s8 + $0xa8] ss:$16 sps:$4 sm:$0xff]  }
 0x51d   : > { %v1179_v12 = vpop.permute.xlu1 %1178 }
 0x51e   : > { %v1184_v15 = vsel %vm843_vm2, %v1179_v12, 0  ;;  %v2570_v12 = vld [vmem:[%s3205_s8 + $0x64] ss:$16 sps:$4 sm:$0xff]  }
 0x523   : > { %v2635_v6 = vpop.eup %2634 }
 0x524   : > { %v951_v7 = vmul.f32 %v2635_v6, %v2633_v61  ;;  %v2637_v10 = vpop.eup %2636  ;;  %v2550_v61 = vld [vmem:[%s3205_s8 + $0xc0] ss:$16 sps:$4 sm:$0xff]   ;;  %v2561_v6 = vld [vmem:[%s3205_s8 + $0xac] ss:$16 sps:$4 sm:$0xff]  }
 0x525   : > { %v1064_v49 = vmul.f32 %v2637_v10, %v2629_v53  ;;  %v2639_v14 = vpop.eup %2638  ;;  %v2564_v10 = vld [vmem:[%s3205_s8 + $0x84] ss:$16 sps:$4 sm:$0xff]  }
 0x526   : > { %v952_v9 = vpack.c.bf16 %v951_v7, %v951_v7  ;;  %v1176_v16 = vmul.f32 %v2639_v14, %v2631_v54  ;;  %v2549_v54 = vld [vmem:[%s3205_s8 + $0xec] ss:$16 sps:$4 sm:$0xff]   ;;  %v2556_v7 = vld [vmem:[%s3205_s8 + $0xa0] ss:$16 sps:$4 sm:$0xff]  }
 0x527   : > { %v1065_v13 = vpack.c.bf16 %v1064_v49, %v1064_v49  ;;  %1640 = vmatprep.subr.bf16.mxu0 %v2549_v54  ;;  %v2567_v49 = vld [vmem:[%s3205_s8 + $0x8c] ss:$16 sps:$4 sm:$0xff]   ;;  %v2568_v14 = vld [vmem:[%s3205_s8 + $0x60] ss:$16 sps:$4 sm:$0xff]  }
 0x528   : > { %2420 = vmatmul.mubr.msk.bf16.vlgmr.msra.gmra.mxu1 %vm827_vm3, %v952_v9  ;;  %v1177_v17 = vpack.c.bf16 %v1176_v16, %v1176_v16  ;;  %v2562_v9 = vld [vmem:[%s3205_s8 + $0x80] ss:$16 sps:$4 sm:$0xff]   ;;  %v2576_v16 = vld [vmem:[%s3205_s8 + $0x44] ss:$16 sps:$4 sm:$0xff]   ;;  %v2609_v54 = vld [vmem:[#allocation4 + $0xd8] sm:$0xff]  }
 0x529   : > { %2430 = vmatpush3.bf16.msra.mxu1 %v1072_v11  ;;  %2431 = vmatprep.mubr.msk.bf16.mxu1 %vm2726_vm0, %v2725_v1  ;;  %v2565_v11 = vld [vmem:[%s3205_s8 + $0x88] ss:$16 sps:$4 sm:$0xff]  }
 0x52a   : > { %2441 = vmatprep.subr.bf16.mxu1 %v2725_v1 }
 0x530   : > { %2432 = vmatmul.mubr.msk.bf16.vlgmr.msra.gmra.mxu1 %vm827_vm3, %v1065_v13  ;;  %v2573_v13 = vld [vmem:[%s3205_s8 + $0x6c] ss:$16 sps:$4 sm:$0xff]  }
 0x531   : > { %2442 = vmatpush3.bf16.msra.mxu1 %v1184_v15  ;;  %2443 = vmatprep.mubr.msk.bf16.mxu1 %vm2726_vm0, %v2725_v1  ;;  %v2571_v15 = vld [vmem:[%s3205_s8 + $0x68] ss:$16 sps:$4 sm:$0xff]  }
 0x538   : > { %2444 = vmatmul.mubr.msk.bf16.vlgmr.msra.gmra.mxu1 %vm827_vm3, %v1177_v17  ;;  %v2579_v17 = vld [vmem:[%s3205_s8 + $0x4c] ss:$16 sps:$4 sm:$0xff]  }
 0x539   : > { %1631 = vmatprep.mubr.bf16.mxu1 %v2724_v0 }
 0x5e8   : > { %v996_v27 = vpop.f32.mrf.mxu1 }
 0x5e9   : > { %1227 = vrot.lane.b32.xlu0 %v996_v27, %s2729_s17  ;;  %v2591_v27 = vld [vmem:[%s3205_s8 + $0xc] ss:$16 sps:$4 sm:$0xff]  }
 0x5ea   : > { %v2421_v28 = vpop.f32.mrf.mxu1 }
 0x5eb   : > { %v2586_v28 = vld [vmem:[%s3205_s8] ss:$16 sps:$4 sm:$0xff]  }
 0x5ec   : > { %v999_v33 = vpop.f32.mrf.mxu1 }
 0x5ee   : > { %v2422_v34 = vpop.f32.mrf.mxu1 }
 0x5f0   : > { %v1108_v35 = vpop.f32.mrf.mxu1 }
 0x5f1   : > { %1231 = vrot.lane.b32.xlu1 %v1108_v35, %s2728_s16 }
 0x5f2   : > { %v2433_v36 = vpop.f32.mrf.mxu1 }
 0x5f4   : > { %v1111_v37 = vpop.f32.mrf.mxu1 }
 0x5f5   : > { %v2230_v37 = vld [vmem:[%s3203_s6] ss:$0 sm:$0xff] }
 0x5f6   : > { %v2434_v38 = vpop.f32.mrf.mxu1 }
 0x5f8   : > { %v1220_v39 = vpop.f32.mrf.mxu1 }
 0x5f9   : > { %1235 = vrot.lane.b32.xlu0 %v1220_v39, %s2727_s15  ;;  %v2231_v39 = vld [vmem:[%s3204_s7] ss:$0 sm:$0xff] }
 0x5fa   : > { %v2445_v40 = vpop.f32.mrf.mxu1 }
 0x5fc   : > { %v1223_v41 = vpop.f32.mrf.mxu1 }
 0x5fe   : > { %v2446_v42 = vpop.f32.mrf.mxu1 }
 0x65b   : > { %v1228_v43 = vpop.permute.xlu0 %1227 }
 0x65c   : > { %v1238_v1 = vsel %vm772_vm1, %v3018_v24, %v1228_v43  ;;  %v2544_v24 = vld [vmem:[%s3205_s8 + $0xe0] ss:$16 sps:$4 sm:$0xff]   ;;  %v2592_v43 = vld [vmem:[#allocation4 + $0x78] sm:$0xff]  }
 0x663   : > { %v1232_v45 = vpop.permute.xlu1 %1231 }
 0x664   : > { %v1240_v46 = vsel %vm1239_vm4, %v1238_v1, %v1232_v45  ;;  %v2593_v45 = vld [vmem:[#allocation4 + $0xf8] sm:$0xff]  }
 0x665   : > { %v2594_v1 = vld [vmem:[#allocation4 + $0x38] sm:$0xff]  }
 0x66b   : > { %v1236_v47 = vpop.permute.xlu0 %1235 }
 0x66c   : > { %v1242_v48 = vsel %vm1241_vm5, %v1240_v46, %v1236_v47  ;;  %v2595_v46 = vld [vmem:[#allocation4 + $0xb8] sm:$0xff]   ;;  %v2596_v47 = vld [vmem:[#allocation4 + $0x70] sm:$0xff]  }
 0x66d   : > { %v1243_v50 = vpack.c.bf16 %v1242_v48, %v1242_v48  ;;  %v2597_v48 = vld [vmem:[#allocation4 + $0xf0] sm:$0xff]  }
 0x66f   : > { %2464 = vmatmul.mubr.bf16.vlgmr.msra.gmra.mxu0 %v1243_v50  ;;  %v2598_v50 = vld [vmem:[#allocation4 + $0x30] sm:$0xff]  }
 0x670   : > { %1672 = vmatprep.mubr.bf16.mxu0 %v2724_v0  ;;  %v2546_v0 = vld [vmem:[%s3205_s8 + $0xe4] ss:$16 sps:$4 sm:$0xff]   ;;  %1641 = vmatpush1.bf16.msra.mxu0 %v2547_v59  ;;  %v2608_v59 = vld [vmem:[#allocation4 + $0x58] sm:$0xff]  }
 0x671   : > { %1599 = vmatprep.subr.bf16.mxu1 %v2546_v0  ;;  %1642 = vmatprep.subr.bf16.mxu0 %v2555_v60  ;;  %v2607_v0 = vld [vmem:[#allocation4 + $0xa0] sm:$0xff]   ;;  %v2611_v60 = vld [vmem:[#allocation4 + $0x98] sm:$0xff]  }
 0x672   : > { %1600 = vmatpush1.bf16.msra.mxu1 %v2544_v24  ;;  %v2606_v24 = vld [vmem:[#allocation4 + $0x20] sm:$0xff]  }
 0x674   : > { %1643 = vmatpush1.bf16.msra.mxu0 %v2553_v62  ;;  %v2613_v62 = vld [vmem:[#allocation4 + $0xd0] sm:$0xff]  }
 0x675   : > { %1644 = vmatprep.subr.bf16.mxu0 %v2561_v6  ;;  %v2619_v6 = vld [vmem:[#allocation4 + $0x88] sm:$0xff]  }
 0x678   : > { %1645 = vmatpush1.bf16.msra.mxu0 %v2559_v8  ;;  %v2621_v8 = vld [vmem:[#allocation4 + $0xc0] sm:$0xff]  }
 0x679   : > { %1646 = vmatprep.subr.bf16.mxu0 %v2567_v49  ;;  %v1433_v49 = vsub.s32 3, %v2959_v29 }
 0x67c   : > { %1647 = vmatpush1.bf16.msra.mxu0 %v2565_v11  ;;  %v1417_v11 = vld [vmem:[%s3206_s9] sm:$0xf] }
 0x67d   : > { %1648 = vmatprep.subr.bf16.mxu0 %v2573_v13  ;;  %v1430_v13 = vrot.slane %v1417_v11, %v554_v44 }
 0x680   : > { %1649 = vmatpush1.bf16.msra.mxu0 %v2571_v15  ;;  %v1434_v15 = vrot.slane %v1417_v11, %v1433_v49 }
 0x681   : > { %1650 = vmatprep.subr.bf16.mxu0 %v2579_v17 }
 0x684   : > { %1651 = vmatpush1.bf16.msra.mxu0 %v2577_v19 }
 0x685   : > { %1652 = vmatprep.subr.bf16.mxu0 %v2585_v21 }
 0x688   : > { %1653 = vmatpush1.bf16.msra.mxu0 %v2583_v25 }
 0x689   : > { %1654 = vmatprep.subr.bf16.mxu0 %v2591_v27 }
 0x68c   : > { %1655 = vmatpush1.bf16.msra.mxu0 %v2589_v32 }
 0x68d   : > { %2357 = vmatprep.subr.bf16.mxu0 %v2593_v45 }
 0x72f   : > { %v1349_v52 = vpop.f32.mrf.mxu0 }
 0x730   : > { %v1350_v53 = vadd.f32 %v2221_v51, %v1349_v52  ;;  %v2599_v51 = vld [vmem:[#allocation4 + $0xb0] sm:$0xff]   ;;  %v2600_v52 = vld [vmem:[#allocation4 + $0x68] sm:$0xff]  }
 0x731   : > { %v2465_v55 = vpop.f32.mrf.mxu0 }
 0x732   : > { %v1355_v56 = vadd.f32 %v1350_v53, %v2934_v23  ;;  %v2552_v23 = vld [vmem:[%s3205_s8 + $0xc4] ss:$16 sps:$4 sm:$0xff]   ;;  %v2601_v53 = vld [vmem:[#allocation4 + $0xe8] sm:$0xff]  }
 0x733   : > { %v1352_v57 = vpop.f32.mrf.mxu0  ;;  %1601 = vmatprep.subr.bf16.mxu1 %v2552_v23  ;;  %v2602_v55 = vld [vmem:[#allocation4 + $0x28] sm:$0xff]   ;;  %v2610_v23 = vld [vmem:[#allocation4 + $0x18] sm:$0xff]  }
 0x734   : > { %1358 = vadd.xlane.f32.xlu1 %v1355_v56  ;;  %1602 = vmatpush1.bf16.msra.mxu1 %v2550_v61  ;;  %v2604_v57 = vld [vmem:[#allocation4 + $0x60] sm:$0xff]   ;;  %v2612_v61 = vld [vmem:[#allocation4 + $0x50] sm:$0xff]  }
 0x735   : > { %v2466_v58 = vpop.f32.mrf.mxu0  ;;  %1603 = vmatprep.subr.bf16.mxu1 %v2558_v5  ;;  %v2618_v5 = vld [vmem:[#allocation4 + $0x8] sm:$0xff]  }
 0x736   : > { %v2605_v58 = vld [vmem:[#allocation4 + $0xe0] sm:$0xff]  }
 0x738   : > { %1604 = vmatpush1.bf16.msra.mxu1 %v2556_v7  ;;  %v2620_v7 = vld [vmem:[#allocation4 + $0x40] sm:$0xff]  }
 0x739   : > { %1605 = vmatprep.subr.bf16.mxu1 %v2564_v10  ;;  %v2623_v10 = vld [vmem:[#allocation4 + $0x80] sm:$0xff]  }
 0x73c   : > { %1606 = vmatpush1.bf16.msra.mxu1 %v2562_v9  ;;  %v2622_v9 = vld [vmem:[#allocation4] sm:$0xff]  }
 0x73d   : > { %1607 = vmatprep.subr.bf16.mxu1 %v2570_v12  ;;  %v1422_v12 = vrot.slane %v1417_v11, %v546_v31 }
 0x740   : > { %1608 = vmatpush1.bf16.msra.mxu1 %v2568_v14  ;;  %v1426_v14 = vrot.slane %v1417_v11, %v550_v30 }
 0x741   : > { %1609 = vmatprep.subr.bf16.mxu1 %v2576_v16 }
 0x744   : > { %1610 = vmatpush1.bf16.msra.mxu1 %v2574_v18 }
 0x745   : > { %1611 = vmatprep.subr.bf16.mxu1 %v2582_v20 }
 0x748   : > { %1612 = vmatpush1.bf16.msra.mxu1 %v2580_v22 }
 0x749   : > { %1613 = vmatprep.subr.bf16.mxu1 %v2588_v26 }
 0x74c   : > { %1614 = vmatpush1.bf16.msra.mxu1 %v2586_v28 }
 0x74d   : > { %2335 = vmatprep.subr.bf16.mxu1 %v2592_v43 }
 0x7bd   : > { %v1359_v63 = vpop.xlane.xlu1 %1358 }
 0x7be   : > { %v1361_v2 = vmul.f32 0.0078125, %v1359_v63  ;;  %v2614_v63 = vld [vmem:[#allocation4 + $0x10] sm:$0xff]  }
 0x7c0   : > { %v1362_v3 = vsub.f32 %v1355_v56, %v1361_v2  ;;  %v2603_v56 = vld [vmem:[#allocation4 + $0xa8] sm:$0xff]   ;;  %v2615_v2 = vld [vmem:[#allocation4 + $0x90] sm:$0xff]  }
 0x7c2   : > { %v1363_v4 = vmul.f32 %v1362_v3, %v1362_v3 }
 0x7c4   : > { %1364 = vadd.xlane.f32.xlu0 %v1363_v4  ;;  %v2617_v4 = vld [vmem:[#allocation4 + $0xc8] sm:$0xff]  }
 0x84d   : > { %v1365_v33 = vpop.xlane.xlu0 %1364 }
 0x84e   : > { %v1366_v34 = vmul.f32 0.0078125, %v1365_v33 }
 0x850   : > { %v1367_v35 = vadd.f32 1e-05, %v1366_v34 }
 0x852   : > { %2640 = vrsqrt.f32 %v1367_v35 }
 0x85f   : > { %v2641_v36 = vpop.eup %2640 }
 0x860   : > { %v1369_v38 = vmul.f32 %v2641_v36, %v1362_v3  ;;  %v2616_v3 = vld [vmem:[#allocation4 + $0x48] sm:$0xff]  }
 0x862   : > { %v1376_v40 = vmul.f32 %v2230_v37, %v1369_v38 }
 0x864   : > { %v3165_v41 = vadd.f32 %v2231_v39, %v1376_v40 }
 0x866   : > { %v1384_v42 = vpack.c.bf16 %v3165_v41, %v3165_v41 }
 0x868   : > { %1632 = vmatmul.mubr.bf16.vlgmr.msra.gmra.mxu1 %v1384_v42  ;;  %1673 = vmatmul.mubr.bf16.vlgmr.msra.gmra.mxu0 %v1384_v42 }
 0x869   : > { %2336 = vmatpush3.bf16.msra.mxu1 %v2594_v1  ;;  %2358 = vmatpush3.bf16.msra.mxu0 %v2595_v46 }
 0x86a   : > { %2337 = vmatprep.subr.bf16.mxu1 %v2596_v47  ;;  %2359 = vmatprep.subr.bf16.mxu0 %v2597_v48 }
 0x86d   : > { %2338 = vmatpush3.bf16.msra.mxu1 %v2598_v50  ;;  %2360 = vmatpush3.bf16.msra.mxu0 %v2599_v51 }
 0x86e   : > { %2339 = vmatprep.subr.bf16.mxu1 %v2600_v52  ;;  %2361 = vmatprep.subr.bf16.mxu0 %v2601_v53 }
 0x871   : > { %2340 = vmatpush3.bf16.msra.mxu1 %v2602_v55  ;;  %2362 = vmatpush3.bf16.msra.mxu0 %v2603_v56 }
 0x872   : > { %2341 = vmatprep.subr.bf16.mxu1 %v2604_v57  ;;  %2363 = vmatprep.subr.bf16.mxu0 %v2605_v58 }
 0x875   : > { %2342 = vmatpush3.bf16.msra.mxu1 %v2606_v24  ;;  %2364 = vmatpush3.bf16.msra.mxu0 %v2607_v0 }
 0x876   : > { %2343 = vmatprep.subr.bf16.mxu1 %v2608_v59  ;;  %2365 = vmatprep.subr.bf16.mxu0 %v2609_v54 }
 0x879   : > { %2344 = vmatpush3.bf16.msra.mxu1 %v2610_v23  ;;  %2366 = vmatpush3.bf16.msra.mxu0 %v2611_v60 }
 0x87a   : > { %2345 = vmatprep.subr.bf16.mxu1 %v2612_v61  ;;  %2367 = vmatprep.subr.bf16.mxu0 %v2613_v62 }
 0x87d   : > { %2346 = vmatpush3.bf16.msra.mxu1 %v2614_v63  ;;  %2368 = vmatpush3.bf16.msra.mxu0 %v2615_v2 }
 0x87e   : > { %2347 = vmatprep.subr.bf16.mxu1 %v2616_v3  ;;  %2369 = vmatprep.subr.bf16.mxu0 %v2617_v4 }
 0x881   : > { %2348 = vmatpush3.bf16.msra.mxu1 %v2618_v5  ;;  %2370 = vmatpush3.bf16.msra.mxu0 %v2619_v6 }
 0x882   : > { %2349 = vmatprep.subr.bf16.mxu1 %v2620_v7  ;;  %2371 = vmatprep.subr.bf16.mxu0 %v2621_v8  ;;  %v2264_v8 = vld [vmem:[%s3208_s11] ss:$0 sm:$0xff] }
 0x885   : > { %2350 = vmatpush3.bf16.msra.mxu1 %v2622_v9  ;;  %2372 = vmatpush3.bf16.msra.mxu0 %v2623_v10 }
 0x928   : > { %v1633_v16 = vpop.f32.mrf.mxu1  ;;  %v1674_v17 = vpop.f32.mrf.mxu0 }
 0x929   : > { %v1634_v18 = vadd.f32 %v1633_v16, %v1422_v12  ;;  %v1675_v19 = vadd.f32 %v1674_v17, %v1430_v13 }
 0x92a   : > { %v1635_v20 = vpop.f32.mrf.mxu1  ;;  %v1676_v21 = vpop.f32.mrf.mxu0 }
 0x92b   : > { %v1685_v22 = vmul.f32 0.044715, %v1634_v18  ;;  %v1687_v25 = vmul.f32 0.044715, %v1675_v19  ;;  %v1636_v26 = vadd.f32 %v1635_v20, %v1426_v14  ;;  %v1677_v27 = vadd.f32 %v1676_v21, %v1434_v15 }
 0x92c   : > { %v1637_v28 = vpop.f32.mrf.mxu1  ;;  %v1678_v32 = vpop.f32.mrf.mxu0  ;;  %v1681_v56 = vmul.f32 0.5, %v1634_v18  ;;  %v1683_v59 = vmul.f32 0.5, %v1675_v19 }
 0x92d   : > { %v1689_v31 = vmul.f32 %v1685_v22, %v1634_v18  ;;  %v1691_v33 = vmul.f32 %v1687_v25, %v1675_v19  ;;  %v1686_v34 = vmul.f32 0.044715, %v1636_v26  ;;  %v1688_v44 = vmul.f32 0.044715, %v1677_v27  ;;  %v2297_v32 = vld [vmem:[%s3209_s12] ss:$0 sm:$0xff] }
 0x92e   : > { %v1638_v35 = vpop.f32.mrf.mxu1  ;;  %v1679_v29 = vpop.f32.mrf.mxu0  ;;  %v1682_v24 = vmul.f32 0.5, %v1636_v26  ;;  %v1684_v54 = vmul.f32 0.5, %v1677_v27 }
 0x92f   : > { %v1693_v30 = vmul.f32 %v1689_v31, %v1634_v18  ;;  %v1695_v36 = vmul.f32 %v1691_v33, %v1675_v19  ;;  %v1690_v37 = vmul.f32 %v1686_v34, %v1636_v26  ;;  %v1692_v38 = vmul.f32 %v1688_v44, %v1677_v27 }
 0x931   : > { %v1697_v39 = vadd.f32 %v1693_v30, %v1634_v18  ;;  %v1699_v40 = vadd.f32 %v1695_v36, %v1675_v19  ;;  %v1694_v42 = vmul.f32 %v1690_v37, %v1636_v26  ;;  %v1696_v43 = vmul.f32 %v1692_v38, %v1677_v27 }
 0x933   : > { %v1701_v45 = vmul.f32 0.7978846, %v1697_v39  ;;  %v1703_v1 = vmul.f32 0.7978846, %v1699_v40  ;;  %v1698_v46 = vadd.f32 %v1694_v42, %v1636_v26  ;;  %v1700_v47 = vadd.f32 %v1696_v43, %v1677_v27 }
 0x935   : > { %v1702_v48 = vmul.f32 0.7978846, %v1698_v46  ;;  %v1704_v50 = vmul.f32 0.7978846, %v1700_v47  ;;  %2642 = vtanh.f32 %v1701_v45 }
 0x936   : > { %2644 = vtanh.f32 %v1703_v1 }
 0x937   : > { %2646 = vtanh.f32 %v1702_v48 }
 0x938   : > { %2648 = vtanh.f32 %v1704_v50 }
 0x942   : > { %v2643_v51 = vpop.eup %2642 }
 0x943   : > { %v2645_v52 = vpop.eup %2644  ;;  %v1709_v53 = vadd.f32 1.0, %v2643_v51 }
 0x944   : > { %v2647_v55 = vpop.eup %2646  ;;  %v1711_v57 = vadd.f32 1.0, %v2645_v52 }
 0x945   : > { %v2649_v58 = vpop.eup %2648  ;;  %v1710_v0 = vadd.f32 1.0, %v2647_v55  ;;  %v1713_v60 = vmul.f32 %v1709_v53, %v1681_v56 }
 0x946   : > { %v1712_v23 = vadd.f32 1.0, %v2649_v58  ;;  %v1715_v62 = vmul.f32 %v1711_v57, %v1683_v59 }
 0x947   : > { %v1714_v61 = vmul.f32 %v1710_v0, %v1682_v24  ;;  %v1717_v4 = vpack.c.bf16 %v1713_v60, %v1713_v60 }
 0x948   : > { %v1716_v63 = vmul.f32 %v1712_v23, %v1684_v54  ;;  %v1719_v5 = vpack.c.bf16 %v1715_v62, %v1715_v62 }
 0x949   : > { %v1718_v2 = vpack.c.bf16 %v1714_v61, %v1714_v61 }
 0x94a   : > { %v1720_v3 = vpack.c.bf16 %v1716_v63, %v1716_v63 }
 0x94b   : > { %2016 = vmatprep.mubr.bf16.mxu1 %v1718_v2 }
 0x94c   : > { %2056 = vmatprep.mubr.bf16.mxu0 %v1720_v3  ;;  %2017 = vmatmul.mubr.bf16.vlgmr.msra.gmra.mxu1 %v1717_v4 }
 0x94d   : > { %2057 = vmatmul.mubr.bf16.vlgmr.msra.gmra.mxu0 %v1719_v5 }
 0xa0c   : > { %v2351_v6 = vpop.f32.mrf.mxu1 }
 0xa0d   : > { %v2373_v7 = vpop.f32.mrf.mxu0 }
 0xa0e   : > { %v2352_v9 = vpop.f32.mrf.mxu1 }
 0xa0f   : > { %v2353_v10 = vadd.f32 %v2352_v9, %v2351_v6  ;;  %v2374_v11 = vpop.f32.mrf.mxu0 }
 0xa10   : > { %v2354_v49 = vpop.f32.mrf.mxu1  ;;  %v2375_v13 = vadd.f32 %v2374_v11, %v2373_v7 }
 0xa11   : > { %v2019_v12 = vadd.f32 %v2353_v10, %v2264_v8  ;;  %v2376_v14 = vpop.f32.mrf.mxu0 }
 0xa12   : > { %v2355_v15 = vpop.f32.mrf.mxu1 }
 0xa13   : > { %v2059_v16 = vadd.f32 %v2375_v13, %v2019_v12  ;;  %v2377_v17 = vpop.f32.mrf.mxu0 }
 0xa15   : > { %v2064_v18 = vadd.f32 %v2059_v16, %v3165_v41  ;;  %v2298_v41 = vld [vmem:[%s3210_s13] ss:$0 sm:$0xff] }
 0xa17   : > { %2067 = vadd.xlane.f32.xlu0 %v2064_v18 }
 0xaa0   : > { %v2068_v19 = vpop.xlane.xlu0 %2067 }
 0xaa1   : > { %v2069_v20 = vmul.f32 0.0078125, %v2068_v19 }
 0xaa3   : > { %v2070_v21 = vsub.f32 %v2064_v18, %v2069_v20 }
 0xaa5   : > { %v2071_v22 = vmul.f32 %v2070_v21, %v2070_v21 }
 0xaa7   : > { %2072 = vadd.xlane.f32.xlu1 %v2071_v22 }
 0xb30   : > { %v2073_v25 = vpop.xlane.xlu1 %2072 }
 0xb31   : > { %v2074_v26 = vmul.f32 0.0078125, %v2073_v25 }
 0xb33   : > { %v2075_v27 = vadd.f32 1e-05, %v2074_v26 }
 0xb35   : > { %2650 = vrsqrt.f32 %v2075_v27 }
 0xb42   : > { %v2651_v28 = vpop.eup %2650 }
 0xb43   : > { %v2077_v31 = vmul.f32 %v2651_v28, %v2070_v21 }
 0xb45   : > { %v2084_v33 = vmul.f32 %v2297_v32, %v2077_v31 }
 0xb47   : > { %v2091_v34 = vadd.f32 %v2298_v41, %v2084_v33 }
 0xb49   : > { %2092 = vst [vmem:[%s506_s24] sm:$0xff] %v2091_v34 }
 0xb4a PF: > { %s26_s29 = sadd.s32 1, %s2718_s29  }
 0xb4b   : > { %p23_p3 = scmp.ge.s32.totalorder %s26_s29, 4  }
 0xb4d   :  { %25 = sbr.rel (!%p23_p3) target bundleno = 2 (0x2), region = 118 }
 0xb52   :  { %2112 = vsyncpa [#allocation3], 1 }
 0xb53   :  { %2114 = vsyncpa [#allocation3 + $0x1], 1 }
 0xb54   :  { %2115 = vsyncpa [#allocation5], 1 }

</bundles_post_ra>
